<compile_context>
chip_gen: v5e
topology: v5e:2x2
jax: 0.10.0
libtpu: 0.0.40
codegen_flags: <defaults>
</compile_context>

<pallas_src>
import jax
import jax.numpy as jnp
import numpy as np
from jax.experimental import pallas as pl
from jax.experimental.pallas import tpu as pltpu


def _round_up(v, m):
    return ((v + m - 1) // m) * m


def _tpu_target_info():
    """Best-effort (num_tensorcores, vmem_capacity_bytes) for the local TPU."""
    try:
        kind = jax.devices()[0].device_kind.lower()
    except Exception:  # defensive: never fail just because of the query
        kind = ""
    is_v7 = ("v7" in kind) or ("tpu7" in kind)
    num_tc = 2 if is_v7 else 1
    if any(g in kind for g in ("v2", "v3", "v4", "v5", "v6")):
        vmem_cap = 128 * 1024 * 1024
    else:
        vmem_cap = 64 * 1024 * 1024  # conservative default (v7x per-TC VMEM)
    try:
        info = pltpu.get_tpu_info()
        vmem_cap = int(getattr(info, "vmem_capacity_bytes", vmem_cap))
    except Exception:
        pass
    return num_tc, vmem_cap


def _make_decoder_kernel(n_layers):
    """Kernel over refs (x, w0, b0, ..., w_{L-1}, b_{L-1}, o).

    All layers are computed on-chip; only the final activation is stored."""

    def kernel(*refs):
        x_ref = refs[0]
        o_ref = refs[-1]
        h = x_ref[...].astype(jnp.float32)  # (tm, K0)
        for l in range(n_layers):
            w_ref = refs[1 + 2 * l]  # (K_l, N_l) VMEM-resident (bf16 or f32)
            b_ref = refs[2 + 2 * l]  # (1,  N_l) VMEM-resident
            # bf16 (or f32) inputs -> MXU, f32 accumulation.
            y = jnp.dot(h.astype(w_ref.dtype), w_ref[...],
                        preferred_element_type=jnp.float32)
            y = y + b_ref[...].astype(jnp.float32)
            # SiLU in f32 (safe on v5e). An EUP-only variant
            # (y * pl.reciprocal(1 + exp(-y), approx=True)) frees VALU slots on
            # v6e/v7x, but the kernel is not VALU-bound at these sizes.
            h = y * jax.nn.sigmoid(y)
        o_ref[...] = h.astype(o_ref.dtype)

    return kernel


def decoder_forward(x, params, *, out_dtype=None, force_steps=None):
    """Fused Decoder forward: y = SiLU(...SiLU(SiLU(x W0 + b0) W1 + b1)...).

    One pallas_call; the grid is tiled over the batch axis only, with one tile
    per TensorCore unless VMEM forces more steps. Weights / biases use
    constant index_maps so they stay VMEM-resident across the whole grid.
    Set out_dtype=jnp.bfloat16 to halve output writeback if downstream allows.
    """
    M, K0 = x.shape
    n_layers = len(params)
    n_last = params[-1][0].shape[1]
    out_dtype = jnp.dtype(x.dtype if out_dtype is None else out_dtype)

    num_tc, vmem_cap = _tpu_target_info()
    # Scoped-VMEM limit: ~96 MiB on 128-MiB chips (v5e/v6e), ~48 MiB on v7x.
    vmem_limit = min(vmem_cap * 3 // 4, 100 * 1024 * 1024)
    budget = int(vmem_limit * 0.9)

    # Resident footprint. Pallas double-buffers every input by default, even
    # constant-index_map weights, so count 2 buffers each.
    # TODO(synk): when the decoder scales toward the v7x VMEM cap, single-buffer
    # the resident specs (pipeline_mode=pl.Buffered(1)) and/or add an N-tiling
    # grid axis instead of keeping every layer's full weight resident.
    resident_bytes = sum(
        2 * (w.size * w.dtype.itemsize + b.size * b.dtype.itemsize)
        for w, b in params
    )

    # Fewest grid steps: one batch tile per TensorCore (v7x has 2); grow only
    # if the per-step (double-buffered) stream tile would blow the VMEM budget.
    steps = force_steps or (num_tc if M >= 16 * num_tc else 1)
    while True:
        if steps == 1:
            tm, m_pad = M, M  # full-extent block: exempt from x8 rule, no padding
        else:
            tm = _round_up(pl.cdiv(M, steps), 8)
            m_pad = steps * tm
        stream_bytes = 2 * tm * (K0 * x.dtype.itemsize
                                 + n_last * out_dtype.itemsize)
        if resident_bytes + stream_bytes <= budget or tm <= 8:
            break
        steps += num_tc

    assert resident_bytes + stream_bytes <= budget, (
        "decoder too large for fully-resident weights; tile the N axis")

    if m_pad != M:
        x = jnp.pad(x, ((0, m_pad - M), (0, 0)))

    in_specs = [pl.BlockSpec((tm, K0), lambda i: (i, 0))]  # streamed batch tile
    inputs = [x]
    for w, b in params:
        k_l, n_l = w.shape
        assert b.shape == (1, n_l)
        in_specs.append(pl.BlockSpec((k_l, n_l), lambda i: (0, 0)))  # resident W
        in_specs.append(pl.BlockSpec((1, n_l), lambda i: (0, 0)))    # resident b
        inputs.append(w)
        inputs.append(b)

    out = pl.pallas_call(
        _make_decoder_kernel(n_layers),
        out_shape=jax.ShapeDtypeStruct((m_pad, n_last), out_dtype),
        grid_spec=pltpu.PrefetchScalarGridSpec(
            num_scalar_prefetch=0,
            grid=(steps,),
            in_specs=in_specs,
            out_specs=pl.BlockSpec((tm, n_last), lambda i: (i, 0)),
        ),
        compiler_params=pltpu.CompilerParams(
            dimension_semantics=("parallel",),  # batch tiles: 2-TC shardable on v7x
            vmem_limit_bytes=vmem_limit,
        ),
    )(*inputs)

    return out[:M] if m_pad != M else out


def init_decoder_params(decoder_shape, hidden_dim, key):
    """torch.nn.Linear-style init (uniform +-1/sqrt(fan_in)), f32 master copy.
    Returns list of (W[in,out], b[1,out])."""
    dims = (hidden_dim, *decoder_shape)
    params = []
    for i in range(len(dims) - 1):
        fan_in, fan_out = dims[i], dims[i + 1]
        key, kw, kb = jax.random.split(key, 3)
        bound = 1.0 / np.sqrt(fan_in)
        w = jax.random.uniform(kw, (fan_in, fan_out), jnp.float32, -bound, bound)
        b = jax.random.uniform(kb, (1, fan_out), jnp.float32, -bound, bound)
        params.append((w, b))
    return params


def decoder_forward_ref(x, params):
    """Pure-JAX reference mirroring the kernel's dtype handling
    (for f32 params this is exactly the PyTorch module semantics)."""
    h = x.astype(jnp.float32)
    for w, b in params:
        y = jnp.dot(h.astype(w.dtype), w, preferred_element_type=jnp.float32)
        y = y + b.astype(jnp.float32)
        h = y * jax.nn.sigmoid(y)
    return h


if __name__ == "__main__":
    # Module configuration: hidden_dim (latent) = 32, decoder_shape = (64, 128, 256)
    hidden_dim = 32
    decoder_shape = (64, 128, 256)
    batch = 256

    x = jax.random.normal(jax.random.PRNGKey(0), (batch, hidden_dim), jnp.float32)
    params_f32 = init_decoder_params(decoder_shape, hidden_dim,
                                     key=jax.random.PRNGKey(42))
    # Fast path: bf16 weight storage (MXU-native), biases stay f32.
    params_bf16 = [(w.astype(jnp.bfloat16), b) for w, b in params_f32]

    fwd = jax.jit(decoder_forward)

    # 1) f32 weights: exact module semantics, tight tolerance.
    out_f32 = jax.block_until_ready(fwd(x, params_f32))
    np.testing.assert_allclose(
        np.asarray(out_f32), np.asarray(decoder_forward_ref(x, params_f32)),
        rtol=1e-5, atol=1e-5)
    assert out_f32.shape == (batch, decoder_shape[-1])

    # 2) bf16 weights (the performance path): compare against the matched
    #    bf16-input / f32-accumulation reference.
    out_bf16 = jax.block_until_ready(fwd(x, params_bf16))
    np.testing.assert_allclose(
        np.asarray(out_bf16), np.asarray(decoder_forward_ref(x, params_bf16)),
        rtol=1e-3, atol=1e-3)

    # 3) Tiny non-multiple batch: single full-extent block, no padding copy.
    x_small = jax.random.normal(jax.random.PRNGKey(7), (5, hidden_dim), jnp.float32)
    out_small = jax.block_until_ready(decoder_forward(x_small, params_f32))
    np.testing.assert_allclose(
        np.asarray(out_small), np.asarray(decoder_forward_ref(x_small, params_f32)),
        rtol=1e-5, atol=1e-5)

    # 4) Force the multi-step (padded, grid=(2,)) path so it is exercised on
    #    every chip generation, not just v7x.
    x_odd = jax.random.normal(jax.random.PRNGKey(11), (37, hidden_dim), jnp.float32)
    out_odd = jax.block_until_ready(
        decoder_forward(x_odd, params_f32, force_steps=2))
    np.testing.assert_allclose(
        np.asarray(out_odd), np.asarray(decoder_forward_ref(x_odd, params_f32)),
        rtol=1e-5, atol=1e-5)

    print("KERNEL_OK")
</pallas_src>

<mosaic_0001>
module attributes {stable_mosaic.version = 11 : i64} {
  func.func @kernel(%arg0: i32, %arg1: memref<256x32xf32, #tpu.memory_space<vmem>>, %arg2: memref<32x64xf32, #tpu.memory_space<vmem>>, %arg3: memref<1x64xf32, #tpu.memory_space<vmem>>, %arg4: memref<64x128xf32, #tpu.memory_space<vmem>>, %arg5: memref<1x128xf32, #tpu.memory_space<vmem>>, %arg6: memref<128x256xf32, #tpu.memory_space<vmem>>, %arg7: memref<1x256xf32, #tpu.memory_space<vmem>>, %arg8: memref<256x256xf32, #tpu.memory_space<vmem>>) attributes {dimension_semantics = [#tpu.dimension_semantics<parallel>], iteration_bounds = array<i64: 1>, scalar_prefetch = 0 : i64, scratch_operands = 0 : i64, tpu.core_type = #tpu.core_type<tc>, window_params = [{transform_indices = @transform_0, window_bounds = array<i64: 256, 32>}, {pipeline_mode = #tpu.pipeline_mode<synchronous>, transform_indices = @transform_1, window_bounds = array<i64: 32, 64>}, {pipeline_mode = #tpu.pipeline_mode<synchronous>, transform_indices = @transform_2, window_bounds = array<i64: 1, 64>}, {pipeline_mode = #tpu.pipeline_mode<synchronous>, transform_indices = @transform_3, window_bounds = array<i64: 64, 128>}, {pipeline_mode = #tpu.pipeline_mode<synchronous>, transform_indices = @transform_4, window_bounds = array<i64: 1, 128>}, {pipeline_mode = #tpu.pipeline_mode<synchronous>, transform_indices = @transform_5, window_bounds = array<i64: 128, 256>}, {pipeline_mode = #tpu.pipeline_mode<synchronous>, transform_indices = @transform_6, window_bounds = array<i64: 1, 256>}, {transform_indices = @transform_7, window_bounds = array<i64: 256, 256>}]} {
    %c0 = arith.constant 0 : index
    %c0_0 = arith.constant 0 : index
    %0 = vector.load %arg1[%c0, %c0_0] : memref<256x32xf32, #tpu.memory_space<vmem>>, vector<256x32xf32>
    %c0_1 = arith.constant 0 : index
    %c0_2 = arith.constant 0 : index
    %1 = vector.load %arg2[%c0_1, %c0_2] : memref<32x64xf32, #tpu.memory_space<vmem>>, vector<32x64xf32>
    %cst = arith.constant dense<0.000000e+00> : vector<256x64xf32>
    %2 = tpu.matmul %0, %1, %cst {dimension_numbers = #tpu.dot_dimension_numbers<[1], [0], [0], [1], [0, 0, 1, 1], [], []>} : vector<256x32xf32>, vector<32x64xf32>, vector<256x64xf32> -> vector<256x64xf32>
    %c0_3 = arith.constant 0 : index
    %c0_4 = arith.constant 0 : index
    %3 = vector.load %arg3[%c0_3, %c0_4] : memref<1x64xf32, #tpu.memory_space<vmem>>, vector<1x64xf32>
    %4 = vector.broadcast %3 : vector<1x64xf32> to vector<256x64xf32>
    %5 = arith.addf %2, %4 : vector<256x64xf32>
    %6 = arith.negf %5 : vector<256x64xf32>
    %7 = math.exp %6 : vector<256x64xf32>
    %cst_5 = arith.constant 1.000000e+00 : f32
    %8 = vector.broadcast %cst_5 : f32 to vector<256x64xf32>
    %9 = arith.addf %8, %7 : vector<256x64xf32>
    %10 = arith.divf %8, %9 : vector<256x64xf32>
    %11 = arith.mulf %5, %10 : vector<256x64xf32>
    %c0_6 = arith.constant 0 : index
    %c0_7 = arith.constant 0 : index
    %12 = vector.load %arg4[%c0_6, %c0_7] : memref<64x128xf32, #tpu.memory_space<vmem>>, vector<64x128xf32>
    %cst_8 = arith.constant dense<0.000000e+00> : vector<256x128xf32>
    %13 = tpu.matmul %11, %12, %cst_8 {dimension_numbers = #tpu.dot_dimension_numbers<[1], [0], [0], [1], [0, 0, 1, 1], [], []>} : vector<256x64xf32>, vector<64x128xf32>, vector<256x128xf32> -> vector<256x128xf32>
    %c0_9 = arith.constant 0 : index
    %c0_10 = arith.constant 0 : index
    %14 = vector.load %arg5[%c0_9, %c0_10] : memref<1x128xf32, #tpu.memory_space<vmem>>, vector<1x128xf32>
    %15 = vector.broadcast %14 : vector<1x128xf32> to vector<256x128xf32>
    %16 = arith.addf %13, %15 : vector<256x128xf32>
    %17 = arith.negf %16 : vector<256x128xf32>
    %18 = math.exp %17 : vector<256x128xf32>
    %cst_11 = arith.constant 1.000000e+00 : f32
    %19 = vector.broadcast %cst_11 : f32 to vector<256x128xf32>
    %20 = arith.addf %19, %18 : vector<256x128xf32>
    %21 = arith.divf %19, %20 : vector<256x128xf32>
    %22 = arith.mulf %16, %21 : vector<256x128xf32>
    %c0_12 = arith.constant 0 : index
    %c0_13 = arith.constant 0 : index
    %23 = vector.load %arg6[%c0_12, %c0_13] : memref<128x256xf32, #tpu.memory_space<vmem>>, vector<128x256xf32>
    %cst_14 = arith.constant dense<0.000000e+00> : vector<256x256xf32>
    %24 = tpu.matmul %22, %23, %cst_14 {dimension_numbers = #tpu.dot_dimension_numbers<[1], [0], [0], [1], [0, 0, 1, 1], [], []>} : vector<256x128xf32>, vector<128x256xf32>, vector<256x256xf32> -> vector<256x256xf32>
    %c0_15 = arith.constant 0 : index
    %c0_16 = arith.constant 0 : index
    %25 = vector.load %arg7[%c0_15, %c0_16] : memref<1x256xf32, #tpu.memory_space<vmem>>, vector<1x256xf32>
    %26 = vector.broadcast %25 : vector<1x256xf32> to vector<256x256xf32>
    %27 = arith.addf %24, %26 : vector<256x256xf32>
    %28 = arith.negf %27 : vector<256x256xf32>
    %29 = math.exp %28 : vector<256x256xf32>
    %cst_17 = arith.constant 1.000000e+00 : f32
    %30 = vector.broadcast %cst_17 : f32 to vector<256x256xf32>
    %31 = arith.addf %30, %29 : vector<256x256xf32>
    %32 = arith.divf %30, %31 : vector<256x256xf32>
    %33 = arith.mulf %27, %32 : vector<256x256xf32>
    %c0_18 = arith.constant 0 : index
    %c0_19 = arith.constant 0 : index
    %34 = vector.load %arg8[%c0_18, %c0_19] : memref<256x256xf32, #tpu.memory_space<vmem>>, vector<256x256xf32>
    tpu.vector_store %arg8[%c0_18, %c0_19], %33 {strides = array<i32>} : memref<256x256xf32, #tpu.memory_space<vmem>>, vector<256x256xf32>,
    return
  }
  func.func @transform_0(%arg0: i32) -> (i32, i32) {
    %c0_i32 = arith.constant 0 : i32
    %c0_i32_0 = arith.constant 0 : i32
    return %arg0, %c0_i32 : i32, i32
  }
  func.func @transform_1(%arg0: i32) -> (i32, i32) {
    %c0_i32 = arith.constant 0 : i32
    %c0_i32_0 = arith.constant 0 : i32
    %c0_i32_1 = arith.constant 0 : i32
    return %c0_i32, %c0_i32_0 : i32, i32
  }
  func.func @transform_2(%arg0: i32) -> (i32, i32) {
    %c0_i32 = arith.constant 0 : i32
    %c0_i32_0 = arith.constant 0 : i32
    %c0_i32_1 = arith.constant 0 : i32
    return %c0_i32, %c0_i32_0 : i32, i32
  }
  func.func @transform_3(%arg0: i32) -> (i32, i32) {
    %c0_i32 = arith.constant 0 : i32
    %c0_i32_0 = arith.constant 0 : i32
    %c0_i32_1 = arith.constant 0 : i32
    return %c0_i32, %c0_i32_0 : i32, i32
  }
  func.func @transform_4(%arg0: i32) -> (i32, i32) {
    %c0_i32 = arith.constant 0 : i32
    %c0_i32_0 = arith.constant 0 : i32
    %c0_i32_1 = arith.constant 0 : i32
    return %c0_i32, %c0_i32_0 : i32, i32
  }
  func.func @transform_5(%arg0: i32) -> (i32, i32) {
    %c0_i32 = arith.constant 0 : i32
    %c0_i32_0 = arith.constant 0 : i32
    %c0_i32_1 = arith.constant 0 : i32
    return %c0_i32, %c0_i32_0 : i32, i32
  }
  func.func @transform_6(%arg0: i32) -> (i32, i32) {
    %c0_i32 = arith.constant 0 : i32
    %c0_i32_0 = arith.constant 0 : i32
    %c0_i32_1 = arith.constant 0 : i32
    return %c0_i32, %c0_i32_0 : i32, i32
  }
  func.func @transform_7(%arg0: i32) -> (i32, i32) {
    %c0_i32 = arith.constant 0 : i32
    %c0_i32_0 = arith.constant 0 : i32
    return %arg0, %c0_i32 : i32, i32
  }
}

</mosaic_0001>

<bundles_post_ra>
// kernel: decoder_forward.1
= control target key start
LH: loop header
LB: loop body
LE: loop exit
PB: predicated region body
PF: predicated region fallthrough
CT: control target
= control target key end

     0   :  { %12 = vsyncpa [#allocation3], 0  ;;  %s7162_s0 = inlined_call_operand.vmem [shape: f32[256,32], index: 0, kind: input, shape index: {}]   ;;  %s7163_s1 = inlined_call_operand.hbm [shape: f32[32,64], index: 1, kind: input, shape index: {}]   ;;  %s7164_s2 = inlined_call_operand.vmem [shape: f32[1,64], index: 2, kind: input, shape index: {}]   ;;  %s7165_s3 = inlined_call_operand.vmem [shape: f32[64,128], index: 3, kind: input, shape index: {}]   ;;  %s7166_s4 = inlined_call_operand.vmem [shape: f32[1,128], index: 4, kind: input, shape index: {}]   ;;  %s7167_s5 = inlined_call_operand.vmem [shape: f32[128,256], index: 5, kind: input, shape index: {}]   ;;  %s7168_s6 = inlined_call_operand.vmem [shape: f32[1,256], index: 6, kind: input, shape index: {}]   ;;  %s7169_s7 = inlined_call_operand.hbm [shape: f32[256,256], index: 7, kind: output, shape index: {}]  }
   0x1   :  { %13 = vsyncpa [#allocation4], 0  ;;  %s20_s26 = sshll.u32 %s7163_s1, 4  ;;  %s4205_s27 = smov [#allocation2]   ;;  %s21_s26 = int_to_ptr.hbm [resolvable:$true] %s20_s26 }
   0x2   :  { %s22_s28 = sshll.u32 %s4205_s27, 4  ;;  %s4206_s29 = smov 128   ;;  %s23_s28 = int_to_ptr.vmem [resolvable:$true] %s22_s28 }
   0x3   :  { %s4207_s30 = smov 8  }
   0x4   :  { %28 = dma.hbm_to_vmem [thread:$0]  %s21_s26, 512, %s23_s28, [#allocation3], %s4206_s29, %s4206_s29, %s4207_s30  }
   0x5   :  { %4201 = dma.done.wait [#allocation3], 512  }
   0x6   :  { %4202 = vsyncadd [#allocation3], 4294966784  ;;  %v78_v0 = vld [vmem:[#allocation2 + $0x18] sm:$0xff]  ;;  %v77_v1 = vld [vmem:[#allocation2 + $0x10] sm:$0xff]  ;;  %vm83_vm0 = vcmask 261120   ;;  %vm945_vm5 = vcmask 523264  }
   0x7   :  { %192 = vmatpush.msra.mxu0 %v78_v0  ;;  %v76_v2 = vld [vmem:[#allocation2 + $0x8] sm:$0xff]  ;;  %v75_v3 = vld [vmem:[#allocation2] sm:$0xff]  ;;  %v45_v6 = vld [vmem:[%s7162_s0 + $0x10] sm:$0xff]  ;;  %s3409_s12 = sshll.u32 %s7169_s7, 4  ;;  %s4210_s13 = smov 16   ;;  %s3410_s12 = int_to_ptr.hbm [resolvable:$true] %s3409_s12 }
   0x8   :  { %v43_v4 = vld [vmem:[%s7162_s0] sm:$0xff]  ;;  %v44_v5 = vld [vmem:[%s7162_s0 + $0x8] sm:$0xff]  ;;  %v46_v7 = vld [vmem:[%s7162_s0 + $0x18] sm:$0xff] }
   0x9   :  { %193 = vmatpush.msra.mxu0 %v77_v1  ;;  %v47_v8 = vld [vmem:[%s7162_s0 + $0x20] sm:$0xff]  ;;  %v48_v9 = vld [vmem:[%s7162_s0 + $0x28] sm:$0xff]  ;;  %v49_v10 = vld [vmem:[%s7162_s0 + $0x30] sm:$0xff] }
   0xa   :  { %v50_v11 = vld [vmem:[%s7162_s0 + $0x38] sm:$0xff]  ;;  %v51_v12 = vld [vmem:[%s7162_s0 + $0x40] sm:$0xff]  ;;  %v52_v13 = vld [vmem:[%s7162_s0 + $0x48] sm:$0xff] }
   0xb   :  { %194 = vmatpush.msra.mxu0 %v76_v2  ;;  %v53_v14 = vld [vmem:[%s7162_s0 + $0x50] sm:$0xff]  ;;  %v54_v15 = vld [vmem:[%s7162_s0 + $0x58] sm:$0xff]  ;;  %v55_v16 = vld [vmem:[%s7162_s0 + $0x60] sm:$0xff] }
   0xc   :  { %v56_v17 = vld [vmem:[%s7162_s0 + $0x68] sm:$0xff]  ;;  %v57_v18 = vld [vmem:[%s7162_s0 + $0x70] sm:$0xff]  ;;  %v940_v19 = vld [vmem:[%s7165_s3 + $0x38] sm:$0xff] }
   0xd   :  { %195 = vmatpush.msra.mxu0 %v75_v3  ;;  %1050 = vmatpush.msra.mxu1 %v940_v19  ;;  %v939_v20 = vld [vmem:[%s7165_s3 + $0x30] sm:$0xff]  ;;  %v938_v21 = vld [vmem:[%s7165_s3 + $0x28] sm:$0xff]  ;;  %v58_v22 = vld [vmem:[%s7162_s0 + $0x78] sm:$0xff] }
   0xe   :  { %3422 = vmatmul.msk.f32.vlgmr.msra.gmra.mxu0 %vm83_vm0, %v43_v4  ;;  %v937_v23 = vld [vmem:[%s7165_s3 + $0x20] sm:$0xff]  ;;  %v936_v24 = vld [vmem:[%s7165_s3 + $0x18] sm:$0xff]  ;;  %v935_v25 = vld [vmem:[%s7165_s3 + $0x10] sm:$0xff] }
   0xf   :  { %1051 = vmatpush.msra.mxu1 %v939_v20  ;;  %v4339_v26 = vld [vmem:[%s7164_s2] ss:$0 sm:$0xff]  ;;  %v934_v27 = vld [vmem:[%s7165_s3 + $0x8] sm:$0xff]  ;;  %v61_v40 = vld [vmem:[%s7162_s0 + $0x90] sm:$0xff] }
  0x10   :  { %v59_v29 = vld [vmem:[%s7162_s0 + $0x80] sm:$0xff]  ;;  %v60_v34 = vld [vmem:[%s7162_s0 + $0x88] sm:$0xff]  ;;  %v62_v50 = vld [vmem:[%s7162_s0 + $0x98] sm:$0xff] }
  0x11   :  { %1052 = vmatpush.msra.mxu1 %v938_v21  ;;  %v933_v30 = vld [vmem:[%s7165_s3] sm:$0xff]  ;;  %v64_v20 = vld [vmem:[%s7162_s0 + $0xa8] sm:$0xff]  ;;  %s4209_s3 = smov 256  }
  0x12   :  { %v63_v3 = vld [vmem:[%s7162_s0 + $0xa0] sm:$0xff] }
  0x13   :  { %1053 = vmatpush.msra.mxu1 %v937_v23 }
  0x15   :  { %1054 = vmatpush.msra.mxu1 %v936_v24 }
  0x16   :  { %3423 = vmatmul.msk.f32.gmra.mxu0 %vm83_vm0, %v44_v5 }
  0x17   :  { %1055 = vmatpush.msra.mxu1 %v935_v25 }
  0x19   :  { %1056 = vmatpush.msra.mxu1 %v934_v27 }
  0x1b   :  { %1057 = vmatpush.msra.mxu1 %v933_v30 }
  0x1e   :  { %3424 = vmatmul.msk.f32.gmra.mxu0 %vm83_vm0, %v45_v6 }
  0x26   :  { %3425 = vmatmul.msk.f32.gmra.mxu0 %vm83_vm0, %v46_v7 }
  0x2e   :  { %3426 = vmatmul.msk.f32.gmra.mxu0 %vm83_vm0, %v47_v8 }
  0x36   :  { %3427 = vmatmul.msk.f32.gmra.mxu0 %vm83_vm0, %v48_v9 }
  0x3e   :  { %3428 = vmatmul.msk.f32.gmra.mxu0 %vm83_vm0, %v49_v10 }
  0x46   :  { %3429 = vmatmul.msk.f32.gmra.mxu0 %vm83_vm0, %v50_v11 }
  0x4e   :  { %3430 = vmatmul.msk.f32.gmra.mxu0 %vm83_vm0, %v51_v12 }
  0x56   :  { %3431 = vmatmul.msk.f32.gmra.mxu0 %vm83_vm0, %v52_v13 }
  0x5e   :  { %3432 = vmatmul.msk.f32.gmra.mxu0 %vm83_vm0, %v53_v14 }
  0x66   :  { %3433 = vmatmul.msk.f32.gmra.mxu0 %vm83_vm0, %v54_v15 }
  0x6e   :  { %3434 = vmatmul.msk.f32.gmra.mxu0 %vm83_vm0, %v55_v16 }
  0x76   :  { %3435 = vmatmul.msk.f32.gmra.mxu0 %vm83_vm0, %v56_v17 }
  0x7e   :  { %3436 = vmatmul.msk.f32.gmra.mxu0 %vm83_vm0, %v57_v18 }
  0x86   :  { %3437 = vmatmul.msk.f32.gmra.mxu0 %vm83_vm0, %v58_v22 }
  0x8b   :  { %v197_v28 = vpop.f32.mrf.mxu0 }
  0x8c   :  { %v198_v31 = vadd.f32 %v4339_v26, %v197_v28 }
  0x8e   :  { %v3454_v32 = vmul.f32 -1.442695, %v198_v31  ;;  %3438 = vmatmul.msk.f32.gmra.mxu0 %vm83_vm0, %v59_v29 }
  0x90   :  { %3638 = vpow2.f32 %v3454_v32 }
  0x93   :  { %v200_v33 = vpop.f32.mrf.mxu0 }
  0x94   :  { %v4356_v35 = vadd.f32 %v4339_v26, %v200_v33 }
  0x96   :  { %v3639_v36 = vpop.eup %3638  ;;  %v3455_v37 = vmul.f32 -1.442695, %v4356_v35  ;;  %3439 = vmatmul.msk.f32.gmra.mxu0 %vm83_vm0, %v60_v34 }
  0x97   :  { %v389_v38 = vadd.f32 1.0, %v3639_v36 }
  0x98   :  { %3640 = vpow2.f32 %v3455_v37 }
  0x99   :  { %3642 = vrcp.f32 %v389_v38  ;;  %v432_v48 = vand.u32 2147483648, %v389_v38  ;;  %v430_v52 = vand.u32 2147483647, %v389_v38  ;;  %vm426_vm2 = vweird.f32 %v389_v38 }
  0x9b   :  { %v203_v39 = vpop.f32.mrf.mxu0  ;;  %v433_v58 = vor.u32 1.1754944e-38, %v432_v48  ;;  %vm431_vm4 = vcmp.eq.f32.partialorder %v430_v52, 8.507059e+37 }
  0x9c   :  { %v4364_v41 = vadd.f32 %v4339_v26, %v203_v39 }
  0x9e   :  { %v3641_v42 = vpop.eup %3640  ;;  %v3456_v43 = vmul.f32 -1.442695, %v4364_v41  ;;  %3440 = vmatmul.msk.f32.gmra.mxu0 %vm83_vm0, %v61_v40 }
  0x9f   :  { %v3643_v44 = vpop.eup %3642  ;;  %v390_v45 = vadd.f32 1.0, %v3641_v42 }
  0xa0   :  { %v422_v46 = vmul.f32 %v3643_v44, %v389_v38  ;;  %3644 = vpow2.f32 %v3456_v43  ;;  %vm427_vm1 = vweird.f32 %v3643_v44  ;;  %v65_v38 = vld [vmem:[%s7162_s0 + $0xb0] sm:$0xff] }
  0xa1   :  { %3646 = vrcp.f32 %v390_v45  ;;  %vm428_vm3 = vmor %vm426_vm2, %vm427_vm1  ;;  %v447_v1 = vand.u32 2147483648, %v390_v45  ;;  %v445_v5 = vand.u32 2147483647, %v390_v45  ;;  %vm441_vm7 = vweird.f32 %v390_v45 }
  0xa2   :  { %v423_v47 = vsub.f32 1.0, %v422_v46 }
  0xa3   :  { %v206_v49 = vpop.f32.mrf.mxu0  ;;  %v448_v11 = vor.u32 1.1754944e-38, %v447_v1  ;;  %vm446_vm9 = vcmp.eq.f32.partialorder %v445_v5, 8.507059e+37 }
  0xa4   :  { %v424_v51 = vmul.f32 %v3643_v44, %v423_v47  ;;  %v4372_v53 = vadd.f32 %v4339_v26, %v206_v49 }
  0xa6   :  { %v3645_v54 = vpop.eup %3644  ;;  %v425_v55 = vadd.f32 %v3643_v44, %v424_v51  ;;  %v3457_v56 = vmul.f32 -1.442695, %v4372_v53  ;;  %3441 = vmatmul.msk.f32.gmra.mxu0 %vm83_vm0, %v62_v50 }
  0xa7   :  { %v3647_v57 = vpop.eup %3646  ;;  %v391_v59 = vadd.f32 1.0, %v3645_v54 }
  0xa8   :  { %v429_v60 = vsel %vm428_vm3, %v3643_v44, %v425_v55  ;;  %v437_v61 = vmul.f32 %v3647_v57, %v390_v45  ;;  %3648 = vpow2.f32 %v3457_v56  ;;  %vm442_vm6 = vweird.f32 %v3647_v57  ;;  %v66_v56 = vld [vmem:[%s7162_s0 + $0xb8] sm:$0xff] }
  0xa9   :  { %v434_v62 = vsel %vm431_vm4, %v433_v58, %v429_v60  ;;  %3650 = vrcp.f32 %v391_v59  ;;  %vm443_vm8 = vmor %vm441_vm7, %vm442_vm6  ;;  %v462_v18 = vand.u32 2147483648, %v391_v59  ;;  %v460_v22 = vand.u32 2147483647, %v391_v59 }
  0xaa   :  { %v901_v63 = vmul.f32 %v434_v62, %v198_v31  ;;  %v438_v0 = vsub.f32 1.0, %v437_v61  ;;  %vm456_vm11 = vweird.f32 %v391_v59 }
  0xab   :  { %v209_v2 = vpop.f32.mrf.mxu0  ;;  %v463_v29 = vor.u32 1.1754944e-38, %v462_v18  ;;  %vm461_vm13 = vcmp.eq.f32.partialorder %v460_v22, 8.507059e+37 }
  0xac   :  { %v439_v4 = vmul.f32 %v3647_v57, %v438_v0  ;;  %v4380_v6 = vadd.f32 %v4339_v26, %v209_v2  ;;  %3486 = vmatmul.msk.f32.vlgmr.msra.gmra.mxu1 %vm945_vm5, %v901_v63 }
  0xae   :  { %v3649_v7 = vpop.eup %3648  ;;  %v440_v8 = vadd.f32 %v3647_v57, %v439_v4  ;;  %v3458_v9 = vmul.f32 -1.442695, %v4380_v6  ;;  %3442 = vmatmul.msk.f32.gmra.mxu0 %vm83_vm0, %v63_v3 }
  0xaf   :  { %v3651_v10 = vpop.eup %3650  ;;  %v392_v12 = vadd.f32 1.0, %v3649_v7 }
  0xb0   :  { %v444_v13 = vsel %vm443_vm8, %v3647_v57, %v440_v8  ;;  %v452_v14 = vmul.f32 %v3651_v10, %v391_v59  ;;  %3652 = vpow2.f32 %v3458_v9  ;;  %vm457_vm10 = vweird.f32 %v3651_v10  ;;  %v67_v9 = vld [vmem:[%s7162_s0 + $0xc0] sm:$0xff] }
  0xb1   :  { %v449_v15 = vsel %vm446_vm9, %v448_v11, %v444_v13  ;;  %3654 = vrcp.f32 %v392_v12  ;;  %vm458_vm12 = vmor %vm456_vm11, %vm457_vm10  ;;  %v477_v36 = vand.u32 2147483648, %v392_v12  ;;  %v475_v40 = vand.u32 2147483647, %v392_v12 }
  0xb2   :  { %v902_v16 = vmul.f32 %v449_v15, %v4356_v35  ;;  %v453_v17 = vsub.f32 1.0, %v452_v14  ;;  %vm471_vm15 = vweird.f32 %v392_v12 }
  0xb3   :  { %v212_v19 = vpop.f32.mrf.mxu0  ;;  %v478_v46 = vor.u32 1.1754944e-38, %v477_v36  ;;  %vm476_vm2 = vcmp.eq.f32.partialorder %v475_v40, 8.507059e+37 }
  0xb4   :  { %v454_v21 = vmul.f32 %v3651_v10, %v453_v17  ;;  %v4390_v23 = vadd.f32 %v4339_v26, %v212_v19  ;;  %3487 = vmatmul.msk.f32.gmra.mxu1 %vm945_vm5, %v902_v16 }
  0xb6   :  { %v3653_v24 = vpop.eup %3652  ;;  %v455_v25 = vadd.f32 %v3651_v10, %v454_v21  ;;  %v3459_v27 = vmul.f32 -1.442695, %v4390_v23  ;;  %3443 = vmatmul.msk.f32.gmra.mxu0 %vm83_vm0, %v64_v20 }
  0xb7   :  { %v3655_v28 = vpop.eup %3654  ;;  %v393_v30 = vadd.f32 1.0, %v3653_v24 }
  0xb8   :  { %v459_v31 = vsel %vm458_vm12, %v3651_v10, %v455_v25  ;;  %v467_v32 = vmul.f32 %v3655_v28, %v392_v12  ;;  %3656 = vpow2.f32 %v3459_v27  ;;  %vm472_vm14 = vweird.f32 %v3655_v28  ;;  %v68_v27 = vld [vmem:[%s7162_s0 + $0xc8] sm:$0xff] }
  0xb9   :  { %v464_v33 = vsel %vm461_vm13, %v463_v29, %v459_v31  ;;  %3658 = vrcp.f32 %v393_v30  ;;  %vm473_vm1 = vmor %vm471_vm15, %vm472_vm14  ;;  %v492_v54 = vand.u32 2147483648, %v393_v30  ;;  %v490_v58 = vand.u32 2147483647, %v393_v30 }
  0xba   :  { %v903_v34 = vmul.f32 %v464_v33, %v4364_v41  ;;  %v468_v35 = vsub.f32 1.0, %v467_v32  ;;  %vm486_vm4 = vweird.f32 %v393_v30 }
  0xbb   :  { %v215_v37 = vpop.f32.mrf.mxu0  ;;  %v493_v63 = vor.u32 1.1754944e-38, %v492_v54  ;;  %vm491_vm7 = vcmp.eq.f32.partialorder %v490_v58, 8.507059e+37 }
  0xbc   :  { %v469_v39 = vmul.f32 %v3655_v28, %v468_v35  ;;  %v4400_v42 = vadd.f32 %v4339_v26, %v215_v37  ;;  %3488 = vmatmul.msk.f32.gmra.mxu1 %vm945_vm5, %v903_v34 }
  0xbe   :  { %v3657_v43 = vpop.eup %3656  ;;  %v470_v44 = vadd.f32 %v3655_v28, %v469_v39  ;;  %v3460_v41 = vmul.f32 -1.442695, %v4400_v42  ;;  %3444 = vmatmul.msk.f32.gmra.mxu0 %vm83_vm0, %v65_v38 }
  0xbf   :  { %v3659_v45 = vpop.eup %3658  ;;  %v394_v47 = vadd.f32 1.0, %v3657_v43 }
  0xc0   :  { %v474_v48 = vsel %vm473_vm1, %v3655_v28, %v470_v44  ;;  %v482_v49 = vmul.f32 %v3659_v45, %v393_v30  ;;  %3660 = vpow2.f32 %v3460_v41  ;;  %vm487_vm3 = vweird.f32 %v3659_v45  ;;  %v69_v41 = vld [vmem:[%s7162_s0 + $0xd0] sm:$0xff] }
  0xc1   :  { %v479_v50 = vsel %vm476_vm2, %v478_v46, %v474_v48  ;;  %3662 = vrcp.f32 %v394_v47  ;;  %vm488_vm6 = vmor %vm486_vm4, %vm487_vm3  ;;  %v507_v7 = vand.u32 2147483648, %v394_v47  ;;  %v505_v11 = vand.u32 2147483647, %v394_v47 }
  0xc2   :  { %v904_v51 = vmul.f32 %v479_v50, %v4372_v53  ;;  %v483_v52 = vsub.f32 1.0, %v482_v49  ;;  %vm501_vm9 = vweird.f32 %v394_v47 }
  0xc3   :  { %v218_v55 = vpop.f32.mrf.mxu0  ;;  %v508_v16 = vor.u32 1.1754944e-38, %v507_v7  ;;  %vm506_vm11 = vcmp.eq.f32.partialorder %v505_v11, 8.507059e+37 }
  0xc4   :  { %v484_v57 = vmul.f32 %v3659_v45, %v483_v52  ;;  %v4410_v59 = vadd.f32 %v4339_v26, %v218_v55  ;;  %3489 = vmatmul.msk.f32.gmra.mxu1 %vm945_vm5, %v904_v51 }
  0xc6   :  { %v3661_v60 = vpop.eup %3660  ;;  %v485_v61 = vadd.f32 %v3659_v45, %v484_v57  ;;  %v3461_v53 = vmul.f32 -1.442695, %v4410_v59  ;;  %3445 = vmatmul.msk.f32.gmra.mxu0 %vm83_vm0, %v66_v56 }
  0xc7   :  { %v3663_v62 = vpop.eup %3662  ;;  %v395_v0 = vadd.f32 1.0, %v3661_v60 }
  0xc8   :  { %v489_v1 = vsel %vm488_vm6, %v3659_v45, %v485_v61  ;;  %v497_v2 = vmul.f32 %v3663_v62, %v394_v47  ;;  %3664 = vpow2.f32 %v3461_v53  ;;  %vm502_vm8 = vweird.f32 %v3663_v62  ;;  %v70_v53 = vld [vmem:[%s7162_s0 + $0xd8] sm:$0xff] }
  0xc9   :  { %v494_v3 = vsel %vm491_vm7, %v493_v63, %v489_v1  ;;  %3666 = vrcp.f32 %v395_v0  ;;  %vm503_vm10 = vmor %vm501_vm9, %vm502_vm8  ;;  %v522_v24 = vand.u32 2147483648, %v395_v0  ;;  %v520_v29 = vand.u32 2147483647, %v395_v0 }
  0xca   :  { %v905_v4 = vmul.f32 %v494_v3, %v4380_v6  ;;  %v498_v5 = vsub.f32 1.0, %v497_v2  ;;  %vm516_vm13 = vweird.f32 %v395_v0 }
  0xcb   :  { %v221_v8 = vpop.f32.mrf.mxu0  ;;  %v523_v34 = vor.u32 1.1754944e-38, %v522_v24  ;;  %vm521_vm15 = vcmp.eq.f32.partialorder %v520_v29, 8.507059e+37 }
  0xcc   :  { %v499_v10 = vmul.f32 %v3663_v62, %v498_v5  ;;  %v4420_v12 = vadd.f32 %v4339_v26, %v221_v8  ;;  %3490 = vmatmul.msk.f32.gmra.mxu1 %vm945_vm5, %v905_v4 }
  0xce   :  { %v3665_v13 = vpop.eup %3664  ;;  %v500_v14 = vadd.f32 %v3663_v62, %v499_v10  ;;  %v3462_v6 = vmul.f32 -1.442695, %v4420_v12  ;;  %3446 = vmatmul.msk.f32.gmra.mxu0 %vm83_vm0, %v67_v9 }
  0xcf   :  { %v3667_v15 = vpop.eup %3666  ;;  %v396_v17 = vadd.f32 1.0, %v3665_v13 }
  0xd0   :  { %v504_v18 = vsel %vm503_vm10, %v3663_v62, %v500_v14  ;;  %v512_v19 = vmul.f32 %v3667_v15, %v395_v0  ;;  %3668 = vpow2.f32 %v3462_v6  ;;  %vm517_vm12 = vweird.f32 %v3667_v15  ;;  %v71_v6 = vld [vmem:[%s7162_s0 + $0xe0] sm:$0xff] }
  0xd1   :  { %v509_v20 = vsel %vm506_vm11, %v508_v16, %v504_v18  ;;  %3670 = vrcp.f32 %v396_v17  ;;  %vm518_vm14 = vmor %vm516_vm13, %vm517_vm12  ;;  %v537_v43 = vand.u32 2147483648, %v396_v17  ;;  %v535_v46 = vand.u32 2147483647, %v396_v17 }
  0xd2   :  { %v906_v21 = vmul.f32 %v509_v20, %v4390_v23  ;;  %v513_v22 = vsub.f32 1.0, %v512_v19  ;;  %vm531_vm2 = vweird.f32 %v396_v17 }
  0xd3   :  { %v224_v25 = vpop.f32.mrf.mxu0  ;;  %v538_v51 = vor.u32 1.1754944e-38, %v537_v43  ;;  %vm536_vm4 = vcmp.eq.f32.partialorder %v535_v46, 8.507059e+37 }
  0xd4   :  { %v514_v28 = vmul.f32 %v3667_v15, %v513_v22  ;;  %v4430_v30 = vadd.f32 %v4339_v26, %v224_v25  ;;  %3491 = vmatmul.msk.f32.gmra.mxu1 %vm945_vm5, %v906_v21 }
  0xd6   :  { %v3669_v31 = vpop.eup %3668  ;;  %v515_v32 = vadd.f32 %v3667_v15, %v514_v28  ;;  %v3463_v23 = vmul.f32 -1.442695, %v4430_v30  ;;  %3447 = vmatmul.msk.f32.gmra.mxu0 %vm83_vm0, %v68_v27 }
  0xd7   :  { %v3671_v33 = vpop.eup %3670  ;;  %v397_v35 = vadd.f32 1.0, %v3669_v31 }
  0xd8   :  { %v519_v36 = vsel %vm518_vm14, %v3667_v15, %v515_v32  ;;  %v527_v37 = vmul.f32 %v3671_v33, %v396_v17  ;;  %3672 = vpow2.f32 %v3463_v23  ;;  %vm532_vm1 = vweird.f32 %v3671_v33  ;;  %v72_v23 = vld [vmem:[%s7162_s0 + $0xe8] sm:$0xff] }
  0xd9   :  { %v524_v38 = vsel %vm521_vm15, %v523_v34, %v519_v36  ;;  %3674 = vrcp.f32 %v397_v35  ;;  %vm533_vm3 = vmor %vm531_vm2, %vm532_vm1  ;;  %v552_v60 = vand.u32 2147483648, %v397_v35  ;;  %v550_v63 = vand.u32 2147483647, %v397_v35 }
  0xda   :  { %v907_v39 = vmul.f32 %v524_v38, %v4400_v42  ;;  %v528_v40 = vsub.f32 1.0, %v527_v37  ;;  %vm546_vm7 = vweird.f32 %v397_v35 }
  0xdb   :  { %v227_v44 = vpop.f32.mrf.mxu0  ;;  %v553_v4 = vor.u32 1.1754944e-38, %v552_v60  ;;  %vm551_vm9 = vcmp.eq.f32.partialorder %v550_v63, 8.507059e+37 }
  0xdc   :  { %v529_v45 = vmul.f32 %v3671_v33, %v528_v40  ;;  %v4440_v47 = vadd.f32 %v4339_v26, %v227_v44  ;;  %3492 = vmatmul.msk.f32.gmra.mxu1 %vm945_vm5, %v907_v39 }
  0xde   :  { %v3673_v48 = vpop.eup %3672  ;;  %v530_v49 = vadd.f32 %v3671_v33, %v529_v45  ;;  %v3464_v42 = vmul.f32 -1.442695, %v4440_v47  ;;  %3448 = vmatmul.msk.f32.gmra.mxu0 %vm83_vm0, %v69_v41 }
  0xdf   :  { %v3675_v50 = vpop.eup %3674  ;;  %v398_v52 = vadd.f32 1.0, %v3673_v48 }
  0xe0   :  { %v534_v54 = vsel %vm533_vm3, %v3671_v33, %v530_v49  ;;  %v542_v55 = vmul.f32 %v3675_v50, %v397_v35  ;;  %3676 = vpow2.f32 %v3464_v42  ;;  %vm547_vm6 = vweird.f32 %v3675_v50  ;;  %v73_v42 = vld [vmem:[%s7162_s0 + $0xf0] sm:$0xff] }
  0xe1   :  { %v539_v56 = vsel %vm536_vm4, %v538_v51, %v534_v54  ;;  %3678 = vrcp.f32 %v398_v52  ;;  %vm548_vm8 = vmor %vm546_vm7, %vm547_vm6  ;;  %v567_v13 = vand.u32 2147483648, %v398_v52  ;;  %v565_v16 = vand.u32 2147483647, %v398_v52 }
  0xe2   :  { %v908_v57 = vmul.f32 %v539_v56, %v4410_v59  ;;  %v543_v58 = vsub.f32 1.0, %v542_v55  ;;  %vm561_vm11 = vweird.f32 %v398_v52 }
  0xe3   :  { %v230_v61 = vpop.f32.mrf.mxu0  ;;  %v568_v21 = vor.u32 1.1754944e-38, %v567_v13  ;;  %vm566_vm13 = vcmp.eq.f32.partialorder %v565_v16, 8.507059e+37 }
  0xe4   :  { %v544_v62 = vmul.f32 %v3675_v50, %v543_v58  ;;  %v4450_v0 = vadd.f32 %v4339_v26, %v230_v61  ;;  %3493 = vmatmul.msk.f32.gmra.mxu1 %vm945_vm5, %v908_v57 }
  0xe6   :  { %v3677_v1 = vpop.eup %3676  ;;  %v545_v2 = vadd.f32 %v3675_v50, %v544_v62  ;;  %v3465_v59 = vmul.f32 -1.442695, %v4450_v0  ;;  %3449 = vmatmul.msk.f32.gmra.mxu0 %vm83_vm0, %v70_v53 }
  0xe7   :  { %v3679_v3 = vpop.eup %3678  ;;  %v399_v5 = vadd.f32 1.0, %v3677_v1 }
  0xe8   :  { %v549_v7 = vsel %vm548_vm8, %v3675_v50, %v545_v2  ;;  %v557_v8 = vmul.f32 %v3679_v3, %v398_v52  ;;  %3680 = vpow2.f32 %v3465_v59  ;;  %vm562_vm10 = vweird.f32 %v3679_v3  ;;  %v74_v59 = vld [vmem:[%s7162_s0 + $0xf8] sm:$0xff] }
  0xe9   :  { %v554_v9 = vsel %vm551_vm9, %v553_v4, %v549_v7  ;;  %3682 = vrcp.f32 %v399_v5  ;;  %vm563_vm12 = vmor %vm561_vm11, %vm562_vm10  ;;  %v582_v31 = vand.u32 2147483648, %v399_v5  ;;  %v580_v34 = vand.u32 2147483647, %v399_v5 }
  0xea   :  { %v909_v10 = vmul.f32 %v554_v9, %v4420_v12  ;;  %v558_v11 = vsub.f32 1.0, %v557_v8  ;;  %vm576_vm15 = vweird.f32 %v399_v5 }
  0xeb   :  { %v233_v14 = vpop.f32.mrf.mxu0  ;;  %v583_v39 = vor.u32 1.1754944e-38, %v582_v31  ;;  %vm581_vm2 = vcmp.eq.f32.partialorder %v580_v34, 8.507059e+37 }
  0xec   :  { %v559_v15 = vmul.f32 %v3679_v3, %v558_v11  ;;  %v4460_v17 = vadd.f32 %v4339_v26, %v233_v14  ;;  %3494 = vmatmul.msk.f32.gmra.mxu1 %vm945_vm5, %v909_v10 }
  0xee   :  { %v3681_v18 = vpop.eup %3680  ;;  %v560_v19 = vadd.f32 %v3679_v3, %v559_v15  ;;  %v3466_v12 = vmul.f32 -1.442695, %v4460_v17  ;;  %3450 = vmatmul.msk.f32.gmra.mxu0 %vm83_vm0, %v71_v6 }
  0xef   :  { %v3683_v20 = vpop.eup %3682  ;;  %v400_v22 = vadd.f32 1.0, %v3681_v18 }
  0xf0   :  { %v564_v24 = vsel %vm563_vm12, %v3679_v3, %v560_v19  ;;  %v572_v25 = vmul.f32 %v3683_v20, %v399_v5  ;;  %3684 = vpow2.f32 %v3466_v12  ;;  %vm577_vm14 = vweird.f32 %v3683_v20 }
  0xf1   :  { %v569_v27 = vsel %vm566_vm13, %v568_v21, %v564_v24  ;;  %3686 = vrcp.f32 %v400_v22  ;;  %vm578_vm1 = vmor %vm576_vm15, %vm577_vm14  ;;  %v597_v48 = vand.u32 2147483648, %v400_v22  ;;  %v595_v51 = vand.u32 2147483647, %v400_v22  ;;  %v1826_v24 = vld [vmem:[%s7167_s5 + $0xf8] sm:$0xff] }
  0xf2   :  { %v910_v28 = vmul.f32 %v569_v27, %v4430_v30  ;;  %v573_v29 = vsub.f32 1.0, %v572_v25  ;;  %vm591_vm4 = vweird.f32 %v400_v22  ;;  %1946 = vmatpush.msra.mxu3 %v1826_v24 }
  0xf3   :  { %v236_v32 = vpop.f32.mrf.mxu0  ;;  %v598_v57 = vor.u32 1.1754944e-38, %v597_v48  ;;  %vm596_vm7 = vcmp.eq.f32.partialorder %v595_v51, 8.507059e+37  ;;  %v1817_v48 = vld [vmem:[%s7167_s5 + $0xb0] sm:$0xff] }
  0xf4   :  { %v574_v33 = vmul.f32 %v3683_v20, %v573_v29  ;;  %v4470_v35 = vadd.f32 %v4339_v26, %v236_v32  ;;  %3495 = vmatmul.msk.f32.gmra.mxu1 %vm945_vm5, %v910_v28  ;;  %v1823_v28 = vld [vmem:[%s7167_s5 + $0xe0] sm:$0xff]  ;;  %v1824_v29 = vld [vmem:[%s7167_s5 + $0xe8] sm:$0xff] }
  0xf5   :  { %1947 = vmatpush.msra.mxu3 %v1824_v29 }
  0xf6   :  { %v3685_v36 = vpop.eup %3684  ;;  %v575_v37 = vadd.f32 %v3683_v20, %v574_v33  ;;  %v3467_v30 = vmul.f32 -1.442695, %v4470_v35  ;;  %3451 = vmatmul.msk.f32.gmra.mxu0 %vm83_vm0, %v72_v23 }
  0xf7   :  { %v3687_v38 = vpop.eup %3686  ;;  %v401_v40 = vadd.f32 1.0, %v3685_v36  ;;  %v1821_v36 = vld [vmem:[%s7167_s5 + $0xd0] sm:$0xff] }
  0xf8   :  { %v579_v43 = vsel %vm578_vm1, %v3683_v20, %v575_v37  ;;  %v587_v44 = vmul.f32 %v3687_v38, %v400_v22  ;;  %3688 = vpow2.f32 %v3467_v30  ;;  %vm592_vm3 = vweird.f32 %v3687_v38  ;;  %v1825_v22 = vld [vmem:[%s7167_s5 + $0xf0] sm:$0xff]  ;;  %v1822_v37 = vld [vmem:[%s7167_s5 + $0xd8] sm:$0xff] }
  0xf9   :  { %v584_v41 = vsel %vm581_vm2, %v583_v39, %v579_v43  ;;  %3690 = vrcp.f32 %v401_v40  ;;  %vm593_vm6 = vmor %vm591_vm4, %vm592_vm3  ;;  %v612_v1 = vand.u32 2147483648, %v401_v40  ;;  %v610_v4 = vand.u32 2147483647, %v401_v40  ;;  %1833 = vmatpush.msrb.mxu0 %v1825_v22  ;;  %3614 = vmatpush.msra.mxu2 %v1825_v22  ;;  %v1820_v43 = vld [vmem:[%s7167_s5 + $0xc8] sm:$0xff]  ;;  %v1806_v22 = vld [vmem:[%s7167_s5 + $0x58] sm:$0xff] }
  0xfa   :  { %v911_v45 = vmul.f32 %v584_v41, %v4440_v47  ;;  %v588_v46 = vsub.f32 1.0, %v587_v44  ;;  %vm606_vm9 = vweird.f32 %v401_v40  ;;  %1948 = vmatpush.msra.mxu3 %v1822_v37 }
  0xfb   :  { %v239_v49 = vpop.f32.mrf.mxu0  ;;  %v613_v10 = vor.u32 1.1754944e-38, %v612_v1  ;;  %vm611_vm11 = vcmp.eq.f32.partialorder %v610_v4, 8.507059e+37  ;;  %1834 = vmatpush.msrb.mxu0 %v1823_v28  ;;  %3615 = vmatpush.msra.mxu2 %v1823_v28  ;;  %v1804_v28 = vld [vmem:[%s7167_s5 + $0x48] sm:$0xff] }
  0xfc   :  { %v589_v50 = vmul.f32 %v3687_v38, %v588_v46  ;;  %v4480_v52 = vadd.f32 %v4339_v26, %v239_v49  ;;  %3496 = vmatmul.msk.f32.gmra.mxu1 %vm945_vm5, %v911_v45  ;;  %1949 = vmatpush.msra.mxu3 %v1820_v43  ;;  %v1818_v49 = vld [vmem:[%s7167_s5 + $0xb8] sm:$0xff] }
  0xfd   :  { %1835 = vmatpush.msrb.mxu0 %v1821_v36  ;;  %3616 = vmatpush.msra.mxu2 %v1821_v36 }
  0xfe   :  { %v3689_v54 = vpop.eup %3688  ;;  %v590_v55 = vadd.f32 %v3687_v38, %v589_v50  ;;  %v3468_v47 = vmul.f32 -1.442695, %v4480_v52  ;;  %3452 = vmatmul.msk.f32.gmra.mxu0 %vm83_vm0, %v73_v42  ;;  %1950 = vmatpush.msra.mxu3 %v1818_v49 }
  0xff   :  { %v3691_v56 = vpop.eup %3690  ;;  %v402_v58 = vadd.f32 1.0, %v3689_v54  ;;  %v1815_v54 = vld [vmem:[%s7167_s5 + $0xa0] sm:$0xff] }
 0x100   :  { %v594_v60 = vsel %vm593_vm6, %v3687_v38, %v590_v55  ;;  %v602_v61 = vmul.f32 %v3691_v56, %v401_v40  ;;  %3692 = vpow2.f32 %v3468_v47  ;;  %vm607_vm8 = vweird.f32 %v3691_v56  ;;  %v1819_v40 = vld [vmem:[%s7167_s5 + $0xc0] sm:$0xff]  ;;  %v1816_v55 = vld [vmem:[%s7167_s5 + $0xa8] sm:$0xff] }
 0x101   :  { %v599_v53 = vsel %vm596_vm7, %v598_v57, %v594_v60  ;;  %3694 = vrcp.f32 %v402_v58  ;;  %vm608_vm10 = vmor %vm606_vm9, %vm607_vm8  ;;  %v627_v18 = vand.u32 2147483648, %v402_v58  ;;  %v625_v20 = vand.u32 2147483647, %v402_v58  ;;  %1836 = vmatpush.msrb.mxu0 %v1819_v40  ;;  %3617 = vmatpush.msra.mxu2 %v1819_v40 }
 0x102   :  { %v912_v62 = vmul.f32 %v599_v53, %v4450_v0  ;;  %v603_v63 = vsub.f32 1.0, %v602_v61  ;;  %1951 = vmatpush.msra.mxu3 %v1816_v55  ;;  %v1813_v61 = vld [vmem:[%s7167_s5 + $0x90] sm:$0xff]  ;;  %v1814_v53 = vld [vmem:[%s7167_s5 + $0x98] sm:$0xff]  ;;  %v1795_v55 = vld [vmem:[%s7167_s5] sm:$0xff] }
 0x103   :  { %v242_v2 = vpop.f32.mrf.mxu0  ;;  %v628_v32 = vor.u32 1.1754944e-38, %v627_v18  ;;  %vm626_vm14 = vcmp.eq.f32.partialorder %v625_v20, 8.507059e+37  ;;  %1837 = vmatpush.msrb.mxu0 %v1817_v48  ;;  %3618 = vmatpush.msra.mxu2 %v1817_v48  ;;  %v1805_v20 = vld [vmem:[%s7167_s5 + $0x50] sm:$0xff]  ;;  %v1798_v48 = vld [vmem:[%s7167_s5 + $0x18] sm:$0xff] }
 0x104   :  { %v604_v3 = vmul.f32 %v3691_v56, %v603_v63  ;;  %v4490_v5 = vadd.f32 %v4339_v26, %v242_v2  ;;  %3497 = vmatmul.msk.f32.gmra.mxu1 %vm945_vm5, %v912_v62  ;;  %1952 = vmatpush.msra.mxu3 %v1814_v53  ;;  %v1811_v2 = vld [vmem:[%s7167_s5 + $0x80] sm:$0xff] }
 0x105   :  { %1838 = vmatpush.msrb.mxu0 %v1815_v54  ;;  %3619 = vmatpush.msra.mxu2 %v1815_v54 }
 0x106   :  { %v3693_v7 = vpop.eup %3692  ;;  %v605_v8 = vadd.f32 %v3691_v56, %v604_v3  ;;  %v3469_v0 = vmul.f32 -1.442695, %v4490_v5  ;;  %3453 = vmatmul.msk.f32.gmra.mxu0 %vm83_vm0, %v74_v59  ;;  %vm621_vm0 = vweird.f32 %v402_v58  ;;  %v1812_v59 = vld [vmem:[%s7167_s5 + $0x88] sm:$0xff] }
 0x107   :  { %v3695_v9 = vpop.eup %3694  ;;  %v4495_v11 = vadd.f32 1.0, %v3693_v7  ;;  %1839 = vmatpush.msrb.mxu0 %v1813_v61  ;;  %3620 = vmatpush.msra.mxu2 %v1813_v61  ;;  %v4662_v61 = vld [vmem:[%s7164_s2] ss:$0 sm:$0xff] }
 0x108   :  { %v609_v13 = vsel %vm608_vm10, %v3691_v56, %v605_v8  ;;  %v617_v14 = vmul.f32 %v3695_v9, %v402_v58  ;;  %3696 = vpow2.f32 %v3469_v0  ;;  %vm622_vm12 = vweird.f32 %v3695_v9  ;;  %1953 = vmatpush.msra.mxu3 %v1812_v59  ;;  %v1809_v0 = vld [vmem:[%s7167_s5 + $0x70] sm:$0xff] }
 0x109   :  { %v614_v6 = vsel %vm611_vm11, %v613_v10, %v609_v13  ;;  %3698 = vrcp.f32 %v4495_v11  ;;  %vm623_vm13 = vmor %vm621_vm0, %vm622_vm12  ;;  %v642_v44 = vand.u32 2147483648, %v4495_v11  ;;  %v640_v46 = vand.u32 2147483647, %v4495_v11  ;;  %1840 = vmatpush.msrb.mxu0 %v1811_v2  ;;  %3621 = vmatpush.msra.mxu2 %v1811_v2 }
 0x10a   :  { %v913_v15 = vmul.f32 %v614_v6, %v4460_v17  ;;  %v618_v16 = vsub.f32 1.0, %v617_v14  ;;  %vm636_vm1 = vweird.f32 %v4495_v11  ;;  %v1807_v14 = vld [vmem:[%s7167_s5 + $0x60] sm:$0xff]  ;;  %v1808_v6 = vld [vmem:[%s7167_s5 + $0x68] sm:$0xff] }
 0x10b   :  { %v245_v19 = vpop.f32.mrf.mxu0  ;;  %v643_v56 = vor.u32 1.1754944e-38, %v642_v44  ;;  %vm641_vm3 = vcmp.eq.f32.partialorder %v640_v46, 8.507059e+37  ;;  %1841 = vmatpush.msrb.mxu0 %v1809_v0  ;;  %3622 = vmatpush.msra.mxu2 %v1809_v0  ;;  %v1797_v46 = vld [vmem:[%s7167_s5 + $0x10] sm:$0xff] }
 0x10c   :  { %v619_v12 = vmul.f32 %v3695_v9, %v618_v16  ;;  %v4500_v21 = vadd.f32 %v4339_v26, %v245_v19  ;;  %3498 = vmatmul.msk.f32.gmra.mxu1 %vm945_vm5, %v913_v15 }
 0x10d   :  { %1842 = vmatpush.msrb.mxu0 %v1807_v14  ;;  %3623 = vmatpush.msra.mxu2 %v1807_v14 }
 0x10e   :  { %v3697_v17 = vpop.eup %3696  ;;  %v620_v25 = vadd.f32 %v3695_v9, %v619_v12  ;;  %v3470_v27 = vmul.f32 -1.442695, %v4500_v21 }
 0x10f   :  { %v3699_v31 = vpop.eup %3698  ;;  %v4517_v23 = vadd.f32 1.0, %v3697_v17  ;;  %1843 = vmatpush.msrb.mxu0 %v1805_v20  ;;  %3624 = vmatpush.msra.mxu2 %v1805_v20 }
 0x110   :  { %v624_v33 = vsel %vm623_vm13, %v3695_v9, %v620_v25  ;;  %v632_v34 = vmul.f32 %v3699_v31, %v4495_v11  ;;  %3700 = vpow2.f32 %v3470_v27  ;;  %vm637_vm15 = vweird.f32 %v3699_v31  ;;  %v1810_v9 = vld [vmem:[%s7167_s5 + $0x78] sm:$0xff]  ;;  %v1803_v27 = vld [vmem:[%s7167_s5 + $0x40] sm:$0xff] }
 0x111   :  { %v629_v30 = vsel %vm626_vm14, %v628_v32, %v624_v33  ;;  %3702 = vrcp.f32 %v4517_v23  ;;  %vm638_vm2 = vmor %vm636_vm1, %vm637_vm15  ;;  %v657_v3 = vand.u32 2147483648, %v4517_v23  ;;  %v655_v8 = vand.u32 2147483647, %v4517_v23  ;;  %1954 = vmatpush.msra.mxu3 %v1810_v9  ;;  %1844 = vmatpush.msrb.mxu0 %v1803_v27  ;;  %v1801_v33 = vld [vmem:[%s7167_s5 + $0x30] sm:$0xff] }
 0x112   :  { %v914_v38 = vmul.f32 %v629_v30, %v4470_v35  ;;  %v633_v39 = vsub.f32 1.0, %v632_v34  ;;  %vm651_vm6 = vweird.f32 %v4517_v23  ;;  %v1802_v34 = vld [vmem:[%s7167_s5 + $0x38] sm:$0xff]  ;;  %3625 = vmatpush.msra.mxu2 %v1803_v27  ;;  %v4627_v30 = vld [vmem:[%s7166_s4] ss:$0 sm:$0xff] }
 0x113   :  { %v248_v41 = vpop.f32.mrf.mxu0  ;;  %v658_v16 = vor.u32 1.1754944e-38, %v657_v3  ;;  %1955 = vmatpush.msra.mxu3 %v1808_v6  ;;  %vm656_vm8 = vcmp.eq.f32.partialorder %v655_v8, 8.507059e+37  ;;  %1845 = vmatpush.msrb.mxu0 %v1801_v33 }
 0x114   :  { %v634_v45 = vmul.f32 %v3699_v31, %v633_v39  ;;  %v4537_v35 = vadd.f32 %v4339_v26, %v248_v41  ;;  %3499 = vmatmul.msk.f32.gmra.mxu1 %vm945_vm5, %v914_v38  ;;  %v1799_v38 = vld [vmem:[%s7167_s5 + $0x20] sm:$0xff]  ;;  %v1800_v39 = vld [vmem:[%s7167_s5 + $0x28] sm:$0xff]  ;;  %3626 = vmatpush.msra.mxu2 %v1801_v33 }
 0x115   :  { %1956 = vmatpush.msra.mxu3 %v1806_v22  ;;  %1846 = vmatpush.msrb.mxu0 %v1799_v38 }
 0x116   :  { %v3701_v42 = vpop.eup %3700  ;;  %v635_v50 = vadd.f32 %v3699_v31, %v634_v45  ;;  %v3471_v51 = vmul.f32 -1.442695, %v4537_v35  ;;  %3627 = vmatpush.msra.mxu2 %v1799_v38 }
 0x117   :  { %v3703_v47 = vpop.eup %3702  ;;  %v4555_v57 = vadd.f32 1.0, %v3701_v42  ;;  %1957 = vmatpush.msra.mxu3 %v1804_v28  ;;  %1847 = vmatpush.msrb.mxu0 %v1797_v46 }
 0x118   :  { %v639_v58 = vsel %vm638_vm2, %v3699_v31, %v635_v50  ;;  %v647_v60 = vmul.f32 %v3703_v47, %v4517_v23  ;;  %3704 = vpow2.f32 %v3471_v51  ;;  %vm652_vm4 = vweird.f32 %v3703_v47  ;;  %3628 = vmatpush.msra.mxu2 %v1797_v46 }
 0x119   :  { %v644_v62 = vsel %vm641_vm3, %v643_v56, %v639_v58  ;;  %3706 = vrcp.f32 %v4555_v57  ;;  %vm653_vm7 = vmor %vm651_vm6, %vm652_vm4  ;;  %v672_v29 = vand.u32 2147483648, %v4555_v57  ;;  %v670_v23 = vand.u32 2147483647, %v4555_v57  ;;  %1958 = vmatpush.msra.mxu3 %v1802_v34  ;;  %1848 = vmatpush.msrb.mxu0 %v1795_v55 }
 0x11a   :  { %v915_v63 = vmul.f32 %v644_v62, %v4480_v52  ;;  %v648_v1 = vsub.f32 1.0, %v647_v60  ;;  %vm666_vm10 = vweird.f32 %v4555_v57  ;;  %3629 = vmatpush.msra.mxu2 %v1795_v55 }
 0x11b   :  { %v251_v4 = vpop.f32.mrf.mxu0  ;;  %v673_v43 = vor.u32 1.1754944e-38, %v672_v29  ;;  %1959 = vmatpush.msra.mxu3 %v1800_v39  ;;  %vm671_vm12 = vcmp.eq.f32.partialorder %v670_v23, 8.507059e+37 }
 0x11c   :  { %v649_v7 = vmul.f32 %v3703_v47, %v648_v1  ;;  %v4575_v52 = vadd.f32 %v4339_v26, %v251_v4  ;;  %3500 = vmatmul.msk.f32.gmra.mxu1 %vm945_vm5, %v915_v63 }
 0x11d   :  { %1960 = vmatpush.msra.mxu3 %v1798_v48 }
 0x11e   :  { %v3705_v10 = vpop.eup %3704  ;;  %v650_v11 = vadd.f32 %v3703_v47, %v649_v7  ;;  %v3472_v13 = vmul.f32 -1.442695, %v4575_v52 }
 0x11f   :  { %v3707_v15 = vpop.eup %3706  ;;  %v4593_v18 = vadd.f32 1.0, %v3705_v10 }
 0x120   :  { %v654_v19 = vsel %vm653_vm7, %v3703_v47, %v650_v11  ;;  %v662_v12 = vmul.f32 %v3707_v15, %v4555_v57  ;;  %3708 = vpow2.f32 %v3472_v13  ;;  %vm667_vm9 = vweird.f32 %v3707_v15  ;;  %v1796_v47 = vld [vmem:[%s7167_s5 + $0x8] sm:$0xff] }
 0x121   :  { %v659_v24 = vsel %vm656_vm8, %v658_v16, %v654_v19  ;;  %3710 = vrcp.f32 %v4593_v18  ;;  %vm668_vm11 = vmor %vm666_vm10, %vm667_vm9  ;;  %v685_v56 = vand.u32 2147483647, %v4593_v18  ;;  %v687_v57 = vand.u32 2147483648, %v4593_v18  ;;  %1961 = vmatpush.msra.mxu3 %v1796_v47 }
 0x122   :  { %v916_v17 = vmul.f32 %v659_v24, %v4490_v5  ;;  %v663_v25 = vsub.f32 1.0, %v662_v12  ;;  %vm681_vm13 = vweird.f32 %v4593_v18 }
 0x123   :  { %v254_v31 = vpop.f32.mrf.mxu0  ;;  %v688_v59 = vor.u32 1.1754944e-38, %v687_v57  ;;  %vm686_vm15 = vcmp.eq.f32.partialorder %v685_v56, 8.507059e+37 }
 0x124   :  { %v664_v32 = vmul.f32 %v3707_v15, %v663_v25  ;;  %v4613_v5 = vadd.f32 %v4339_v26, %v254_v31  ;;  %3501 = vmatmul.msk.f32.gmra.mxu1 %vm945_vm5, %v916_v17 }
 0x126   :  { %v3709_v36 = vpop.eup %3708  ;;  %v665_v37 = vadd.f32 %v3707_v15, %v664_v32  ;;  %v3473_v26 = vmul.f32 -1.442695, %v4613_v5 }
 0x127   :  { %v3711_v40 = vpop.eup %3710  ;;  %v4636_v44 = vadd.f32 1.0, %v3709_v36 }
 0x128   :  { %v669_v41 = vsel %vm668_vm11, %v3707_v15, %v665_v37  ;;  %v677_v45 = vmul.f32 %v3711_v40, %v4593_v18  ;;  %3712 = vpow2.f32 %v3473_v26  ;;  %vm682_vm0 = vweird.f32 %v3711_v40 }
 0x129   :  { %v674_v49 = vsel %vm671_vm12, %v673_v43, %v669_v41  ;;  %3714 = vrcp.f32 %v4636_v44  ;;  %v1059_v42 = vpop.f32.mrf.mxu1  ;;  %vm683_vm14 = vmor %vm681_vm13, %vm682_vm0  ;;  %v700_v13 = vand.u32 2147483647, %v4636_v44  ;;  %v702_v14 = vand.u32 2147483648, %v4636_v44 }
 0x12a   :  { %v917_v50 = vmul.f32 %v674_v49, %v4500_v21  ;;  %v678_v51 = vsub.f32 1.0, %v677_v45  ;;  %v4648_v54 = vadd.f32 %v4627_v30, %v1059_v42  ;;  %vm696_vm2 = vweird.f32 %v4636_v44 }
 0x12b   :  { %v257_v58 = vpop.f32.mrf.mxu0  ;;  %vm701_vm4 = vcmp.eq.f32.partialorder %v700_v13, 8.507059e+37  ;;  %v703_v17 = vor.u32 1.1754944e-38, %v702_v14 }
 0x12c   :  { %v679_v21 = vmul.f32 %v3711_v40, %v678_v51  ;;  %v3518_v60 = vmul.f32 -1.442695, %v4648_v54  ;;  %v4665_v53 = vadd.f32 %v4662_v61, %v257_v58  ;;  %3502 = vmatmul.msk.f32.gmra.mxu1 %vm945_vm5, %v917_v50 }
 0x12e   :  { %v3713_v62 = vpop.eup %3712  ;;  %v680_v63 = vadd.f32 %v3711_v40, %v679_v21  ;;  %3716 = vpow2.f32 %v3518_v60  ;;  %v3474_v1 = vmul.f32 -1.442695, %v4665_v53 }
 0x12f   :  { %v3715_v2 = vpop.eup %3714  ;;  %v408_v3 = vadd.f32 1.0, %v3713_v62 }
 0x130   :  { %v684_v4 = vsel %vm683_vm14, %v3711_v40, %v680_v63  ;;  %v692_v7 = vmul.f32 %v3715_v2, %v4636_v44  ;;  %3718 = vpow2.f32 %v3474_v1  ;;  %vm697_vm1 = vweird.f32 %v3715_v2 }
 0x131   :  { %v689_v8 = vsel %vm686_vm15, %v688_v59, %v684_v4  ;;  %3720 = vrcp.f32 %v408_v3  ;;  %v1062_v0 = vpop.f32.mrf.mxu1  ;;  %vm698_vm3 = vmor %vm696_vm2, %vm697_vm1  ;;  %v715_v28 = vand.u32 2147483647, %v408_v3  ;;  %v717_v32 = vand.u32 2147483648, %v408_v3 }
 0x132   :  { %v918_v9 = vmul.f32 %v689_v8, %v4537_v35  ;;  %v693_v10 = vsub.f32 1.0, %v692_v7  ;;  %v4673_v11 = vadd.f32 %v4627_v30, %v1062_v0  ;;  %vm711_vm6 = vweird.f32 %v408_v3 }
 0x133   :  { %v260_v6 = vpop.f32.mrf.mxu0  ;;  %vm4694_vm8 = vcmp.eq.f32.partialorder %v715_v28, 8.507059e+37  ;;  %v718_v43 = vor.u32 1.1754944e-38, %v717_v32 }
 0x134   :  { %v3717_v15 = vpop.eup %3716  ;;  %v694_v16 = vmul.f32 %v3715_v2, %v693_v10  ;;  %v3519_v18 = vmul.f32 -1.442695, %v4673_v11  ;;  %v4679_v19 = vadd.f32 %v4662_v61, %v260_v6  ;;  %3503 = vmatmul.msk.f32.gmra.mxu1 %vm945_vm5, %v918_v9 }
 0x135   :  { %v4682_v35 = vadd.f32 1.0, %v3717_v15 }
 0x136   :  { %v3719_v12 = vpop.eup %3718  ;;  %v695_v20 = vadd.f32 %v3715_v2, %v694_v16  ;;  %3722 = vpow2.f32 %v3519_v18  ;;  %v3475_v22 = vmul.f32 -1.442695, %v4679_v19 }
 0x137   :  { %v3721_v24 = vpop.eup %3720  ;;  %3724 = vrcp.f32 %v4682_v35  ;;  %v4687_v29 = vadd.f32 1.0, %v3719_v12  ;;  %v1292_v44 = vand.u32 2147483647, %v4682_v35  ;;  %vm1288_vm9 = vweird.f32 %v4682_v35 }
 0x138   :  { %v699_v25 = vsel %vm698_vm3, %v3715_v2, %v695_v20  ;;  %v707_v27 = vmul.f32 %v3721_v24, %v408_v3  ;;  %3726 = vpow2.f32 %v3475_v22  ;;  %vm712_vm7 = vweird.f32 %v3721_v24 }
 0x139   :  { %v704_v31 = vsel %vm701_vm4, %v703_v17, %v699_v25  ;;  %v1065_v23 = vpop.f32.mrf.mxu1  ;;  %3728 = vrcp.f32 %v4687_v29  ;;  %vm713_vm10 = vmor %vm711_vm6, %vm712_vm7  ;;  %v1294_v50 = vand.u32 2147483648, %v4682_v35  ;;  %v730_v51 = vand.u32 2147483647, %v4687_v29 }
 0x13a   :  { %v919_v33 = vmul.f32 %v704_v31, %v4575_v52  ;;  %v708_v34 = vsub.f32 1.0, %v707_v27  ;;  %v4692_v36 = vadd.f32 %v4627_v30, %v1065_v23  ;;  %v732_v55 = vand.u32 2147483648, %v4687_v29 }
 0x13b   :  { %v263_v37 = vpop.f32.mrf.mxu0  ;;  %vm4718_vm11 = vcmp.eq.f32.partialorder %v1292_v44, 8.507059e+37  ;;  %v1295_v59 = vor.u32 1.1754944e-38, %v1294_v50  ;;  %vm726_vm0 = vweird.f32 %v4687_v29  ;;  %vm4729_vm13 = vcmp.eq.f32.partialorder %v730_v51, 8.507059e+37 }
 0x13c   :  { %v3723_v26 = vpop.eup %3722  ;;  %v709_v38 = vmul.f32 %v3721_v24, %v708_v34  ;;  %v4699_v40 = vadd.f32 %v4662_v61, %v263_v37  ;;  %3504 = vmatmul.msk.f32.gmra.mxu1 %vm945_vm5, %v919_v33  ;;  %v3520_v45 = vmul.f32 -1.442695, %v4692_v36  ;;  %v733_v9 = vor.u32 1.1754944e-38, %v732_v55 }
 0x13d   :  { %v3725_v52 = vpop.eup %3724  ;;  %v4703_v41 = vadd.f32 1.0, %v3723_v26 }
 0x13e   :  { %v710_v46 = vadd.f32 %v3721_v24, %v709_v38  ;;  %v1284_v48 = vmul.f32 %v3725_v52, %v4682_v35  ;;  %v3476_v49 = vmul.f32 -1.442695, %v4699_v40  ;;  %v3727_v42 = vpop.eup %3726  ;;  %vm1289_vm12 = vweird.f32 %v3725_v52 }
 0x13f   :  { %3730 = vrcp.f32 %v4703_v41  ;;  %v3729_v47 = vpop.eup %3728  ;;  %v4714_v58 = vadd.f32 1.0, %v3727_v42  ;;  %vm1290_vm14 = vmor %vm1288_vm9, %vm1289_vm12  ;;  %v1307_v6 = vand.u32 2147483647, %v4703_v41  ;;  %vm1303_vm1 = vweird.f32 %v4703_v41 }
 0x140   :  { %v714_v56 = vsel %vm713_vm10, %v3721_v24, %v710_v46  ;;  %v1285_v57 = vsub.f32 1.0, %v1284_v48  ;;  %3732 = vpow2.f32 %v3520_v45  ;;  %v722_v62 = vmul.f32 %v3729_v47, %v4687_v29 }
 0x141   :  { %v719_v21 = vsel %vm4694_vm8, %v718_v43, %v714_v56  ;;  %3734 = vpow2.f32 %v3476_v49  ;;  %v1068_v63 = vpop.f32.mrf.mxu1  ;;  %vm727_vm15 = vweird.f32 %v3729_v47  ;;  %v1309_v20 = vand.u32 2147483648, %v4703_v41 }
 0x142   :  { %v920_v1 = vmul.f32 %v719_v21, %v4613_v5  ;;  %v1286_v2 = vmul.f32 %v3725_v52, %v1285_v57  ;;  %3736 = vrcp.f32 %v4714_v58  ;;  %v723_v3 = vsub.f32 1.0, %v722_v62  ;;  %vm728_vm2 = vmor %vm726_vm0, %vm727_vm15 }
 0x143   :  { %v4727_v4 = vadd.f32 %v4627_v30, %v1068_v63  ;;  %v266_v7 = vpop.f32.mrf.mxu0  ;;  %vm741_vm3 = vweird.f32 %v4714_v58  ;;  %v747_v29 = vand.u32 2147483648, %v4714_v58  ;;  %vm4770_vm4 = vcmp.eq.f32.partialorder %v1307_v6, 8.507059e+37 }
 0x144   :  { %v1287_v8 = vadd.f32 %v3725_v52, %v1286_v2  ;;  %v4734_v5 = vadd.f32 %v4662_v61, %v266_v7  ;;  %3505 = vmatmul.msk.f32.gmra.mxu1 %vm945_vm5, %v920_v1  ;;  %v724_v13 = vmul.f32 %v3729_v47, %v723_v3  ;;  %v1310_v45 = vor.u32 1.1754944e-38, %v1309_v20 }
 0x145   :  { %v4737_v10 = vpop.eup %3730  ;;  %v3521_v14 = vmul.f32 -1.442695, %v4727_v4  ;;  %v748_v1 = vor.u32 1.1754944e-38, %v747_v29 }
 0x146   :  { %v3733_v15 = vpop.eup %3732  ;;  %v1291_v16 = vsel %vm1290_vm14, %v3725_v52, %v1287_v8  ;;  %v3477_v18 = vmul.f32 -1.442695, %v4734_v5  ;;  %v1299_v12 = vmul.f32 %v4737_v10, %v4703_v41  ;;  %v725_v24 = vadd.f32 %v3729_v47, %v724_v13 }
 0x147   :  { %v3735_v22 = vpop.eup %3734  ;;  %v1296_v35 = vsel %vm4718_vm11, %v1295_v59, %v1291_v16  ;;  %v4750_v17 = vadd.f32 1.0, %v3733_v15  ;;  %3738 = vpow2.f32 %v3521_v14  ;;  %vm1304_vm6 = vweird.f32 %v4737_v10 }
 0x148   :  { %v3737_v25 = vpop.eup %3736  ;;  %v1763_v27 = vmul.f32 %v1296_v35, %v4648_v54  ;;  %v4756_v28 = vadd.f32 1.0, %v3735_v22  ;;  %3740 = vpow2.f32 %v3477_v18  ;;  %v1300_v31 = vsub.f32 1.0, %v1299_v12  ;;  %vm4799_vm9 = vmor %vm1303_vm1, %vm1304_vm6 }
 0x149   :  { %v729_v32 = vsel %vm728_vm2, %v3729_v47, %v725_v24  ;;  %v737_v23 = vmul.f32 %v3737_v25, %v4714_v58  ;;  %3742 = vrcp.f32 %v4750_v17  ;;  %v1071_v33 = vpop.f32.mrf.mxu1  ;;  %v745_v54 = vand.u32 2147483647, %v4714_v58 }
 0x14a   :  { %v734_v34 = vsel %vm4729_vm13, %v733_v9, %v729_v32  ;;  %3744 = vrcp.f32 %v4756_v28  ;;  %1849 = vmatmul.f32.vlgmr.msrb.gmra.mxu0 %v1763_v27  ;;  %1962 = vmatmul.f32.vlgmr.msra.gmra.mxu3 %v1763_v27  ;;  %v4768_v38 = vadd.f32 %v4627_v30, %v1071_v33  ;;  %v1301_v44 = vmul.f32 %v4737_v10, %v1300_v31 }
 0x14b   :  { %v921_v37 = vmul.f32 %v734_v34, %v4665_v53  ;;  %v738_v26 = vsub.f32 1.0, %v737_v23  ;;  %v269_v39 = vpop.f32.mrf.mxu0  ;;  %vm742_vm7 = vweird.f32 %v3737_v25  ;;  %v760_v53 = vand.u32 2147483647, %v4756_v28 }
 0x14c   :  { %v4775_v43 = vadd.f32 %v4662_v61, %v269_v39  ;;  %v3522_v49 = vmul.f32 -1.442695, %v4768_v38  ;;  %vm4782_vm8 = vcmp.eq.f32.partialorder %v745_v54, 8.507059e+37  ;;  %v762_v51 = vand.u32 2147483648, %v4756_v28  ;;  %vm743_vm10 = vmor %vm741_vm3, %vm742_vm7 }
 0x14d   :  { %v3739_v46 = vpop.eup %3738  ;;  %v739_v48 = vmul.f32 %v3737_v25, %v738_v26  ;;  %3506 = vmatmul.msk.f32.gmra.mxu1 %vm945_vm5, %v921_v37  ;;  %v1302_v47 = vadd.f32 %v4737_v10, %v1301_v44  ;;  %vm756_vm11 = vweird.f32 %v4756_v28  ;;  %vm4812_vm12 = vcmp.eq.f32.partialorder %v760_v53, 8.507059e+37 }
 0x14e   :  { %v3741_v42 = vpop.eup %3740  ;;  %v4787_v55 = vadd.f32 1.0, %v3739_v46  ;;  %3746 = vpow2.f32 %v3522_v49  ;;  %v3478_v60 = vmul.f32 -1.442695, %v4775_v43  ;;  %v763_v0 = vor.u32 1.1754944e-38, %v762_v51 }
 0x14f   :  { %v4790_v56 = vpop.eup %3742  ;;  %v740_v57 = vadd.f32 %v3737_v25, %v739_v48  ;;  %v4792_v21 = vadd.f32 1.0, %v3741_v42  ;;  %v1306_v2 = vsel %vm4799_vm9, %v4737_v10, %v1302_v47  ;;  %vm1318_vm0 = vweird.f32 %v4750_v17 }
 0x150   :  { %v3745_v63 = vpop.eup %3744  ;;  %3748 = vrcp.f32 %v4787_v55  ;;  %v1314_v7 = vmul.f32 %v4790_v56, %v4750_v17  ;;  %v1322_v9 = vand.u32 2147483647, %v4750_v17  ;;  %v1311_v15 = vsel %vm4770_vm4, %v1310_v45, %v1306_v2 }
 0x151   :  { %v744_v59 = vsel %vm743_vm10, %v3737_v25, %v740_v57  ;;  %v752_v41 = vmul.f32 %v3745_v63, %v4756_v28  ;;  %3750 = vrcp.f32 %v4792_v21  ;;  %v1074_v58 = vpop.f32.mrf.mxu1  ;;  %vm757_vm13 = vweird.f32 %v3745_v63 }
 0x152   :  { %v749_v8 = vsel %vm4782_vm8, %v748_v1, %v744_v59  ;;  %3752 = vpow2.f32 %v3478_v60  ;;  %v4825_v14 = vadd.f32 %v4627_v30, %v1074_v58  ;;  %v1324_v18 = vand.u32 2147483648, %v4750_v17  ;;  %vm758_vm1 = vmor %vm756_vm11, %vm757_vm13 }
 0x153   :  { %v922_v10 = vmul.f32 %v749_v8, %v4679_v19  ;;  %v753_v13 = vsub.f32 1.0, %v752_v41  ;;  %v272_v6 = vpop.f32.mrf.mxu0  ;;  %v1764_v19 = vmul.f32 %v1311_v15, %v4673_v11  ;;  %v1315_v35 = vsub.f32 1.0, %v1314_v7 }
 0x154   :  { %v4830_v16 = vadd.f32 %v4662_v61, %v272_v6  ;;  %v3747_v12 = vpop.eup %3746  ;;  %v3523_v22 = vmul.f32 -1.442695, %v4825_v14  ;;  %vm1319_vm14 = vweird.f32 %v4790_v56  ;;  %vm4842_vm15 = vcmp.eq.f32.partialorder %v1322_v9, 8.507059e+37 }
 0x155   :  { %v754_v20 = vmul.f32 %v3745_v63, %v753_v13  ;;  %3507 = vmatmul.msk.f32.gmra.mxu1 %vm945_vm5, %v922_v10  ;;  %v4838_v25 = vadd.f32 1.0, %v3747_v12  ;;  %1852 = vmatmul.f32.vlgmr.msra.gmra.mxu2 %v1764_v19  ;;  %v1316_v11 = vmul.f32 %v4790_v56, %v1315_v35  ;;  %v775_v54 = vand.u32 2147483647, %v4792_v21  ;;  %vm1320_vm2 = vmor %vm1318_vm0, %vm1319_vm14 }
 0x156   :  { %v4836_v24 = vpop.eup %3748  ;;  %v3479_v27 = vmul.f32 -1.442695, %v4830_v16  ;;  %3754 = vpow2.f32 %v3523_v22  ;;  %1965 = vmatmul.f32.gmra.mxu3 %v1764_v19  ;;  %v777_v29 = vand.u32 2147483648, %v4792_v21  ;;  %v1325_v37 = vor.u32 1.1754944e-38, %v1324_v18 }
 0x157   :  { %v3751_v32 = vpop.eup %3750  ;;  %v755_v23 = vadd.f32 %v3745_v63, %v754_v20  ;;  %v1329_v33 = vmul.f32 %v4836_v24, %v4787_v55  ;;  %v1317_v44 = vadd.f32 %v4790_v56, %v1316_v11  ;;  %vm771_vm3 = vweird.f32 %v4792_v21 }
 0x158   :  { %v767_v34 = vmul.f32 %v3751_v32, %v4792_v21  ;;  %v3753_v26 = vpop.eup %3752  ;;  %3756 = vpow2.f32 %v3479_v27  ;;  %vm772_vm4 = vweird.f32 %v3751_v32  ;;  %vm4873_vm6 = vcmp.eq.f32.partialorder %v775_v54, 8.507059e+37 }
 0x159   :  { %v759_v39 = vsel %vm758_vm1, %v3745_v63, %v755_v23  ;;  %v1077_v52 = vpop.f32.mrf.mxu1  ;;  %v1330_v45 = vsub.f32 1.0, %v1329_v33  ;;  %v4858_v28 = vadd.f32 1.0, %v3753_v26  ;;  %3758 = vrcp.f32 %v4838_v25  ;;  %vm773_vm8 = vmor %vm771_vm3, %vm772_vm4 }
 0x15a   :  { %v764_v46 = vsel %vm4812_vm12, %v763_v0, %v759_v39  ;;  %v768_v48 = vsub.f32 1.0, %v767_v34  ;;  %v4861_v53 = vadd.f32 %v4627_v30, %v1077_v52  ;;  %v1321_v42 = vsel %vm1320_vm2, %v4790_v56, %v1317_v44 }
 0x15b   :  { %v923_v49 = vmul.f32 %v764_v46, %v4699_v40  ;;  %v275_v50 = vpop.f32.mrf.mxu0  ;;  %v1331_v51 = vmul.f32 %v4836_v24, %v1330_v45  ;;  %3760 = vrcp.f32 %v4858_v28  ;;  %v1326_v17 = vsel %vm4842_vm15, %v1325_v37, %v1321_v42 }
 0x15c   :  { %v769_v47 = vmul.f32 %v3751_v32, %v768_v48  ;;  %v3755_v57 = vpop.eup %3754  ;;  %v3524_v40 = vmul.f32 -1.442695, %v4861_v53  ;;  %v4881_v56 = vadd.f32 %v4662_v61, %v275_v50  ;;  %v778_v21 = vor.u32 1.1754944e-38, %v777_v29 }
 0x15d   :  { %3508 = vmatmul.msk.f32.gmra.mxu1 %vm945_vm5, %v923_v49  ;;  %v1765_v63 = vmul.f32 %v1326_v17, %v4692_v36  ;;  %vm1333_vm7 = vweird.f32 %v4787_v55  ;;  %v790_v2 = vand.u32 2147483647, %v4858_v28  ;;  %v1332_v41 = vadd.f32 %v4836_v24, %v1331_v51 }
 0x15e   :  { %v770_v62 = vadd.f32 %v3751_v32, %v769_v47  ;;  %v3757_v1 = vpop.eup %3756  ;;  %v3480_v59 = vmul.f32 -1.442695, %v4881_v56  ;;  %vm1334_vm9 = vweird.f32 %v4836_v24  ;;  %v4890_v58 = vadd.f32 1.0, %v3755_v57 }
 0x15f   :  { %v4892_v7 = vadd.f32 1.0, %v3757_v1  ;;  %3762 = vpow2.f32 %v3524_v40  ;;  %1855 = vmatmul.f32.gmra.mxu2 %v1765_v63  ;;  %1968 = vmatmul.f32.gmra.mxu3 %v1765_v63  ;;  %v4894_v36 = vpop.eup %3758  ;;  %v1337_v9 = vand.u32 2147483647, %v4787_v55  ;;  %v1339_v10 = vand.u32 2147483648, %v4787_v55  ;;  %vm4908_vm11 = vmor %vm1333_vm7, %vm1334_vm9 }
 0x160   :  { %v774_v3 = vsel %vm773_vm8, %v3751_v32, %v770_v62  ;;  %3764 = vpow2.f32 %v3480_v59  ;;  %vm786_vm10 = vweird.f32 %v4858_v28  ;;  %v792_v15 = vand.u32 2147483648, %v4858_v28 }
 0x161   :  { %v779_v8 = vsel %vm4873_vm6, %v778_v21, %v774_v3  ;;  %v1080_v0 = vpop.f32.mrf.mxu1  ;;  %v3761_v13 = vpop.eup %3760  ;;  %3766 = vrcp.f32 %v4892_v7  ;;  %vm4913_vm12 = vcmp.eq.f32.partialorder %v790_v2, 8.507059e+37  ;;  %v1336_v22 = vsel %vm4908_vm11, %v4836_v24, %v1332_v41 }
 0x162   :  { %v924_v6 = vmul.f32 %v779_v8, %v4734_v5  ;;  %v782_v12 = vmul.f32 %v3761_v13, %v4858_v28  ;;  %v4918_v5 = vadd.f32 %v4627_v30, %v1080_v0  ;;  %3768 = vrcp.f32 %v4890_v58 }
 0x163   :  { %v278_v19 = vpop.f32.mrf.mxu0  ;;  %v1340_v55 = vor.u32 1.1754944e-38, %v1339_v10  ;;  %v1344_v27 = vmul.f32 %v4894_v36, %v4838_v25  ;;  %v805_v32 = vand.u32 2147483647, %v4892_v7  ;;  %vm1338_vm0 = vcmp.eq.f32.partialorder %v1337_v9, 8.507059e+37 }
 0x164   :  { %v4925_v35 = vadd.f32 %v4662_v61, %v278_v19  ;;  %v783_v31 = vsub.f32 1.0, %v782_v12  ;;  %v3525_v23 = vmul.f32 -1.442695, %v4918_v5  ;;  %v807_v24 = vand.u32 2147483648, %v4892_v7 }
 0x165   :  { %3509 = vmatmul.msk.f32.gmra.mxu1 %vm945_vm5, %v924_v6  ;;  %v3763_v11 = vpop.eup %3762  ;;  %v1341_v33 = vsel %vm1338_vm0, %v1340_v55, %v1336_v22  ;;  %v1345_v54 = vsub.f32 1.0, %v1344_v27  ;;  %vm787_vm13 = vweird.f32 %v3761_v13  ;;  %v793_v26 = vor.u32 1.1754944e-38, %v792_v15 }
 0x166   :  { %v3481_v34 = vmul.f32 -1.442695, %v4925_v35  ;;  %v3765_v29 = vpop.eup %3764  ;;  %v784_v37 = vmul.f32 %v3761_v13, %v783_v31  ;;  %v1766_v39 = vmul.f32 %v1341_v33, %v4727_v4  ;;  %vm801_vm14 = vweird.f32 %v4892_v7  ;;  %vm788_vm1 = vmor %vm786_vm10, %vm787_vm13 }
 0x167   :  { %v3767_v52 = vpop.eup %3766  ;;  %v4936_v44 = vadd.f32 1.0, %v3765_v29  ;;  %3770 = vpow2.f32 %v3525_v23  ;;  %v1346_v45 = vmul.f32 %v4894_v36, %v1345_v54  ;;  %vm4940_vm15 = vcmp.eq.f32.partialorder %v805_v32, 8.507059e+37 }
 0x168   :  { %v785_v46 = vadd.f32 %v3761_v13, %v784_v37  ;;  %v797_v48 = vmul.f32 %v3767_v52, %v4892_v7  ;;  %1858 = vmatmul.f32.gmra.mxu2 %v1766_v39  ;;  %1971 = vmatmul.f32.gmra.mxu3 %v1766_v39  ;;  %3772 = vpow2.f32 %v3481_v34  ;;  %v4944_v4 = vpop.eup %3768  ;;  %v808_v50 = vor.u32 1.1754944e-38, %v807_v24 }
 0x169   :  { %v1083_v42 = vpop.f32.mrf.mxu1  ;;  %v4949_v51 = vadd.f32 1.0, %v3763_v11  ;;  %3774 = vrcp.f32 %v4936_v44  ;;  %vm1348_vm2 = vweird.f32 %v4838_v25  ;;  %v822_v60 = vand.u32 2147483648, %v4936_v44 }
 0x16a   :  { %v789_v47 = vsel %vm788_vm1, %v3761_v13, %v785_v46  ;;  %v798_v57 = vsub.f32 1.0, %v797_v48  ;;  %v4955_v40 = vadd.f32 %v4627_v30, %v1083_v42  ;;  %vm802_vm3 = vweird.f32 %v3767_v52 }
 0x16b   :  { %v281_v17 = vpop.f32.mrf.mxu0  ;;  %v794_v62 = vsel %vm4913_vm12, %v793_v26, %v789_v47  ;;  %v1347_v28 = vadd.f32 %v4894_v36, %v1346_v45  ;;  %vm1349_vm4 = vweird.f32 %v4894_v36  ;;  %v820_v1 = vand.u32 2147483647, %v4936_v44  ;;  %vm803_vm8 = vmor %vm801_vm14, %vm802_vm3 }
 0x16c   :  { %v925_v21 = vmul.f32 %v794_v62, %v4775_v43  ;;  %v799_v63 = vmul.f32 %v3767_v52, %v798_v57  ;;  %v3526_v2 = vmul.f32 -1.442695, %v4955_v40  ;;  %v1352_v41 = vand.u32 2147483647, %v4838_v25  ;;  %vm4977_vm7 = vmor %vm1348_vm2, %vm1349_vm4 }
 0x16d   :  { %v3771_v59 = vpop.eup %3770  ;;  %v1354_v3 = vand.u32 2147483648, %v4838_v25  ;;  %v4967_v8 = vadd.f32 %v4662_v61, %v281_v17  ;;  %v1359_v0 = vmul.f32 %v4944_v4, %v4890_v58  ;;  %3776 = vrcp.f32 %v4949_v51 }
 0x16e   :  { %v3773_v9 = vpop.eup %3772  ;;  %v800_v10 = vadd.f32 %v3767_v52, %v799_v63  ;;  %vm816_vm6 = vweird.f32 %v4936_v44  ;;  %v823_v43 = vor.u32 1.1754944e-38, %v822_v60  ;;  %3510 = vmatmul.msk.f32.gmra.mxu1 %vm945_vm5, %v925_v21  ;;  %3778 = vpow2.f32 %v3526_v2 }
 0x16f   :  { %v3775_v6 = vpop.eup %3774  ;;  %v4985_v15 = vadd.f32 1.0, %v3773_v9  ;;  %v1351_v18 = vsel %vm4977_vm7, %v4894_v36, %v1347_v28  ;;  %v3482_v25 = vmul.f32 -1.442695, %v4967_v8  ;;  %vm4992_vm9 = vcmp.eq.f32.partialorder %v820_v1, 8.507059e+37 }
 0x170   :  { %v804_v12 = vsel %vm803_vm8, %v3767_v52, %v800_v10  ;;  %v812_v20 = vmul.f32 %v3775_v6, %v4936_v44  ;;  %v1355_v19 = vor.u32 1.1754944e-38, %v1354_v3  ;;  %v1360_v7 = vsub.f32 1.0, %v1359_v0 }
 0x171   :  { %v1086_v55 = vpop.f32.mrf.mxu1  ;;  %v809_v27 = vsel %vm4940_vm15, %v808_v50, %v804_v12  ;;  %v4998_v31 = vadd.f32 1.0, %v3771_v59  ;;  %3780 = vrcp.f32 %v4985_v15  ;;  %vm1353_vm10 = vcmp.eq.f32.partialorder %v1352_v41, 8.507059e+37 }
 0x172   :  { %v926_v36 = vmul.f32 %v809_v27, %v4830_v16  ;;  %v813_v32 = vsub.f32 1.0, %v812_v20  ;;  %v1356_v23 = vsel %vm1353_vm10, %v1355_v19, %v1351_v18  ;;  %vm1363_vm11 = vweird.f32 %v4890_v58 }
 0x173   :  { %v284_v11 = vpop.f32.mrf.mxu0  ;;  %v1767_v24 = vmul.f32 %v1356_v23, %v4768_v38  ;;  %3782 = vpow2.f32 %v3482_v25  ;;  %v5005_v33 = vadd.f32 %v4627_v30, %v1086_v55  ;;  %vm1364_vm12 = vweird.f32 %v4944_v4  ;;  %v5008_v34 = vpop.eup %3776 }
 0x174   :  { %v814_v54 = vmul.f32 %v3775_v6, %v813_v32  ;;  %vm817_vm0 = vweird.f32 %v3775_v6  ;;  %v1361_v29 = vmul.f32 %v4944_v4, %v1360_v7  ;;  %v1367_v16 = vand.u32 2147483647, %v4890_v58  ;;  %v3779_v37 = vpop.eup %3778  ;;  %vm1365_vm1 = vmor %vm1363_vm11, %vm1364_vm12 }
 0x175   :  { %3784 = vrcp.f32 %v4998_v31  ;;  %1861 = vmatmul.f32.gmra.mxu2 %v1767_v24  ;;  %1974 = vmatmul.f32.gmra.mxu3 %v1767_v24  ;;  %v3527_v38 = vmul.f32 -1.442695, %v5005_v33  ;;  %v1369_v26 = vand.u32 2147483648, %v4890_v58  ;;  %v5016_v39 = vadd.f32 %v4662_v61, %v284_v11  ;;  %vm818_vm14 = vmor %vm816_vm6, %vm817_vm0 }
 0x176   :  { %v815_v52 = vadd.f32 %v3775_v6, %v814_v54  ;;  %vm831_vm13 = vweird.f32 %v4985_v15  ;;  %v835_v45 = vand.u32 2147483647, %v4985_v15  ;;  %v1362_v46 = vadd.f32 %v4944_v4, %v1361_v29  ;;  %3511 = vmatmul.msk.f32.gmra.mxu1 %vm945_vm5, %v926_v36 }
 0x177   :  { %v3781_v48 = vpop.eup %3780  ;;  %v837_v49 = vand.u32 2147483648, %v4985_v15  ;;  %vm5026_vm15 = vcmp.eq.f32.partialorder %v1367_v16, 8.507059e+37  ;;  %v3483_v50 = vmul.f32 -1.442695, %v5016_v39  ;;  %v1374_v47 = vmul.f32 %v5008_v34, %v4949_v51 }
 0x178   :  { %v819_v57 = vsel %vm818_vm14, %v3775_v6, %v815_v52  ;;  %v827_v60 = vmul.f32 %v3781_v48, %v4985_v15  ;;  %3786 = vpow2.f32 %v3527_v38  ;;  %v1370_v44 = vor.u32 1.1754944e-38, %v1369_v26 }
 0x179   :  { %v1089_v17 = vpop.f32.mrf.mxu1  ;;  %v3783_v62 = vpop.eup %3782  ;;  %v824_v28 = vsel %vm4992_vm9, %v823_v43, %v819_v57  ;;  %v1366_v21 = vsel %vm1365_vm1, %v4944_v4, %v1362_v46  ;;  %3788 = vpow2.f32 %v3483_v50  ;;  %v5051_v3 = vadd.f32 1.0, %v3779_v37 }
 0x17a   :  { %v5042_v63 = vadd.f32 %v4627_v30, %v1089_v17  ;;  %v927_v1 = vmul.f32 %v824_v28, %v4881_v56  ;;  %v828_v2 = vsub.f32 1.0, %v827_v60  ;;  %v5045_v59 = vadd.f32 1.0, %v3783_v62 }
 0x17b   :  { %v1371_v58 = vsel %vm5026_vm15, %v1370_v44, %v1366_v21  ;;  %v5049_v41 = vpop.eup %3784  ;;  %v1375_v9 = vsub.f32 1.0, %v1374_v47  ;;  %v287_v10 = vpop.f32.mrf.mxu0  ;;  %vm832_vm2 = vweird.f32 %v3781_v48  ;;  %vm5055_vm3 = vcmp.eq.f32.partialorder %v835_v45, 8.507059e+37 }
 0x17c   :  { %v1768_v0 = vmul.f32 %v1371_v58, %v4825_v14  ;;  %v3528_v4 = vmul.f32 -1.442695, %v5042_v63  ;;  %v829_v43 = vmul.f32 %v3781_v48, %v828_v2  ;;  %3790 = vrcp.f32 %v5045_v59  ;;  %vm833_vm6 = vmor %vm831_vm13, %vm832_vm2 }
 0x17d   :  { %v838_v13 = vor.u32 1.1754944e-38, %v837_v49  ;;  %v1376_v6 = vmul.f32 %v5008_v34, %v1375_v9  ;;  %vm1379_vm4 = vweird.f32 %v5008_v34  ;;  %v1382_v25 = vand.u32 2147483647, %v4949_v51 }
 0x17e   :  { %1864 = vmatmul.f32.gmra.mxu2 %v1768_v0  ;;  %1977 = vmatmul.f32.gmra.mxu3 %v1768_v0  ;;  %3792 = vpow2.f32 %v3528_v4  ;;  %v3787_v14 = vpop.eup %3786  ;;  %v830_v18 = vadd.f32 %v3781_v48, %v829_v43  ;;  %v1384_v12 = vand.u32 2147483648, %v4949_v51  ;;  %v5065_v20 = vadd.f32 %v4662_v61, %v287_v10  ;;  %v5140_v43 = vld [vmem:[%s7166_s4] ss:$0 sm:$0xff] }
 0x17f   :  { %3512 = vmatmul.msk.f32.gmra.mxu1 %vm945_vm5, %v927_v1  ;;  %v3789_v22 = vpop.eup %3788  ;;  %3794 = vrcp.f32 %v5051_v3  ;;  %v850_v19 = vand.u32 2147483647, %v5045_v59  ;;  %v1377_v55 = vadd.f32 %v5008_v34, %v1376_v6  ;;  %vm1378_vm7 = vweird.f32 %v4949_v51 }
 0x180   :  { %v834_v7 = vsel %vm833_vm6, %v3781_v48, %v830_v18  ;;  %v852_v27 = vand.u32 2147483648, %v5045_v59  ;;  %v5076_v36 = vadd.f32 1.0, %v3789_v22  ;;  %vm5080_vm8 = vmor %vm1378_vm7, %vm1379_vm4  ;;  %v3484_v15 = vmul.f32 -1.442695, %v5065_v20 }
 0x181   :  { %v1092_v23 = vpop.f32.mrf.mxu1  ;;  %v839_v11 = vsel %vm5055_vm3, %v838_v13, %v834_v7  ;;  %v1381_v51 = vsel %vm5080_vm8, %v5008_v34, %v1377_v55  ;;  %v1385_v24 = vor.u32 1.1754944e-38, %v1384_v12  ;;  %vm846_vm9 = vweird.f32 %v5045_v59 }
 0x182   :  { %v5091_v54 = vadd.f32 %v4627_v30, %v1092_v23  ;;  %v3791_v29 = vpop.eup %3790  ;;  %v5094_v16 = vadd.f32 1.0, %v3787_v14  ;;  %3796 = vrcp.f32 %v5076_v36  ;;  %vm1383_vm10 = vcmp.eq.f32.partialorder %v1382_v25, 8.507059e+37 }
 0x183   :  { %v928_v38 = vmul.f32 %v839_v11, %v4925_v35  ;;  %v842_v26 = vmul.f32 %v3791_v29, %v5045_v59  ;;  %v867_v52 = vand.u32 2147483648, %v5076_v36  ;;  %v1386_v34 = vsel %vm1383_vm10, %v1385_v24, %v1381_v51  ;;  %v290_v47 = vpop.f32.mrf.mxu0 }
 0x184   :  { %v3793_v37 = vpop.eup %3792  ;;  %vm5100_vm11 = vcmp.eq.f32.partialorder %v850_v19, 8.507059e+37  ;;  %v853_v30 = vor.u32 1.1754944e-38, %v852_v27  ;;  %v1769_v46 = vmul.f32 %v1386_v34, %v4861_v53  ;;  %3798 = vpow2.f32 %v3484_v15 }
 0x185   :  { %v5105_v48 = vpop.eup %3794  ;;  %v843_v49 = vsub.f32 1.0, %v842_v26  ;;  %v865_v42 = vand.u32 2147483647, %v5076_v36  ;;  %v3529_v35 = vmul.f32 -1.442695, %v5091_v54  ;;  %v1389_v50 = vmul.f32 %v5049_v41, %v4998_v31 }
 0x186   :  { %vm847_vm12 = vweird.f32 %v3791_v29  ;;  %3800 = vrcp.f32 %v5094_v16  ;;  %v5112_v57 = vor.u32 1.1754944e-38, %v867_v52  ;;  %v5114_v60 = vadd.f32 1.0, %v3793_v37  ;;  %1867 = vmatmul.f32.gmra.mxu2 %v1769_v46  ;;  %1980 = vmatmul.f32.gmra.mxu3 %v1769_v46 }
 0x187   :  { %v844_v53 = vmul.f32 %v3791_v29, %v843_v49  ;;  %vm861_vm0 = vweird.f32 %v5076_v36  ;;  %3802 = vpow2.f32 %v3529_v35  ;;  %v1390_v44 = vsub.f32 1.0, %v1389_v50  ;;  %3513 = vmatmul.msk.f32.gmra.mxu1 %vm945_vm5, %v928_v38  ;;  %vm848_vm1 = vmor %vm846_vm9, %vm847_vm12 }
 0x188   :  { %vm1393_vm13 = vweird.f32 %v4998_v31  ;;  %v3797_v17 = vpop.eup %3796  ;;  %vm1394_vm14 = vweird.f32 %v5049_v41  ;;  %v1397_v62 = vand.u32 2147483647, %v4998_v31  ;;  %v5122_v28 = vadd.f32 %v4662_v61, %v290_v47 }
 0x189   :  { %v1095_v21 = vpop.f32.mrf.mxu1  ;;  %v1404_v1 = vmul.f32 %v5105_v48, %v5051_v3  ;;  %v845_v2 = vadd.f32 %v3791_v29, %v844_v53  ;;  %v857_v58 = vmul.f32 %v3797_v17, %v5076_v36  ;;  %vm5127_vm15 = vcmp.eq.f32.partialorder %v865_v42, 8.507059e+37  ;;  %vm1395_vm3 = vmor %vm1393_vm13, %vm1394_vm14 }
 0x18a   :  { %v1391_v4 = vmul.f32 %v5049_v41, %v1390_v44  ;;  %v1399_v9 = vand.u32 2147483648, %v4998_v31  ;;  %v3799_v10 = vpop.eup %3798  ;;  %vm862_vm2 = vweird.f32 %v3797_v17  ;;  %v3485_v61 = vmul.f32 -1.442695, %v5122_v28 }
 0x18b   :  { %v5143_v56 = vadd.f32 %v5140_v43, %v1095_v21  ;;  %v1405_v13 = vsub.f32 1.0, %v1404_v1  ;;  %v849_v6 = vsel %vm848_vm1, %v3791_v29, %v845_v2  ;;  %v858_v14 = vsub.f32 1.0, %v857_v58  ;;  %vm863_vm7 = vmor %vm861_vm0, %vm862_vm2 }
 0x18c   :  { %v5145_v18 = vadd.f32 1.0, %v3799_v10  ;;  %v1392_v25 = vadd.f32 %v5049_v41, %v1391_v4  ;;  %v5148_v59 = vpop.eup %3800  ;;  %v854_v12 = vsel %vm5100_vm11, %v853_v30, %v849_v6  ;;  %3804 = vpow2.f32 %v3485_v61 }
 0x18d   :  { %v3530_v22 = vmul.f32 -1.442695, %v5143_v56  ;;  %v1406_v19 = vmul.f32 %v5105_v48, %v1405_v13  ;;  %v3803_v55 = vpop.eup %3802  ;;  %v929_v7 = vmul.f32 %v854_v12, %v4967_v8  ;;  %v859_v27 = vmul.f32 %v3797_v17, %v858_v14 }
 0x18e   :  { %3806 = vrcp.f32 %v5145_v18  ;;  %v1400_v32 = vor.u32 1.1754944e-38, %v1399_v9  ;;  %v1396_v15 = vsel %vm1395_vm3, %v5049_v41, %v1392_v25  ;;  %vm1398_vm4 = vcmp.eq.f32.partialorder %v1397_v62, 8.507059e+37 }
 0x18f   :  { %3808 = vrcp.f32 %v5114_v60  ;;  %vm1408_vm6 = vweird.f32 %v5051_v3  ;;  %v860_v23 = vadd.f32 %v3797_v17, %v859_v27  ;;  %v1407_v8 = vadd.f32 %v5105_v48, %v1406_v19  ;;  %3514 = vmatmul.msk.f32.gmra.mxu1 %vm945_vm5, %v929_v7 }
 0x190   :  { %v1401_v11 = vsel %vm1398_vm4, %v1400_v32, %v1396_v15  ;;  %3810 = vpow2.f32 %v3530_v22  ;;  %v880_v31 = vand.u32 2147483647, %v5145_v18  ;;  %v882_v51 = vand.u32 2147483648, %v5145_v18 }
 0x191   :  { %v5170_v24 = vadd.f32 1.0, %v3803_v55  ;;  %v1770_v41 = vmul.f32 %v1401_v11, %v4918_v5  ;;  %v1098_v29 = vpop.f32.mrf.mxu1  ;;  %v864_v37 = vsel %vm863_vm7, %v3797_v17, %v860_v23  ;;  %vm1409_vm8 = vweird.f32 %v5105_v48 }
 0x192   :  { %v1412_v38 = vand.u32 2147483647, %v5051_v3  ;;  %v1414_v26 = vand.u32 2147483648, %v5051_v3  ;;  %v3805_v52 = vpop.eup %3804  ;;  %v869_v36 = vsel %vm5127_vm15, %v5112_v57, %v864_v37  ;;  %vm876_vm9 = vweird.f32 %v5145_v18  ;;  %vm5182_vm10 = vmor %vm1408_vm6, %vm1409_vm8 }
 0x193   :  { %1870 = vmatmul.f32.gmra.mxu2 %v1770_v41  ;;  %1983 = vmatmul.f32.gmra.mxu3 %v1770_v41  ;;  %v5187_v34 = vadd.f32 %v5140_v43, %v1098_v29  ;;  %v930_v30 = vmul.f32 %v869_v36, %v5016_v39  ;;  %v5190_v46 = vadd.f32 1.0, %v3805_v52  ;;  %v1411_v49 = vsel %vm5182_vm10, %v5105_v48, %v1407_v8 }
 0x194   :  { %v3807_v45 = vpop.eup %3806  ;;  %v1419_v42 = vmul.f32 %v5148_v59, %v5094_v16  ;;  %3812 = vrcp.f32 %v5170_v24  ;;  %v1415_v50 = vor.u32 1.1754944e-38, %v1414_v26  ;;  %vm5202_vm11 = vcmp.eq.f32.partialorder %v880_v31, 8.507059e+37 }
 0x195   :  { %v5197_v3 = vpop.eup %3808  ;;  %v872_v35 = vmul.f32 %v3807_v45, %v5145_v18  ;;  %v3531_v47 = vmul.f32 -1.442695, %v5187_v34  ;;  %v883_v53 = vor.u32 1.1754944e-38, %v882_v51  ;;  %3814 = vrcp.f32 %v5190_v46 }
 0x196   :  { %v3811_v57 = vpop.eup %3810  ;;  %vm1413_vm12 = vcmp.eq.f32.partialorder %v1412_v38, 8.507059e+37  ;;  %vm877_vm0 = vweird.f32 %v3807_v45  ;;  %v1420_v21 = vsub.f32 1.0, %v1419_v42  ;;  %vm1423_vm13 = vweird.f32 %v5094_v16 }
 0x197   :  { %v873_v48 = vsub.f32 1.0, %v872_v35  ;;  %v5207_v44 = vadd.f32 1.0, %v3811_v57  ;;  %v1416_v17 = vsel %vm1413_vm12, %v1415_v50, %v1411_v49  ;;  %3816 = vpow2.f32 %v3531_v47  ;;  %3515 = vmatmul.msk.f32.gmra.mxu1 %vm945_vm5, %v930_v30  ;;  %vm878_vm2 = vmor %vm876_vm9, %vm877_vm0 }
 0x198   :  { %v1771_v62 = vmul.f32 %v1416_v17, %v4955_v40  ;;  %v895_v2 = vand.u32 2147483647, %v5190_v46  ;;  %vm1424_vm14 = vweird.f32 %v5148_v59  ;;  %v1427_v58 = vand.u32 2147483647, %v5094_v16 }
 0x199   :  { %v874_v1 = vmul.f32 %v3807_v45, %v873_v48  ;;  %v1101_v0 = vpop.f32.mrf.mxu1  ;;  %v1421_v4 = vmul.f32 %v5148_v59, %v1420_v21  ;;  %v1429_v9 = vand.u32 2147483648, %v5094_v16  ;;  %v1434_v40 = vmul.f32 %v5197_v3, %v5114_v60  ;;  %vm1425_vm4 = vmor %vm1423_vm13, %vm1424_vm14 }
 0x19a   :  { %v5218_v10 = vadd.f32 %v5140_v43, %v1101_v0  ;;  %v5222_v61 = vpop.eup %3812  ;;  %vm891_vm15 = vweird.f32 %v5190_v46  ;;  %v897_v6 = vand.u32 2147483648, %v5190_v46  ;;  %3818 = vrcp.f32 %v5207_v44 }
 0x19b   :  { %v875_v13 = vadd.f32 %v3807_v45, %v874_v1  ;;  %1873 = vmatmul.f32.gmra.mxu2 %v1771_v62  ;;  %1986 = vmatmul.f32.gmra.mxu3 %v1771_v62  ;;  %vm5227_vm1 = vcmp.eq.f32.partialorder %v1427_v58, 8.507059e+37  ;;  %v3815_v25 = vpop.eup %3814  ;;  %v1422_v12 = vadd.f32 %v5148_v59, %v1421_v4  ;;  %v1435_v19 = vsub.f32 1.0, %v1434_v40 }
 0x19c   :  { %v3532_v22 = vmul.f32 -1.442695, %v5218_v10  ;;  %vm1439_vm3 = vweird.f32 %v5197_v3  ;;  %v887_v27 = vmul.f32 %v3815_v25, %v5190_v46  ;;  %v1430_v32 = vor.u32 1.1754944e-38, %v1429_v9 }
 0x19d   :  { %v3817_v55 = vpop.eup %3816  ;;  %v879_v7 = vsel %vm878_vm2, %v3807_v45, %v875_v13  ;;  %v1442_v18 = vand.u32 2147483647, %v5114_v60  ;;  %v1426_v11 = vsel %vm1425_vm4, %v5148_v59, %v1422_v12  ;;  %v1436_v16 = vmul.f32 %v5197_v3, %v1435_v19 }
 0x19e   :  { %v884_v15 = vsel %vm5202_vm11, %v883_v53, %v879_v7  ;;  %v5245_v23 = vadd.f32 1.0, %v3817_v55  ;;  %3820 = vpow2.f32 %v3532_v22  ;;  %v888_v31 = vsub.f32 1.0, %v887_v27 }
 0x19f   :  { %v931_v8 = vmul.f32 %v884_v15, %v5065_v20  ;;  %v1431_v51 = vsel %vm5227_vm1, %v1430_v32, %v1426_v11  ;;  %vm1438_vm6 = vweird.f32 %v5114_v60  ;;  %v1444_v29 = vand.u32 2147483648, %v5114_v60 }
 0x1a0   :  { %3822 = vrcp.f32 %v5245_v23  ;;  %v1772_v41 = vmul.f32 %v1431_v51, %v5005_v33  ;;  %v5256_v37 = vpop.eup %3818  ;;  %v889_v59 = vmul.f32 %v3815_v25, %v888_v31  ;;  %vm892_vm7 = vweird.f32 %v3815_v25  ;;  %vm1440_vm9 = vmor %vm1438_vm6, %vm1439_vm3 }
 0x1a1   :  { %v1437_v20 = vadd.f32 %v5197_v3, %v1436_v16  ;;  %3516 = vmatmul.msk.f32.gmra.mxu1 %vm945_vm5, %v931_v8  ;;  %v1104_v38 = vpop.f32.mrf.mxu1  ;;  %v1449_v26 = vmul.f32 %v5222_v61, %v5170_v24  ;;  %vm5262_vm8 = vcmp.eq.f32.partialorder %v895_v2, 8.507059e+37  ;;  %v898_v33 = vor.u32 1.1754944e-38, %v897_v6  ;;  %vm893_vm11 = vmor %vm891_vm15, %vm892_vm7 }
 0x1a2   :  { %v1445_v60 = vor.u32 1.1754944e-38, %v1444_v29  ;;  %v5269_v36 = vadd.f32 %v5140_v43, %v1104_v38  ;;  %v890_v5 = vadd.f32 %v3815_v25, %v889_v59  ;;  %vm1443_vm10 = vcmp.eq.f32.partialorder %v1442_v18, 8.507059e+37 }
 0x1a3   :  { %1876 = vmatmul.f32.gmra.mxu2 %v1772_v41  ;;  %1989 = vmatmul.f32.gmra.mxu3 %v1772_v41  ;;  %v1441_v45 = vsel %vm1440_vm9, %v5197_v3, %v1437_v20  ;;  %v1450_v30 = vsub.f32 1.0, %v1449_v26  ;;  %vm1453_vm12 = vweird.f32 %v5170_v24  ;;  %v1464_v50 = vmul.f32 %v5256_v37, %v5207_v44 }
 0x1a4   :  { %v3821_v49 = vpop.eup %3820  ;;  %v1446_v42 = vsel %vm1443_vm10, %v1445_v60, %v1441_v45  ;;  %v3533_v35 = vmul.f32 -1.442695, %v5269_v36  ;;  %v894_v47 = vsel %vm893_vm11, %v3815_v25, %v890_v5  ;;  %vm1454_vm0 = vweird.f32 %v5222_v61 }
 0x1a5   :  { %v5279_v57 = vadd.f32 1.0, %v3821_v49  ;;  %v1451_v3 = vmul.f32 %v5222_v61, %v1450_v30  ;;  %v899_v46 = vsel %vm5262_vm8, %v898_v33, %v894_v47  ;;  %v1459_v53 = vand.u32 2147483648, %v5170_v24  ;;  %vm1455_vm13 = vmor %vm1453_vm12, %vm1454_vm0 }
 0x1a6   :  { %v5283_v39 = vpop.eup %3822  ;;  %3824 = vpow2.f32 %v3533_v35  ;;  %v1465_v48 = vsub.f32 1.0, %v1464_v50  ;;  %v932_v17 = vmul.f32 %v899_v46, %v5122_v28  ;;  %v1773_v62 = vmul.f32 %v1446_v42, %v5042_v63 }
 0x1a7   :  { %v1452_v21 = vadd.f32 %v5222_v61, %v1451_v3  ;;  %v1457_v1 = vand.u32 2147483647, %v5170_v24  ;;  %3826 = vrcp.f32 %v5279_v57  ;;  %v1479_v28 = vmul.f32 %v5283_v39, %v5245_v23 }
 0x1a8   :  { %v1466_v0 = vmul.f32 %v5256_v37, %v1465_v48  ;;  %v1460_v63 = vor.u32 1.1754944e-38, %v1459_v53  ;;  %v1474_v25 = vand.u32 2147483648, %v5207_v44  ;;  %vm1468_vm15 = vweird.f32 %v5207_v44 }
 0x1a9   :  { %v1456_v2 = vsel %vm1455_vm13, %v5222_v61, %v1452_v21  ;;  %3517 = vmatmul.msk.f32.gmra.mxu1 %vm945_vm5, %v932_v17  ;;  %v1107_v58 = vpop.f32.mrf.mxu1  ;;  %vm1458_vm14 = vcmp.eq.f32.partialorder %v1457_v1, 8.507059e+37  ;;  %vm1469_vm5 = vweird.f32 %v5256_v37  ;;  %v1480_v6 = vsub.f32 1.0, %v1479_v28 }
 0x1aa   :  { %v5301_v4 = vadd.f32 %v5140_v43, %v1107_v58  ;;  %v1461_v24 = vsel %vm1458_vm14, %v1460_v63, %v1456_v2  ;;  %v1467_v13 = vadd.f32 %v5256_v37, %v1466_v0  ;;  %v1472_v22 = vand.u32 2147483647, %v5207_v44  ;;  %vm1470_vm1 = vmor %vm1468_vm15, %vm1469_vm5 }
 0x1ab   :  { %1879 = vmatmul.f32.gmra.mxu2 %v1773_v62  ;;  %1992 = vmatmul.f32.gmra.mxu3 %v1773_v62  ;;  %v1774_v12 = vmul.f32 %v1461_v24, %v5091_v54  ;;  %v1481_v7 = vmul.f32 %v5283_v39, %v1480_v6  ;;  %v1475_v32 = vor.u32 1.1754944e-38, %v1474_v25  ;;  %vm1484_vm3 = vweird.f32 %v5283_v39 }
 0x1ac   :  { %v3825_v9 = vpop.eup %3824  ;;  %v3534_v40 = vmul.f32 -1.442695, %v5301_v4  ;;  %v1471_v19 = vsel %vm1470_vm1, %v5256_v37, %v1467_v13  ;;  %vm1473_vm2 = vcmp.eq.f32.partialorder %v1472_v22, 8.507059e+37  ;;  %v1489_v16 = vand.u32 2147483648, %v5245_v23 }
 0x1ad   :  { %v5304_v61 = vadd.f32 1.0, %v3825_v9  ;;  %v5308_v14 = vpop.eup %3826  ;;  %v1476_v44 = vsel %vm1473_vm2, %v1475_v32, %v1471_v19  ;;  %v1482_v8 = vadd.f32 %v5283_v39, %v1481_v7  ;;  %vm1483_vm4 = vweird.f32 %v5245_v23 }
 0x1ae   :  { %3828 = vpow2.f32 %v3534_v40  ;;  %v1494_v27 = vmul.f32 %v5308_v14, %v5279_v57  ;;  %v1775_v41 = vmul.f32 %v1476_v44, %v5143_v56  ;;  %v1487_v29 = vand.u32 2147483647, %v5245_v23  ;;  %vm1485_vm6 = vmor %vm1483_vm4, %vm1484_vm3 }
 0x1af   :  { %3830 = vrcp.f32 %v5304_v61  ;;  %v1486_v37 = vsel %vm1485_vm6, %v5283_v39, %v1482_v8  ;;  %v1490_v26 = vor.u32 1.1754944e-38, %v1489_v16  ;;  %vm1499_vm8 = vweird.f32 %v5308_v14  ;;  %v1827_v39 = vld [vmem:[%s7168_s6] sm:$0x3] }
 0x1b0   :  { %v1495_v31 = vsub.f32 1.0, %v1494_v27  ;;  %vm1488_vm7 = vcmp.eq.f32.partialorder %v1487_v29, 8.507059e+37  ;;  %v1504_v49 = vand.u32 2147483648, %v5279_v57  ;;  %vm1498_vm9 = vweird.f32 %v5279_v57 }
 0x1b1   :  { %v1110_v55 = vpop.f32.mrf.mxu1  ;;  %v1491_v23 = vsel %vm1488_vm7, %v1490_v26, %v1486_v37  ;;  %v1502_v35 = vand.u32 2147483647, %v5279_v57  ;;  %vm1500_vm10 = vmor %vm1498_vm9, %vm1499_vm8  ;;  %v5364_v62 = vperm.slane %v1827_v39, 0  ;;  %vm1513_vm0 = vweird.f32 %v5304_v61 }
 0x1b2   :  { %v5320_v18 = vadd.f32 %v5140_v43, %v1110_v55  ;;  %v1496_v20 = vmul.f32 %v5308_v14, %v1495_v31  ;;  %v1776_v42 = vmul.f32 %v1491_v23, %v5187_v34  ;;  %v1505_v53 = vor.u32 1.1754944e-38, %v1504_v49 }
 0x1b3   :  { %1882 = vmatmul.f32.gmra.mxu2 %v1774_v12  ;;  %1995 = vmatmul.f32.gmra.mxu3 %v1774_v12  ;;  %vm1503_vm11 = vcmp.eq.f32.partialorder %v1502_v35, 8.507059e+37  ;;  %v1519_v0 = vand.u32 2147483648, %v5304_v61  ;;  %v1517_v63 = vand.u32 2147483647, %v5304_v61  ;;  %v5385_v22 = vperm.slane %v1827_v39, 1 }
 0x1b4   :  { %v3829_v54 = vpop.eup %3828  ;;  %v3535_v15 = vmul.f32 -1.442695, %v5320_v18  ;;  %v1497_v5 = vadd.f32 %v5308_v14, %v1496_v20 }
 0x1b5   :  { %v5323_v11 = vadd.f32 1.0, %v3829_v54  ;;  %v5327_v51 = vpop.eup %3830  ;;  %vm1518_vm14 = vcmp.eq.f32.partialorder %v1517_v63, 8.507059e+37 }
 0x1b6   :  { %3832 = vpow2.f32 %v3535_v15  ;;  %v1509_v38 = vmul.f32 %v5327_v51, %v5304_v61  ;;  %v1501_v50 = vsel %vm1500_vm10, %v5308_v14, %v1497_v5  ;;  %vm1514_vm12 = vweird.f32 %v5327_v51 }
 0x1b7   :  { %3834 = vrcp.f32 %v5323_v11  ;;  %v1506_v48 = vsel %vm1503_vm11, %v1505_v53, %v1501_v50  ;;  %vm1515_vm13 = vmor %vm1513_vm0, %vm1514_vm12  ;;  %v1520_v14 = vor.u32 1.1754944e-38, %v1519_v0  ;;  %v1532_v15 = vand.u32 2147483647, %v5323_v11 }
 0x1b8   :  { %v1510_v45 = vsub.f32 1.0, %v1509_v38  ;;  %v1777_v28 = vmul.f32 %v1506_v48, %v5218_v10  ;;  %v1534_v8 = vand.u32 2147483648, %v5323_v11  ;;  %vm1528_vm15 = vweird.f32 %v5323_v11 }
 0x1b9   :  { %v1113_v59 = vpop.f32.mrf.mxu1  ;;  %vm1533_vm2 = vcmp.eq.f32.partialorder %v1532_v15, 8.507059e+37 }
 0x1ba   :  { %v5339_v52 = vadd.f32 %v5140_v43, %v1113_v59  ;;  %v1511_v3 = vmul.f32 %v5327_v51, %v1510_v45  ;;  %v1535_v26 = vor.u32 1.1754944e-38, %v1534_v8 }
 0x1bb   :  { %1885 = vmatmul.f32.gmra.mxu2 %v1775_v41  ;;  %1998 = vmatmul.f32.gmra.mxu3 %v1775_v41 }
 0x1bc   :  { %v3833_v56 = vpop.eup %3832  ;;  %v3536_v33 = vmul.f32 -1.442695, %v5339_v52  ;;  %v1512_v2 = vadd.f32 %v5327_v51, %v1511_v3 }
 0x1bd   :  { %v5342_v60 = vadd.f32 1.0, %v3833_v56  ;;  %v5346_v30 = vpop.eup %3834 }
 0x1be   :  { %3836 = vpow2.f32 %v3536_v33  ;;  %v1524_v46 = vmul.f32 %v5346_v30, %v5323_v11  ;;  %v1516_v13 = vsel %vm1515_vm13, %v5327_v51, %v1512_v2  ;;  %vm1529_vm5 = vweird.f32 %v5346_v30 }
 0x1bf   :  { %3838 = vrcp.f32 %v5342_v60  ;;  %v1521_v55 = vsel %vm1518_vm14, %v1520_v14, %v1516_v13  ;;  %vm5408_vm1 = vmor %vm1528_vm15, %vm1529_vm5  ;;  %v1549_v11 = vand.u32 2147483648, %v5342_v60  ;;  %vm1543_vm4 = vweird.f32 %v5342_v60 }
 0x1c0   :  { %v1525_v58 = vsub.f32 1.0, %v1524_v46  ;;  %v1778_v16 = vmul.f32 %v1521_v55, %v5269_v36  ;;  %v1547_v49 = vand.u32 2147483647, %v5342_v60 }
 0x1c1   :  { %v1116_v47 = vpop.f32.mrf.mxu1 }
 0x1c2   :  { %v5361_v34 = vadd.f32 %v5140_v43, %v1116_v47  ;;  %v1526_v6 = vmul.f32 %v5346_v30, %v1525_v58  ;;  %vm1548_vm8 = vcmp.eq.f32.partialorder %v1547_v49, 8.507059e+37 }
 0x1c3   :  { %1888 = vmatmul.f32.gmra.mxu2 %v1776_v42  ;;  %2001 = vmatmul.f32.gmra.mxu3 %v1776_v42 }
 0x1c4   :  { %v3837_v57 = vpop.eup %3836  ;;  %v3537_v17 = vmul.f32 -1.442695, %v5361_v34  ;;  %v1527_v54 = vadd.f32 %v5346_v30, %v1526_v6 }
 0x1c5   :  { %v5366_v21 = vpop.eup %3838  ;;  %v5368_v1 = vadd.f32 1.0, %v3837_v57  ;;  %v1550_v57 = vor.u32 1.1754944e-38, %v1549_v11 }
 0x1c6   :  { %3840 = vpow2.f32 %v3537_v17  ;;  %v1539_v24 = vmul.f32 %v5366_v21, %v5342_v60  ;;  %v1531_v20 = vsel %vm5408_vm1, %v5346_v30, %v1527_v54  ;;  %vm1544_vm3 = vweird.f32 %v5366_v21 }
 0x1c7   :  { %3842 = vrcp.f32 %v5368_v1  ;;  %v1850_v9 = vpop.f32.mrf.mxu0  ;;  %v1536_v5 = vsel %vm1533_vm2, %v1535_v26, %v1531_v20  ;;  %vm5431_vm6 = vmor %vm1543_vm4, %vm1544_vm3  ;;  %v1562_v47 = vand.u32 2147483647, %v5368_v1  ;;  %v1564_v3 = vand.u32 2147483648, %v5368_v1 }
 0x1c8   :  { %v5380_v40 = vadd.f32 %v1850_v9, %v5364_v62  ;;  %v1540_v61 = vsub.f32 1.0, %v1539_v24  ;;  %v1779_v53 = vmul.f32 %v1536_v5, %v5301_v4  ;;  %vm1558_vm9 = vweird.f32 %v5368_v1 }
 0x1c9   :  { %vm5451_vm10 = vcmp.eq.f32.partialorder %v1562_v47, 8.507059e+37  ;;  %v1565_v63 = vor.u32 1.1754944e-38, %v1564_v3 }
 0x1ca   :  { %v3550_v25 = vmul.f32 -1.442695, %v5380_v40  ;;  %v1119_v12 = vpop.f32.mrf.mxu1  ;;  %v1541_v41 = vmul.f32 %v5366_v21, %v1540_v61 }
 0x1cb   :  { %1891 = vmatmul.f32.gmra.mxu2 %v1777_v28  ;;  %2004 = vmatmul.f32.gmra.mxu3 %v1777_v28  ;;  %v5388_v10 = vadd.f32 %v5140_v43, %v1119_v12 }
 0x1cc   :  { %v3841_v19 = vpop.eup %3840  ;;  %3844 = vpow2.f32 %v3550_v25  ;;  %v1542_v33 = vadd.f32 %v5366_v21, %v1541_v41 }
 0x1cd   :  { %v5390_v7 = vpop.eup %3842  ;;  %v5392_v27 = vadd.f32 1.0, %v3841_v19  ;;  %v3538_v32 = vmul.f32 -1.442695, %v5388_v10  ;;  %v1963_v44 = vpop.f32.mrf.mxu3 }
 0x1ce   :  { %v5400_v31 = vadd.f32 %v1963_v44, %v5385_v22  ;;  %v1554_v51 = vmul.f32 %v5390_v7, %v5368_v1  ;;  %v1546_v60 = vsel %vm5431_vm6, %v5366_v21, %v1542_v33  ;;  %vm1559_vm7 = vweird.f32 %v5390_v7 }
 0x1cf   :  { %3846 = vrcp.f32 %v5392_v27  ;;  %v1551_v4 = vsel %vm1548_vm8, %v1550_v57, %v1546_v60  ;;  %v1579_v9 = vand.u32 2147483648, %v5392_v27  ;;  %vm5459_vm11 = vmor %vm1558_vm9, %vm1559_vm7  ;;  %vm1573_vm12 = vweird.f32 %v5392_v27 }
 0x1d0   :  { %3848 = vpow2.f32 %v3538_v32  ;;  %v3551_v37 = vmul.f32 -1.442695, %v5400_v31  ;;  %v1555_v59 = vsub.f32 1.0, %v1554_v51  ;;  %v1577_v14 = vand.u32 2147483647, %v5392_v27 }
 0x1d1   :  { %v1780_v54 = vmul.f32 %v1551_v4, %v5320_v18  ;;  %v1580_v41 = vor.u32 1.1754944e-38, %v1579_v9 }
 0x1d2   :  { %v3845_v38 = vpop.eup %3844  ;;  %3850 = vpow2.f32 %v3551_v37  ;;  %v1122_v36 = vpop.f32.mrf.mxu1  ;;  %v1556_v45 = vmul.f32 %v5390_v7, %v1555_v59  ;;  %vm5492_vm13 = vcmp.eq.f32.partialorder %v1577_v14, 8.507059e+37 }
 0x1d3   :  { %1894 = vmatmul.f32.gmra.mxu2 %v1778_v16  ;;  %2007 = vmatmul.f32.gmra.mxu3 %v1778_v16  ;;  %v5417_v56 = vadd.f32 1.0, %v3845_v38  ;;  %v5420_v23 = vadd.f32 %v5140_v43, %v1122_v36 }
 0x1d4   :  { %v1557_v17 = vadd.f32 %v5390_v7, %v1556_v45 }
 0x1d5   :  { %v5425_v30 = vpop.eup %3846  ;;  %3852 = vrcp.f32 %v5417_v56  ;;  %v3539_v35 = vmul.f32 -1.442695, %v5420_v23  ;;  %v2324_v55 = vand.u32 2147483647, %v5417_v56  ;;  %v2326_v32 = vand.u32 2147483648, %v5417_v56 }
 0x1d6   :  { %v3849_v42 = vpop.eup %3848  ;;  %v1569_v39 = vmul.f32 %v5425_v30, %v5392_v27  ;;  %v1561_v19 = vsel %vm5459_vm11, %v5390_v7, %v1557_v17  ;;  %vm1574_vm0 = vweird.f32 %v5425_v30  ;;  %vm2320_vm14 = vweird.f32 %v5417_v56 }
 0x1d7   :  { %v5439_v46 = vadd.f32 1.0, %v3849_v42  ;;  %3854 = vpow2.f32 %v3539_v35  ;;  %v1566_v7 = vsel %vm5451_vm10, %v1565_v63, %v1561_v19  ;;  %vm5497_vm15 = vcmp.eq.f32.partialorder %v2324_v55, 8.507059e+37  ;;  %vm5510_vm1 = vmor %vm1573_vm12, %vm1574_vm0 }
 0x1d8   :  { %v3851_v48 = vpop.eup %3850  ;;  %v1570_v2 = vsub.f32 1.0, %v1569_v39  ;;  %v1853_v0 = vpop.f32.mrf.mxu2  ;;  %v2327_v36 = vor.u32 1.1754944e-38, %v2326_v32  ;;  %v1781_v49 = vmul.f32 %v1566_v7, %v5339_v52 }
 0x1d9   :  { %3856 = vrcp.f32 %v5439_v46  ;;  %v5448_v58 = vadd.f32 1.0, %v3851_v48  ;;  %v1966_v28 = vpop.f32.mrf.mxu3  ;;  %v5468_v12 = vadd.f32 %v1853_v0, %v5364_v62  ;;  %vm1588_vm4 = vweird.f32 %v5439_v46 }
 0x1da   :  { %v1125_v13 = vpop.f32.mrf.mxu1  ;;  %v1571_v6 = vmul.f32 %v5425_v30, %v1570_v2  ;;  %v5471_v61 = vadd.f32 %v1966_v28, %v5385_v22  ;;  %v1592_v63 = vand.u32 2147483647, %v5439_v46  ;;  %v1594_v9 = vand.u32 2147483648, %v5439_v46 }
 0x1db   :  { %v3853_v24 = vpop.eup %3852  ;;  %1897 = vmatmul.f32.gmra.mxu2 %v1779_v53  ;;  %2010 = vmatmul.f32.gmra.mxu3 %v1779_v53  ;;  %3858 = vrcp.f32 %v5448_v58  ;;  %v5480_v44 = vadd.f32 %v5140_v43, %v1125_v13  ;;  %v3552_v51 = vmul.f32 -1.442695, %v5468_v12  ;;  %v2339_v42 = vand.u32 2147483647, %v5448_v58 }
 0x1dc   :  { %v2316_v25 = vmul.f32 %v3853_v24, %v5417_v56  ;;  %v3553_v16 = vmul.f32 -1.442695, %v5471_v61  ;;  %v1572_v59 = vadd.f32 %v5425_v30, %v1571_v6  ;;  %vm2321_vm5 = vweird.f32 %v3853_v24 }
 0x1dd   :  { %v3855_v15 = vpop.eup %3854  ;;  %3860 = vpow2.f32 %v3552_v51  ;;  %v3540_v11 = vmul.f32 -1.442695, %v5480_v44  ;;  %vm2322_vm2 = vmor %vm2320_vm14, %vm2321_vm5  ;;  %v2341_v35 = vand.u32 2147483648, %v5448_v58  ;;  %vm2335_vm6 = vweird.f32 %v5448_v58 }
 0x1de   :  { %v2317_v8 = vsub.f32 1.0, %v2316_v25  ;;  %v5486_v37 = vadd.f32 1.0, %v3855_v15  ;;  %3862 = vpow2.f32 %v3553_v16  ;;  %v1576_v52 = vsel %vm5510_vm1, %v5425_v30, %v1572_v59 }
 0x1df   :  { %v5484_v29 = vpop.eup %3856  ;;  %vm2340_vm8 = vcmp.eq.f32.partialorder %v2339_v42, 8.507059e+37  ;;  %v2342_v6 = vor.u32 1.1754944e-38, %v2341_v35  ;;  %vm5552_vm9 = vcmp.eq.f32.partialorder %v1592_v63, 8.507059e+37  ;;  %v1595_v51 = vor.u32 1.1754944e-38, %v1594_v9 }
 0x1e0   :  { %v2318_v20 = vmul.f32 %v3853_v24, %v2317_v8  ;;  %v1584_v33 = vmul.f32 %v5484_v29, %v5439_v46  ;;  %3864 = vrcp.f32 %v5486_v37  ;;  %vm1589_vm10 = vweird.f32 %v5484_v29 }
 0x1e1   :  { %v3859_v38 = vpop.eup %3858  ;;  %3866 = vpow2.f32 %v3540_v11  ;;  %vm5591_vm0 = vmor %vm1588_vm4, %vm1589_vm10 }
 0x1e2   :  { %v2319_v5 = vadd.f32 %v3853_v24, %v2318_v20  ;;  %v2331_v45 = vmul.f32 %v3859_v38, %v5448_v58  ;;  %v1856_v50 = vpop.f32.mrf.mxu2  ;;  %v1969_v47 = vpop.f32.mrf.mxu3  ;;  %vm2336_vm3 = vweird.f32 %v3859_v38  ;;  %v1585_v48 = vsub.f32 1.0, %v1584_v33 }
 0x1e3   :  { %1900 = vmatmul.f32.gmra.mxu2 %v1780_v54  ;;  %2013 = vmatmul.f32.gmra.mxu3 %v1780_v54  ;;  %v5521_v39 = vadd.f32 %v1856_v50, %v5364_v62  ;;  %v5524_v53 = vadd.f32 %v1969_v47, %v5385_v22  ;;  %v1128_v60 = vpop.f32.mrf.mxu1  ;;  %v3861_v17 = vpop.eup %3860  ;;  %vm2337_vm7 = vmor %vm2335_vm6, %vm2336_vm3  ;;  %v1609_v58 = vand.u32 2147483648, %v5486_v37  ;;  %vm1603_vm6 = vweird.f32 %v5486_v37 }
 0x1e4   :  { %v2323_v27 = vsel %vm2322_vm2, %v3853_v24, %v2319_v5  ;;  %v2332_v3 = vsub.f32 1.0, %v2331_v45  ;;  %v5531_v28 = vadd.f32 1.0, %v3861_v17  ;;  %v5534_v21 = vadd.f32 %v5140_v43, %v1128_v60  ;;  %v3863_v24 = vpop.eup %3862 }
 0x1e5   :  { %v2328_v57 = vsel %vm5497_vm15, %v2327_v36, %v2323_v27  ;;  %v3554_v30 = vmul.f32 -1.442695, %v5521_v39  ;;  %v3555_v0 = vmul.f32 -1.442695, %v5524_v53  ;;  %v1586_v14 = vmul.f32 %v5484_v29, %v1585_v48  ;;  %v5662_v27 = vld [vmem:[%s7166_s4] ss:$0 sm:$0xff] }
 0x1e6   :  { %v3275_v2 = vmul.f32 %v2328_v57, %v5380_v40  ;;  %v2333_v4 = vmul.f32 %v3859_v38, %v2332_v3  ;;  %v1581_v40 = vsel %vm5492_vm13, %v1580_v41, %v1576_v52  ;;  %v5542_v1 = vpop.eup %3864  ;;  %v5547_v19 = vadd.f32 1.0, %v3863_v24  ;;  %s4208_s4 = smov [#allocation5]  }
 0x1e7   :  { %3868 = vpow2.f32 %v3554_v30  ;;  %v3867_v55 = vpop.eup %3866  ;;  %v3541_v54 = vmul.f32 -1.442695, %v5534_v21  ;;  %v1782_v15 = vmul.f32 %v1581_v40, %v5361_v34  ;;  %v2354_v41 = vand.u32 2147483647, %v5531_v28  ;;  %s3407_s1 = sshll.u32 %s4208_s4, 4  ;;  %s3408_s1 = int_to_ptr.vmem [resolvable:$true] %s3407_s1 }
 0x1e8   :  { %3339 = vst [vmem:[#allocation5] sm:$0xff] %v3275_v2  ;;  %v2334_v13 = vadd.f32 %v3859_v38, %v2333_v4  ;;  %3870 = vrcp.f32 %v5531_v28  ;;  %v2356_v7 = vand.u32 2147483648, %v5531_v28  ;;  %v1587_v34 = vadd.f32 %v5484_v29, %v1586_v14 }
 0x1e9   :  { %3872 = vpow2.f32 %v3555_v0  ;;  %vm2350_vm11 = vweird.f32 %v5531_v28  ;;  %v5572_v11 = vmul.f32 %v5542_v1, %v5486_v37  ;;  %v5574_v33 = vor.u32 1.1754944e-38, %v1609_v58 }
 0x1ea   :  { %v2338_v25 = vsel %vm2337_vm7, %v3859_v38, %v2334_v13  ;;  %3874 = vrcp.f32 %v5547_v19  ;;  %v1607_v38 = vand.u32 2147483647, %v5486_v37  ;;  %v5576_v45 = vadd.f32 1.0, %v3867_v55 }
 0x1eb   :  { %v2343_v32 = vsel %vm2340_vm8, %v2342_v6, %v2338_v25  ;;  %1903 = vmatmul.f32.gmra.mxu2 %v1781_v49  ;;  %2016 = vmatmul.f32.gmra.mxu3 %v1781_v49  ;;  %v1859_v59 = vpop.f32.mrf.mxu2  ;;  %v1972_v18 = vpop.f32.mrf.mxu3  ;;  %3876 = vpow2.f32 %v3541_v54  ;;  %vm5582_vm12 = vcmp.eq.f32.partialorder %v2354_v41, 8.507059e+37  ;;  %v2357_v47 = vor.u32 1.1754944e-38, %v2356_v7 }
 0x1ec   :  { %v3276_v16 = vmul.f32 %v2343_v32, %v5400_v31  ;;  %v5561_v20 = vadd.f32 %v1859_v59, %v5364_v62  ;;  %v5568_v31 = vadd.f32 %v1972_v18, %v5385_v22  ;;  %v1131_v36 = vpop.f32.mrf.mxu1  ;;  %v2369_v52 = vand.u32 2147483647, %v5547_v19 }
 0x1ed   :  { %v3869_v26 = vpop.eup %3868  ;;  %v2371_v3 = vand.u32 2147483648, %v5547_v19  ;;  %v5598_v60 = vadd.f32 %v5140_v43, %v1131_v36  ;;  %v1591_v57 = vsel %vm5591_vm0, %v5484_v29, %v1587_v34  ;;  %vm2365_vm14 = vweird.f32 %v5547_v19 }
 0x1ee   :  { %3340 = vst [vmem:[#allocation5 + $0x8] sm:$0xff] %v3276_v16  ;;  %v3871_v5 = vpop.eup %3870  ;;  %v5578_v49 = vadd.f32 1.0, %v3869_v26  ;;  %v3556_v56 = vmul.f32 -1.442695, %v5561_v20  ;;  %v3557_v46 = vmul.f32 -1.442695, %v5568_v31  ;;  %v1596_v29 = vsel %vm5552_vm9, %v1595_v51, %v1591_v57 }
 0x1ef   :  { %v3873_v42 = vpop.eup %3872  ;;  %v2346_v35 = vmul.f32 %v3871_v5, %v5531_v28  ;;  %vm2351_vm13 = vweird.f32 %v3871_v5  ;;  %vm5613_vm5 = vcmp.eq.f32.partialorder %v2369_v52, 8.507059e+37  ;;  %v1600_v13 = vsub.f32 1.0, %v5572_v11 }
 0x1f0   :  { %3878 = vrcp.f32 %v5578_v49  ;;  %v3875_v48 = vpop.eup %3874  ;;  %v5603_v2 = vadd.f32 1.0, %v3873_v42  ;;  %v2384_v30 = vand.u32 2147483647, %v5578_v49  ;;  %v2386_v24 = vand.u32 2147483648, %v5578_v49  ;;  %vm2352_vm1 = vmor %vm2350_vm11, %vm2351_vm13 }
 0x1f1   :  { %v2347_v17 = vsub.f32 1.0, %v2346_v35  ;;  %3880 = vpow2.f32 %v3556_v56  ;;  %v2361_v4 = vmul.f32 %v3875_v48, %v5547_v19  ;;  %v3877_v0 = vpop.eup %3876  ;;  %v2372_v6 = vor.u32 1.1754944e-38, %v2371_v3 }
 0x1f2   :  { %3882 = vrcp.f32 %v5576_v45  ;;  %v3542_v14 = vmul.f32 -1.442695, %v5598_v60  ;;  %vm1604_vm15 = vweird.f32 %v5542_v1  ;;  %vm2366_vm2 = vweird.f32 %v3875_v48 }
 0x1f3   :  { %1906 = vmatmul.f32.gmra.mxu2 %v1782_v15  ;;  %2019 = vmatmul.f32.gmra.mxu3 %v1782_v15  ;;  %v2348_v43 = vmul.f32 %v3871_v5, %v2347_v17  ;;  %3884 = vrcp.f32 %v5603_v2  ;;  %v2362_v63 = vsub.f32 1.0, %v2361_v4  ;;  %vm2380_vm3 = vweird.f32 %v5578_v49  ;;  %vm2367_vm7 = vmor %vm2365_vm14, %vm2366_vm2 }
 0x1f4   :  { %3886 = vpow2.f32 %v3557_v46  ;;  %v1783_v55 = vmul.f32 %v1596_v29, %v5388_v10  ;;  %vm5627_vm4 = vcmp.eq.f32.partialorder %v2384_v30, 8.507059e+37  ;;  %v5631_v51 = vadd.f32 1.0, %v3877_v0  ;;  %v1134_v16 = vpop.f32.mrf.mxu1  ;;  %vm5692_vm13 = vmor %vm1603_vm6, %vm1604_vm15 }
 0x1f5   :  { %v2349_v40 = vadd.f32 %v3871_v5, %v2348_v43  ;;  %v2363_v58 = vmul.f32 %v3875_v48, %v2362_v63  ;;  %v2387_v10 = vor.u32 1.1754944e-38, %v2386_v24  ;;  %v1601_v50 = vmul.f32 %v5542_v1, %v1600_v13 }
 0x1f6   :  { %v3879_v25 = vpop.eup %3878  ;;  %vm5653_vm8 = vcmp.eq.f32.partialorder %v1607_v38, 8.507059e+37  ;;  %v5665_v3 = vadd.f32 %v5662_v27, %v1134_v16  ;;  %v2401_v4 = vand.u32 2147483648, %v5603_v2 }
 0x1f7   :  { %v3881_v32 = vpop.eup %3880  ;;  %v2353_v54 = vsel %vm2352_vm1, %v3871_v5, %v2349_v40  ;;  %v2376_v15 = vmul.f32 %v3879_v25, %v5578_v49  ;;  %v2364_v7 = vadd.f32 %v3875_v48, %v2363_v58  ;;  %v2399_v5 = vand.u32 2147483647, %v5603_v2 }
 0x1f8   :  { %v5634_v28 = vpop.eup %3882  ;;  %v2358_v41 = vsel %vm5582_vm12, %v2357_v47, %v2353_v54  ;;  %v5638_v59 = vadd.f32 1.0, %v3881_v32  ;;  %v1862_v18 = vpop.f32.mrf.mxu2  ;;  %vm2381_vm9 = vweird.f32 %v3879_v25  ;;  %vm2395_vm12 = vweird.f32 %v5603_v2 }
 0x1f9   :  { %v1975_v34 = vpop.f32.mrf.mxu3  ;;  %v3885_v26 = vpop.eup %3884  ;;  %v3277_v36 = vmul.f32 %v2358_v41, %v5468_v12  ;;  %v2377_v11 = vsub.f32 1.0, %v2376_v15  ;;  %v5646_v56 = vadd.f32 %v1862_v18, %v5364_v62  ;;  %v2368_v42 = vsel %vm2367_vm7, %v3875_v48, %v2364_v7  ;;  %vm2382_vm10 = vmor %vm2380_vm3, %vm2381_vm9 }
 0x1fa   :  { %v2391_v35 = vmul.f32 %v3885_v26, %v5603_v2  ;;  %3888 = vrcp.f32 %v5638_v59  ;;  %v3887_v19 = vpop.eup %3886  ;;  %v2373_v47 = vsel %vm5613_vm5, %v2372_v6, %v2368_v42  ;;  %v5671_v17 = vadd.f32 %v1975_v34, %v5385_v22 }
 0x1fb   :  { %1909 = vmatmul.f32.gmra.mxu2 %v1783_v55  ;;  %2022 = vmatmul.f32.gmra.mxu3 %v1783_v55  ;;  %3341 = vst [vmem:[#allocation5 + $0x10] sm:$0xff] %v3277_v36  ;;  %v2378_v52 = vmul.f32 %v3879_v25, %v2377_v11  ;;  %v3278_v38 = vmul.f32 %v2373_v47, %v5471_v61  ;;  %v5668_v48 = vadd.f32 1.0, %v3887_v19  ;;  %3890 = vpow2.f32 %v3542_v14 }
 0x1fc   :  { %v2392_v57 = vsub.f32 1.0, %v2391_v35  ;;  %v3558_v43 = vmul.f32 -1.442695, %v5646_v56  ;;  %vm2396_vm11 = vweird.f32 %v3885_v26  ;;  %v1602_v61 = vadd.f32 %v5542_v1, %v1601_v50  ;;  %v1137_v12 = vpop.f32.mrf.mxu1 }
 0x1fd   :  { %v2379_v46 = vadd.f32 %v3879_v25, %v2378_v52  ;;  %3342 = vst [vmem:[#allocation5 + $0x18] sm:$0xff] %v3278_v38  ;;  %3892 = vrcp.f32 %v5668_v48  ;;  %vm5680_vm0 = vcmp.eq.f32.partialorder %v2399_v5, 8.507059e+37  ;;  %v3543_v63 = vmul.f32 -1.442695, %v5665_v3  ;;  %vm2397_vm14 = vmor %vm2395_vm12, %vm2396_vm11 }
 0x1fe   :  { %v2393_v30 = vmul.f32 %v3885_v26, %v2392_v57  ;;  %3894 = vpow2.f32 %v3558_v43  ;;  %v3559_v13 = vmul.f32 -1.442695, %v5671_v17  ;;  %v2402_v6 = vor.u32 1.1754944e-38, %v2401_v4 }
 0x1ff   :  { %v2383_v29 = vsel %vm2382_vm10, %v3879_v25, %v2379_v46  ;;  %v2414_v25 = vand.u32 2147483647, %v5638_v59  ;;  %v2416_v54 = vand.u32 2147483648, %v5638_v59  ;;  %v1606_v37 = vsel %vm5692_vm13, %v5542_v1, %v1602_v61 }
 0x200   :  { %v3889_v9 = vpop.eup %3888  ;;  %v2388_v49 = vsel %vm5627_vm4, %v2387_v10, %v2383_v29  ;;  %v2394_v24 = vadd.f32 %v3885_v26, %v2393_v30  ;;  %3896 = vpow2.f32 %v3559_v13  ;;  %v1611_v16 = vsel %vm5653_vm8, %v5574_v33, %v1606_v37 }
 0x201   :  { %v3279_v40 = vmul.f32 %v2388_v49, %v5521_v39  ;;  %v2406_v14 = vmul.f32 %v3889_v9, %v5638_v59  ;;  %v1865_v58 = vpop.f32.mrf.mxu2  ;;  %v1978_v55 = vpop.f32.mrf.mxu3  ;;  %3898 = vpow2.f32 %v3543_v63  ;;  %v1784_v10 = vmul.f32 %v1611_v16, %v5420_v23 }
 0x202   :  { %v2398_v32 = vsel %vm2397_vm14, %v3885_v26, %v2394_v24  ;;  %v3891_v15 = vpop.eup %3890  ;;  %v5711_v18 = vadd.f32 %v1865_v58, %v5364_v62  ;;  %v5714_v1 = vadd.f32 %v1978_v55, %v5385_v22  ;;  %vm2410_vm5 = vweird.f32 %v5638_v59 }
 0x203   :  { %3343 = vst [vmem:[#allocation5 + $0x20] sm:$0xff] %v3279_v40  ;;  %v2403_v39 = vsel %vm5680_vm0, %v2402_v6, %v2398_v32  ;;  %v2407_v8 = vsub.f32 1.0, %v2406_v14  ;;  %v3893_v41 = vpop.eup %3892  ;;  %vm2411_vm15 = vweird.f32 %v3889_v9  ;;  %vm5718_vm1 = vcmp.eq.f32.partialorder %v2414_v25, 8.507059e+37  ;;  %1912 = vmatmul.f32.gmra.mxu2 %v1784_v10  ;;  %2025 = vmatmul.f32.gmra.mxu3 %v1784_v10 }
 0x204   :  { %v3280_v7 = vmul.f32 %v2403_v39, %v5524_v53  ;;  %v2421_v26 = vmul.f32 %v3893_v41, %v5668_v48  ;;  %v3895_v36 = vpop.eup %3894  ;;  %v2417_v53 = vor.u32 1.1754944e-38, %v2416_v54  ;;  %v5722_v23 = vadd.f32 1.0, %v3891_v15  ;;  %vm2412_vm2 = vmor %vm2410_vm5, %vm2411_vm15 }
 0x205   :  { %v2408_v34 = vmul.f32 %v3889_v9, %v2407_v8  ;;  %v3560_v11 = vmul.f32 -1.442695, %v5711_v18  ;;  %v5725_v35 = vadd.f32 1.0, %v3895_v36  ;;  %v3561_v50 = vmul.f32 -1.442695, %v5714_v1 }
 0x206   :  { %3344 = vst [vmem:[#allocation5 + $0x28] sm:$0xff] %v3280_v7  ;;  %v2422_v42 = vsub.f32 1.0, %v2421_v26  ;;  %v3897_v19 = vpop.eup %3896  ;;  %vm2425_vm3 = vweird.f32 %v5668_v48  ;;  %v2429_v47 = vand.u32 2147483647, %v5668_v48  ;;  %v2431_v52 = vand.u32 2147483648, %v5668_v48 }
 0x207   :  { %v2409_v5 = vadd.f32 %v3889_v9, %v2408_v34  ;;  %3900 = vpow2.f32 %v3560_v11  ;;  %v3899_v38 = vpop.eup %3898  ;;  %vm2426_vm4 = vweird.f32 %v3893_v41  ;;  %v5737_v43 = vadd.f32 1.0, %v3897_v19 }
 0x208   :  { %v2423_v46 = vmul.f32 %v3893_v41, %v2422_v42  ;;  %3902 = vrcp.f32 %v5725_v35  ;;  %v5740_v59 = vadd.f32 %v5662_v27, %v1137_v12  ;;  %v1614_v30 = vmul.f32 %v5634_v28, %v5576_v45  ;;  %vm2427_vm6 = vmor %vm2425_vm3, %vm2426_vm4 }
 0x209   :  { %v2413_v57 = vsel %vm2412_vm2, %v3889_v9, %v2409_v5  ;;  %v5745_v0 = vadd.f32 1.0, %v3899_v38  ;;  %3904 = vpow2.f32 %v3561_v50  ;;  %vm2430_vm7 = vcmp.eq.f32.partialorder %v2429_v47, 8.507059e+37 }
 0x20a   :  { %v2418_v4 = vsel %vm5718_vm1, %v2417_v53, %v2413_v57  ;;  %v2424_v29 = vadd.f32 %v3893_v41, %v2423_v46  ;;  %v2432_v63 = vor.u32 1.1754944e-38, %v2431_v52  ;;  %3906 = vrcp.f32 %v5737_v43 }
 0x20b   :  { %v3281_v61 = vmul.f32 %v2418_v4, %v5561_v20  ;;  %v2444_v49 = vand.u32 2147483647, %v5725_v35  ;;  %v2446_v24 = vand.u32 2147483648, %v5725_v35  ;;  %3908 = vrcp.f32 %v5745_v0 }
 0x20c   :  { %v2428_v9 = vsel %vm2427_vm6, %v3893_v41, %v2424_v29  ;;  %3910 = vrcp.f32 %v5631_v51  ;;  %v3544_v2 = vmul.f32 -1.442695, %v5740_v59  ;;  %v1615_v14 = vsub.f32 1.0, %v1614_v30 }
 0x20d   :  { %3345 = vst [vmem:[#allocation5 + $0x30] sm:$0xff] %v3281_v61  ;;  %v3901_v20 = vpop.eup %3900  ;;  %v2433_v13 = vsel %vm2430_vm7, %v2432_v63, %v2428_v9  ;;  %3912 = vrcp.f32 %v5722_v23  ;;  %vm2440_vm8 = vweird.f32 %v5725_v35  ;;  %vm1618_vm9 = vweird.f32 %v5576_v45 }
 0x20e   :  { %v3903_v48 = vpop.eup %3902  ;;  %v3282_v40 = vmul.f32 %v2433_v13, %v5568_v31  ;;  %v5757_v6 = vadd.f32 1.0, %v3901_v20  ;;  %vm1619_vm10 = vweird.f32 %v5634_v28  ;;  %v1622_v58 = vand.u32 2147483647, %v5576_v45  ;;  %v1868_v20 = vpop.f32.mrf.mxu2 }
 0x20f   :  { %v2436_v25 = vmul.f32 %v3903_v48, %v5725_v35  ;;  %v3905_v55 = vpop.eup %3904  ;;  %vm5764_vm11 = vcmp.eq.f32.partialorder %v2444_v49, 8.507059e+37  ;;  %v2447_v31 = vor.u32 1.1754944e-38, %v2446_v24  ;;  %v2459_v54 = vand.u32 2147483647, %v5737_v43  ;;  %vm5813_vm3 = vmor %vm1618_vm9, %vm1619_vm10 }
 0x210   :  { %3346 = vst [vmem:[#allocation5 + $0x38] sm:$0xff] %v3282_v40  ;;  %3914 = vrcp.f32 %v5757_v6  ;;  %v3907_v37 = vpop.eup %3906  ;;  %v2461_v39 = vand.u32 2147483648, %v5737_v43  ;;  %v5771_v8 = vadd.f32 1.0, %v3905_v55  ;;  %vm2441_vm12 = vweird.f32 %v3903_v48  ;;  %v1140_v55 = vpop.f32.mrf.mxu1 }
 0x211   :  { %v2437_v15 = vsub.f32 1.0, %v2436_v25  ;;  %3916 = vpow2.f32 %v3544_v2  ;;  %v5773_v16 = vpop.eup %3908  ;;  %v2451_v41 = vmul.f32 %v3907_v37, %v5737_v43  ;;  %v2474_v7 = vand.u32 2147483647, %v5757_v6  ;;  %vm2442_vm14 = vmor %vm2440_vm8, %vm2441_vm12  ;;  %v1981_v25 = vpop.f32.mrf.mxu3 }
 0x212   :  { %v1616_v10 = vmul.f32 %v5634_v28, %v1615_v14  ;;  %v5778_v34 = vpop.eup %3910  ;;  %v1659_v36 = vmul.f32 %v5773_v16, %v5745_v0  ;;  %v2476_v33 = vand.u32 2147483648, %v5757_v6  ;;  %3918 = vrcp.f32 %v5771_v8 }
 0x213   :  { %v2438_v26 = vmul.f32 %v3903_v48, %v2437_v15  ;;  %v5784_v53 = vpop.eup %3912  ;;  %v2452_v11 = vsub.f32 1.0, %v2451_v41  ;;  %vm2455_vm0 = vweird.f32 %v5737_v43  ;;  %v1667_v5 = vand.u32 2147483647, %v5745_v0 }
 0x214   :  { %v1669_v42 = vand.u32 2147483648, %v5745_v0  ;;  %vm5789_vm13 = vcmp.eq.f32.partialorder %v2459_v54, 8.507059e+37  ;;  %v2462_v19 = vor.u32 1.1754944e-38, %v2461_v39  ;;  %v1660_v47 = vsub.f32 1.0, %v1659_v36 }
 0x215   :  { %v2439_v50 = vadd.f32 %v3903_v48, %v2438_v26  ;;  %v2453_v38 = vmul.f32 %v3907_v37, %v2452_v11  ;;  %vm2456_vm5 = vweird.f32 %v3907_v37  ;;  %vm2470_vm15 = vweird.f32 %v5757_v6 }
 0x216   :  { %v3915_v52 = vpop.eup %3914  ;;  %v1617_v57 = vadd.f32 %v5634_v28, %v1616_v10  ;;  %vm5799_vm1 = vcmp.eq.f32.partialorder %v2474_v7, 8.507059e+37  ;;  %v2477_v29 = vor.u32 1.1754944e-38, %v2476_v33  ;;  %v1624_v63 = vand.u32 2147483648, %v5576_v45  ;;  %vm2457_vm4 = vmor %vm2455_vm0, %vm2456_vm5 }
 0x217   :  { %v3917_v46 = vpop.eup %3916  ;;  %v2443_v4 = vsel %vm2442_vm14, %v3903_v48, %v2439_v50  ;;  %v2466_v30 = vmul.f32 %v3915_v52, %v5757_v6  ;;  %v2454_v9 = vadd.f32 %v3907_v37, %v2453_v38  ;;  %vm1664_vm2 = vweird.f32 %v5773_v16 }
 0x218   :  { %v2448_v35 = vsel %vm5764_vm11, %v2447_v31, %v2443_v4  ;;  %v5807_v49 = vadd.f32 1.0, %v3917_v46  ;;  %v3919_v13 = vpop.eup %3918  ;;  %v1661_v48 = vmul.f32 %v5773_v16, %v1660_v47  ;;  %vm1663_vm6 = vweird.f32 %v5745_v0 }
 0x219   :  { %v3283_v2 = vmul.f32 %v2448_v35, %v5646_v56  ;;  %v2467_v40 = vsub.f32 1.0, %v2466_v30  ;;  %v2489_v14 = vand.u32 2147483647, %v5771_v8  ;;  %v2458_v32 = vsel %vm2457_vm4, %v3907_v37, %v2454_v9  ;;  %v1871_v30 = vpop.f32.mrf.mxu2  ;;  %v1984_v35 = vpop.f32.mrf.mxu3 }
 0x21a   :  { %v2481_v31 = vmul.f32 %v3919_v13, %v5771_v8  ;;  %3920 = vrcp.f32 %v5807_v49  ;;  %v1621_v56 = vsel %vm5813_vm3, %v5634_v28, %v1617_v57  ;;  %v2463_v43 = vsel %vm5789_vm13, %v2462_v19, %v2458_v32  ;;  %vm5873_vm13 = vmor %vm1663_vm6, %vm1664_vm2  ;;  %v1143_v9 = vpop.f32.mrf.mxu1 }
 0x21b   :  { %3347 = vst [vmem:[#allocation5 + $0x40] sm:$0xff] %v3283_v2  ;;  %v2468_v54 = vmul.f32 %v3915_v52, %v2467_v40  ;;  %vm2471_vm7 = vweird.f32 %v3915_v52  ;;  %v1625_v15 = vor.u32 1.1754944e-38, %v1624_v63  ;;  %v3284_v39 = vmul.f32 %v2463_v43, %v5671_v17 }
 0x21c   :  { %v2482_v41 = vsub.f32 1.0, %v2481_v31  ;;  %vm2485_vm8 = vweird.f32 %v5771_v8  ;;  %vm1623_vm9 = vcmp.eq.f32.partialorder %v1622_v58, 8.507059e+37  ;;  %vm5835_vm10 = vcmp.eq.f32.partialorder %v2489_v14, 8.507059e+37  ;;  %vm2472_vm11 = vmor %vm2470_vm15, %vm2471_vm7 }
 0x21d   :  { %v2469_v37 = vadd.f32 %v3915_v52, %v2468_v54  ;;  %v2491_v28 = vand.u32 2147483648, %v5771_v8  ;;  %v1626_v10 = vsel %vm1623_vm9, %v1625_v15, %v1621_v56  ;;  %3348 = vst [vmem:[#allocation5 + $0x48] sm:$0xff] %v3284_v39  ;;  %vm2486_vm12 = vweird.f32 %v3919_v13 }
 0x21e   :  { %v2483_v26 = vmul.f32 %v3919_v13, %v2482_v41  ;;  %v1785_v17 = vmul.f32 %v1626_v10, %v5480_v44  ;;  %v5844_v36 = vadd.f32 %v1868_v20, %v5364_v62  ;;  %v5847_v45 = vadd.f32 %v5773_v16, %v1661_v48  ;;  %vm2487_vm0 = vmor %vm2485_vm8, %vm2486_vm12 }
 0x21f   :  { %v2473_v58 = vsel %vm2472_vm11, %v3915_v52, %v2469_v37  ;;  %v5850_v33 = vadd.f32 %v1981_v25, %v5385_v22  ;;  %v5853_v11 = vadd.f32 %v5662_v27, %v1140_v55  ;;  %v1629_v19 = vmul.f32 %v5778_v34, %v5631_v51 }
 0x220   :  { %v5855_v50 = vpop.eup %3920  ;;  %v2478_v6 = vsel %vm5799_vm1, %v2477_v29, %v2473_v58  ;;  %v2484_v12 = vadd.f32 %v3919_v13, %v2483_v26  ;;  %1915 = vmatmul.f32.gmra.mxu2 %v1785_v17  ;;  %2028 = vmatmul.f32.gmra.mxu3 %v1785_v17  ;;  %v3562_v44 = vmul.f32 -1.442695, %v5844_v36  ;;  %v2492_v52 = vor.u32 1.1754944e-38, %v2491_v28 }
 0x221   :  { %v3285_v47 = vmul.f32 %v2478_v6, %v5711_v18  ;;  %v1674_v38 = vmul.f32 %v5855_v50, %v5807_v49  ;;  %v3563_v57 = vmul.f32 -1.442695, %v5850_v33  ;;  %v3545_v18 = vmul.f32 -1.442695, %v5853_v11 }
 0x222   :  { %v2488_v4 = vsel %vm2487_vm0, %v3919_v13, %v2484_v12  ;;  %3922 = vpow2.f32 %v3562_v44  ;;  %v1630_v8 = vsub.f32 1.0, %v1629_v19  ;;  %v1666_v61 = vsel %vm5873_vm13, %v5773_v16, %v5847_v45 }
 0x223   :  { %3349 = vst [vmem:[#allocation5 + $0x50] sm:$0xff] %v3285_v47  ;;  %v2493_v29 = vsel %vm5835_vm10, %v2492_v52, %v2488_v4  ;;  %v1675_v63 = vsub.f32 1.0, %v1674_v38  ;;  %3924 = vpow2.f32 %v3563_v57  ;;  %vm1634_vm14 = vweird.f32 %v5778_v34 }
 0x224   :  { %v3286_v24 = vmul.f32 %v2493_v29, %v5714_v1  ;;  %3926 = vpow2.f32 %v3545_v18  ;;  %v1631_v20 = vmul.f32 %v5778_v34, %v1630_v8  ;;  %v1637_v2 = vand.u32 2147483647, %v5631_v51 }
 0x225   :  { %v1676_v13 = vmul.f32 %v5855_v50, %v1675_v63  ;;  %v1639_v16 = vand.u32 2147483648, %v5631_v51  ;;  %v5891_v48 = vadd.f32 %v1871_v30, %v5364_v62  ;;  %vm1633_vm5 = vweird.f32 %v5631_v51  ;;  %v5959_v30 = vpop.f32.mrf.mxu3 }
 0x226   :  { %3350 = vst [vmem:[#allocation5 + $0x58] sm:$0xff] %v3286_v24  ;;  %v1632_v40 = vadd.f32 %v5778_v34, %v1631_v20  ;;  %v5896_v1 = vadd.f32 %v1984_v35, %v5385_v22  ;;  %v5899_v14 = vadd.f32 %v5662_v27, %v1143_v9  ;;  %vm1679_vm15 = vweird.f32 %v5855_v50  ;;  %vm1635_vm1 = vmor %vm1633_vm5, %vm1634_vm14 }
 0x227   :  { %v1684_v25 = vand.u32 2147483648, %v5807_v49  ;;  %v1640_v55 = vor.u32 1.1754944e-38, %v1639_v16  ;;  %v3564_v32 = vmul.f32 -1.442695, %v5891_v48  ;;  %vm1638_vm2 = vcmp.eq.f32.partialorder %v1637_v2, 8.507059e+37 }
 0x228   :  { %v3923_v31 = vpop.eup %3922  ;;  %v1636_v56 = vsel %vm1635_vm1, %v5778_v34, %v1632_v40  ;;  %v3565_v51 = vmul.f32 -1.442695, %v5896_v1  ;;  %v1644_v43 = vmul.f32 %v5784_v53, %v5722_v23  ;;  %v1677_v15 = vadd.f32 %v5855_v50, %v1676_v13 }
 0x229   :  { %v3925_v54 = vpop.eup %3924  ;;  %v5909_v39 = vadd.f32 1.0, %v3923_v31  ;;  %v1641_v41 = vsel %vm1638_vm2, %v1640_v55, %v1636_v56  ;;  %3928 = vpow2.f32 %v3564_v32  ;;  %v3546_v34 = vmul.f32 -1.442695, %v5899_v14  ;;  %v5980_v56 = vpop.f32.mrf.mxu1 }
 0x22a   :  { %v3927_v37 = vpop.eup %3926  ;;  %v5911_v7 = vadd.f32 1.0, %v3925_v54  ;;  %v1786_v28 = vmul.f32 %v1641_v41, %v5534_v21  ;;  %3930 = vpow2.f32 %v3565_v51  ;;  %v1670_v10 = vor.u32 1.1754944e-38, %v1669_v42 }
 0x22b   :  { %3932 = vrcp.f32 %v5909_v39  ;;  %vm1668_vm3 = vcmp.eq.f32.partialorder %v1667_v5, 8.507059e+37  ;;  %vm1678_vm4 = vweird.f32 %v5807_v49  ;;  %v1682_v26 = vand.u32 2147483647, %v5807_v49 }
 0x22c   :  { %3934 = vrcp.f32 %v5911_v7  ;;  %1918 = vmatmul.f32.gmra.mxu2 %v1786_v28  ;;  %2031 = vmatmul.f32.gmra.mxu3 %v1786_v28  ;;  %v1671_v21 = vsel %vm1668_vm3, %v1670_v10, %v1666_v61  ;;  %vm5925_vm6 = vmor %vm1678_vm4, %vm1679_vm15  ;;  %v5929_v42 = vadd.f32 1.0, %v3927_v37  ;;  %v1645_v45 = vsub.f32 1.0, %v1644_v43 }
 0x22d   :  { %v1681_v0 = vsel %vm5925_vm6, %v5855_v50, %v1677_v15  ;;  %v1685_v5 = vor.u32 1.1754944e-38, %v1684_v25  ;;  %v2504_v49 = vand.u32 2147483647, %v5909_v39  ;;  %3936 = vpow2.f32 %v3546_v34  ;;  %v5944_v50 = vpop.f32.mrf.mxu2 }
 0x22e   :  { %v2506_v6 = vand.u32 2147483648, %v5909_v39  ;;  %v2519_v12 = vand.u32 2147483647, %v5911_v7  ;;  %v2521_v44 = vand.u32 2147483648, %v5911_v7  ;;  %3938 = vrcp.f32 %v5929_v42 }
 0x22f   :  { %v3929_v58 = vpop.eup %3928  ;;  %v5940_v47 = vmul.f32 %v1671_v21, %v5665_v3  ;;  %vm1683_vm7 = vcmp.eq.f32.partialorder %v1682_v26, 8.507059e+37  ;;  %vm2500_vm8 = vweird.f32 %v5909_v39  ;;  %v1646_v4 = vmul.f32 %v5784_v53, %v1645_v45 }
 0x230   :  { %v3931_v19 = vpop.eup %3930  ;;  %v5942_v52 = vadd.f32 1.0, %v3929_v58  ;;  %v5946_v57 = vsel %vm1683_vm7, %v1685_v5, %v1681_v0  ;;  %vm5953_vm9 = vcmp.eq.f32.partialorder %v2504_v49, 8.507059e+37  ;;  %vm2515_vm10 = vweird.f32 %v5911_v7  ;;  %v1990_v5 = vpop.f32.mrf.mxu3 }
 0x231   :  { %v3933_v38 = vpop.eup %3932  ;;  %v5949_v46 = vadd.f32 1.0, %v3931_v19  ;;  %v2507_v61 = vor.u32 1.1754944e-38, %v2506_v6  ;;  %vm5962_vm11 = vcmp.eq.f32.partialorder %v2519_v12, 8.507059e+37  ;;  %v2522_v35 = vor.u32 1.1754944e-38, %v2521_v44 }
 0x232   :  { %v3935_v18 = vpop.eup %3934  ;;  %v2496_v8 = vmul.f32 %v3933_v38, %v5909_v39  ;;  %3940 = vrcp.f32 %v5942_v52  ;;  %v1697_v20 = vand.u32 2147483647, %v5929_v42  ;;  %v1699_v13 = vand.u32 2147483648, %v5929_v42 }
 0x233   :  { %v2511_v29 = vmul.f32 %v3935_v18, %v5911_v7  ;;  %v3937_v9 = vpop.eup %3936  ;;  %3942 = vrcp.f32 %v5949_v46  ;;  %vm1648_vm12 = vweird.f32 %v5722_v23  ;;  %v5973_v40 = vadd.f32 %v5784_v53, %v1646_v4 }
 0x234   :  { %v2497_v24 = vsub.f32 1.0, %v2496_v8  ;;  %v5970_v2 = vpop.eup %3938  ;;  %vm1649_vm0 = vweird.f32 %v5784_v53  ;;  %v1652_v25 = vand.u32 2147483647, %v5722_v23  ;;  %vm2501_vm13 = vweird.f32 %v3933_v38 }
 0x235   :  { %v2512_v16 = vsub.f32 1.0, %v2511_v29  ;;  %v1689_v32 = vmul.f32 %v5970_v2, %v5929_v42  ;;  %v2534_v31 = vand.u32 2147483647, %v5942_v52  ;;  %vm2516_vm14 = vweird.f32 %v3935_v18  ;;  %vm2502_vm15 = vmor %vm2500_vm8, %vm2501_vm13  ;;  %v1877_v0 = vpop.f32.mrf.mxu2 }
 0x236   :  { %v2498_v55 = vmul.f32 %v3933_v38, %v2497_v24  ;;  %v5982_v43 = vadd.f32 1.0, %v3937_v9  ;;  %v1654_v54 = vand.u32 2147483648, %v5722_v23  ;;  %vm2530_vm5 = vweird.f32 %v5942_v52  ;;  %vm2517_vm2 = vmor %vm2515_vm10, %vm2516_vm14 }
 0x237   :  { %v2513_v51 = vmul.f32 %v3935_v18, %v2512_v16  ;;  %v1690_v37 = vsub.f32 1.0, %v1689_v32  ;;  %v2536_v28 = vand.u32 2147483648, %v5942_v52  ;;  %vm2545_vm1 = vweird.f32 %v5949_v46  ;;  %vm6014_vm7 = vmor %vm1648_vm12, %vm1649_vm0 }
 0x238   :  { %v3941_v15 = vpop.eup %3940  ;;  %v2499_v41 = vadd.f32 %v3933_v38, %v2498_v55  ;;  %3944 = vrcp.f32 %v5982_v43  ;;  %vm5995_vm3 = vcmp.eq.f32.partialorder %v2534_v31, 8.507059e+37  ;;  %v2549_v39 = vand.u32 2147483647, %v5949_v46 }
 0x239   :  { %v2514_v34 = vadd.f32 %v3935_v18, %v2513_v51  ;;  %v2526_v10 = vmul.f32 %v3941_v15, %v5942_v52  ;;  %v3943_v26 = vpop.eup %3942  ;;  %v2551_v45 = vand.u32 2147483648, %v5949_v46  ;;  %v1691_v19 = vmul.f32 %v5970_v2, %v1690_v37  ;;  %v1993_v37 = vpop.f32.mrf.mxu3 }
 0x23a   :  { %v2503_v21 = vsel %vm2502_vm15, %v3933_v38, %v2499_v41  ;;  %v2541_v12 = vmul.f32 %v3943_v26, %v5949_v46  ;;  %vm1694_vm4 = vweird.f32 %v5970_v2  ;;  %v2537_v38 = vor.u32 1.1754944e-38, %v2536_v28 }
 0x23b   :  { %v2508_v49 = vsel %vm5953_vm9, %v2507_v61, %v2503_v21  ;;  %v2518_v58 = vsel %vm2517_vm2, %v3935_v18, %v2514_v34  ;;  %v2527_v6 = vsub.f32 1.0, %v2526_v10  ;;  %vm2531_vm6 = vweird.f32 %v3941_v15  ;;  %v1149_v61 = vpop.f32.mrf.mxu1 }
 0x23c   :  { %v3287_v7 = vmul.f32 %v2508_v49, %v5844_v36  ;;  %v2523_v44 = vsel %vm5962_vm11, %v2522_v35, %v2518_v58  ;;  %v2542_v3 = vsub.f32 1.0, %v2541_v12  ;;  %vm1693_vm8 = vweird.f32 %v5929_v42  ;;  %vm2532_vm11 = vmor %vm2530_vm5, %vm2531_vm6 }
 0x23d   :  { %v3288_v4 = vmul.f32 %v2523_v44, %v5850_v33  ;;  %v2528_v8 = vmul.f32 %v3941_v15, %v2527_v6  ;;  %vm2546_vm9 = vweird.f32 %v3943_v26  ;;  %vm6019_vm10 = vcmp.eq.f32.partialorder %v2549_v39, 8.507059e+37  ;;  %v1880_v41 = vpop.f32.mrf.mxu2  ;;  %vm6078_vm14 = vmor %vm1693_vm8, %vm1694_vm4 }
 0x23e   :  { %3351 = vst [vmem:[#allocation5 + $0x60] sm:$0xff] %v3287_v7  ;;  %v1651_v33 = vsel %vm6014_vm7, %v5784_v53, %v5973_v40  ;;  %v6029_v23 = vadd.f32 %v5944_v50, %v5364_v62  ;;  %v6031_v29 = vpop.eup %3944  ;;  %v2543_v35 = vmul.f32 %v3943_v26, %v2542_v3  ;;  %v1655_v9 = vor.u32 1.1754944e-38, %v1654_v54  ;;  %vm2547_vm0 = vmor %vm2545_vm1, %vm2546_vm9 }
 0x23f   :  { %3352 = vst [vmem:[#allocation5 + $0x68] sm:$0xff] %v3288_v4  ;;  %v2529_v63 = vadd.f32 %v3941_v15, %v2528_v8  ;;  %v6035_v24 = vadd.f32 %v5959_v30, %v5385_v22  ;;  %v1692_v16 = vadd.f32 %v5970_v2, %v1691_v19  ;;  %v2552_v53 = vor.u32 1.1754944e-38, %v2551_v45 }
 0x240   :  { %v1704_v50 = vmul.f32 %v6031_v29, %v5982_v43  ;;  %vm1653_vm12 = vcmp.eq.f32.partialorder %v1652_v25, 8.507059e+37  ;;  %v2544_v55 = vadd.f32 %v3943_v26, %v2543_v35  ;;  %v3566_v31 = vmul.f32 -1.442695, %v6029_v23 }
 0x241   :  { %v2533_v40 = vsel %vm2532_vm11, %v3941_v15, %v2529_v63  ;;  %v1656_v32 = vsel %vm1653_vm12, %v1655_v9, %v1651_v33  ;;  %v3567_v54 = vmul.f32 -1.442695, %v6035_v24  ;;  %v6054_v28 = vadd.f32 %v5662_v27, %v5980_v56 }
 0x242   :  { %v2538_v30 = vsel %vm5995_vm3, %v2537_v38, %v2533_v40  ;;  %v1705_v51 = vsub.f32 1.0, %v1704_v50  ;;  %v1787_v52 = vmul.f32 %v1656_v32, %v5598_v60  ;;  %v2548_v15 = vsel %vm2547_vm0, %v3943_v26, %v2544_v55 }
 0x243   :  { %v3289_v25 = vmul.f32 %v2538_v30, %v5891_v48  ;;  %3946 = vpow2.f32 %v3566_v31  ;;  %v2553_v34 = vsel %vm6019_vm10, %v2552_v53, %v2548_v15  ;;  %v6060_v60 = vadd.f32 %v1877_v0, %v5364_v62  ;;  %v1152_v49 = vpop.f32.mrf.mxu1 }
 0x244   :  { %v1706_v46 = vmul.f32 %v6031_v29, %v1705_v51  ;;  %1921 = vmatmul.f32.gmra.mxu2 %v1787_v52  ;;  %2034 = vmatmul.f32.gmra.mxu3 %v1787_v52  ;;  %3948 = vpow2.f32 %v3567_v54  ;;  %v3290_v48 = vmul.f32 %v2553_v34, %v5896_v1  ;;  %v3547_v10 = vmul.f32 -1.442695, %v6054_v28 }
 0x245   :  { %3353 = vst [vmem:[#allocation5 + $0x70] sm:$0xff] %v3289_v25  ;;  %v6065_v26 = vadd.f32 %v1990_v5, %v5385_v22  ;;  %v6068_v56 = vadd.f32 %v5662_v27, %v1149_v61  ;;  %vm1709_vm13 = vweird.f32 %v6031_v29  ;;  %v1714_v17 = vand.u32 2147483648, %v5982_v43 }
 0x246   :  { %v1707_v21 = vadd.f32 %v6031_v29, %v1706_v46  ;;  %v3568_v39 = vmul.f32 -1.442695, %v6060_v60  ;;  %3354 = vst [vmem:[#allocation5 + $0x78] sm:$0xff] %v3290_v48  ;;  %3950 = vpow2.f32 %v3547_v10  ;;  %v6085_v5 = vadd.f32 %v1880_v41, %v5364_v62 }
 0x247   :  { %v3569_v45 = vmul.f32 -1.442695, %v6065_v26  ;;  %v3548_v0 = vmul.f32 -1.442695, %v6068_v56  ;;  %v1696_v58 = vsel %vm6078_vm14, %v5970_v2, %v1692_v16  ;;  %vm1708_vm5 = vweird.f32 %v5982_v43 }
 0x248   :  { %v1712_v6 = vand.u32 2147483647, %v5982_v43  ;;  %3952 = vpow2.f32 %v3568_v39  ;;  %vm1698_vm15 = vcmp.eq.f32.partialorder %v1697_v20, 8.507059e+37  ;;  %v1700_v7 = vor.u32 1.1754944e-38, %v1699_v13  ;;  %vm6098_vm1 = vmor %vm1708_vm5, %vm1709_vm13  ;;  %v1883_v20 = vpop.f32.mrf.mxu2  ;;  %v1996_v13 = vpop.f32.mrf.mxu3 }
 0x249   :  { %v3947_v12 = vpop.eup %3946  ;;  %3954 = vpow2.f32 %v3569_v45  ;;  %v6103_v2 = vadd.f32 %v1993_v37, %v5385_v22  ;;  %v1711_v43 = vsel %vm6098_vm1, %v6031_v29, %v1707_v21  ;;  %v6111_v42 = vadd.f32 %v5662_v27, %v1152_v49 }
 0x24a   :  { %v3949_v19 = vpop.eup %3948  ;;  %v6108_v38 = vadd.f32 1.0, %v3947_v12  ;;  %3956 = vpow2.f32 %v3548_v0  ;;  %v1701_v4 = vsel %vm1698_vm15, %v1700_v7, %v1696_v58  ;;  %v1715_v8 = vor.u32 1.1754944e-38, %v1714_v17 }
 0x24b   :  { %v6113_v3 = vadd.f32 1.0, %v3949_v19  ;;  %v3570_v18 = vmul.f32 -1.442695, %v6085_v5  ;;  %vm1713_vm2 = vcmp.eq.f32.partialorder %v1712_v6, 8.507059e+37  ;;  %v1789_v27 = vmul.f32 %v5946_v57, %v5740_v59 }
 0x24c   :  { %3958 = vrcp.f32 %v6108_v38  ;;  %1924 = vmatmul.f32.gmra.mxu2 %v5940_v47  ;;  %2037 = vmatmul.f32.gmra.mxu3 %v5940_v47  ;;  %v3951_v36 = vpop.eup %3950  ;;  %v1716_v33 = vsel %vm1713_vm2, %v1715_v8, %v1711_v43  ;;  %v6123_v29 = vmul.f32 %v1701_v4, %v5853_v11  ;;  %v3571_v35 = vmul.f32 -1.442695, %v6103_v2 }
 0x24d   :  { %3960 = vrcp.f32 %v6113_v3  ;;  %v6125_v63 = vadd.f32 1.0, %v3951_v36  ;;  %v3549_v9 = vmul.f32 -1.442695, %v6111_v42  ;;  %v2564_v47 = vand.u32 2147483647, %v6108_v38 }
 0x24e   :  { %v3953_v61 = vpop.eup %3952  ;;  %v2566_v53 = vand.u32 2147483648, %v6108_v38  ;;  %3962 = vpow2.f32 %v3570_v18  ;;  %v6134_v57 = vmul.f32 %v1716_v33, %v5899_v14  ;;  %v6138_v11 = vadd.f32 %v1883_v20, %v5364_v62 }
 0x24f   :  { %v3955_v16 = vpop.eup %3954  ;;  %v6131_v50 = vadd.f32 1.0, %v3953_v61  ;;  %3964 = vrcp.f32 %v6125_v63  ;;  %v6141_v40 = vadd.f32 %v1996_v13, %v5385_v22  ;;  %vm2560_vm3 = vweird.f32 %v6108_v38 }
 0x250   :  { %v3957_v59 = vpop.eup %3956  ;;  %v2579_v55 = vand.u32 2147483647, %v6113_v3  ;;  %v2581_v32 = vand.u32 2147483648, %v6113_v3  ;;  %vm2575_vm4 = vweird.f32 %v6113_v3  ;;  %v6150_v14 = vadd.f32 1.0, %v3955_v16  ;;  %v6154_v51 = vpop.f32.mrf.mxu2 }
 0x251   :  { %3966 = vrcp.f32 %v6131_v50  ;;  %v6152_v30 = vadd.f32 1.0, %v3957_v59  ;;  %v6156_v52 = vpop.f32.mrf.mxu3  ;;  %vm6162_vm6 = vcmp.eq.f32.partialorder %v2564_v47, 8.507059e+37  ;;  %v2567_v25 = vor.u32 1.1754944e-38, %v2566_v53 }
 0x252   :  { %v6147_v31 = vpop.eup %3958  ;;  %3968 = vpow2.f32 %v3571_v35  ;;  %v1729_v15 = vand.u32 2147483648, %v6125_v63  ;;  %v2594_v46 = vand.u32 2147483647, %v6131_v50  ;;  %v2596_v48 = vand.u32 2147483648, %v6131_v50 }
 0x253   :  { %v6158_v54 = vpop.eup %3960  ;;  %v2556_v41 = vmul.f32 %v6147_v31, %v6108_v38  ;;  %3970 = vpow2.f32 %v3549_v9  ;;  %vm6172_vm7 = vcmp.eq.f32.partialorder %v2579_v55, 8.507059e+37  ;;  %v2582_v39 = vor.u32 1.1754944e-38, %v2581_v32 }
 0x254   :  { %v2571_v34 = vmul.f32 %v6158_v54, %v6113_v3  ;;  %3972 = vrcp.f32 %v6150_v14  ;;  %1927 = vmatmul.f32.gmra.mxu2 %v1789_v27  ;;  %2040 = vmatmul.f32.gmra.mxu3 %v1789_v27  ;;  %v3963_v10 = vpop.eup %3962  ;;  %vm1723_vm8 = vweird.f32 %v6125_v63  ;;  %v1727_v0 = vand.u32 2147483647, %v6125_v63 }
 0x255   :  { %v2557_v21 = vsub.f32 1.0, %v2556_v41  ;;  %3974 = vrcp.f32 %v6152_v30  ;;  %v6177_v1 = vpop.eup %3964  ;;  %vm2590_vm9 = vweird.f32 %v6131_v50  ;;  %vm2561_vm10 = vweird.f32 %v6147_v31 }
 0x256   :  { %v2572_v45 = vsub.f32 1.0, %v2571_v34  ;;  %v1719_v6 = vmul.f32 %v6177_v1, %v6125_v63  ;;  %v6186_v12 = vor.u32 1.1754944e-38, %v1729_v15  ;;  %vm2576_vm11 = vweird.f32 %v6158_v54  ;;  %vm6205_vm13 = vmor %vm2560_vm3, %vm2561_vm10 }
 0x257   :  { %v3967_v49 = vpop.eup %3966  ;;  %v2558_v58 = vmul.f32 %v6147_v31, %v2557_v21  ;;  %vm6191_vm12 = vcmp.eq.f32.partialorder %v2594_v46, 8.507059e+37  ;;  %v2597_v20 = vor.u32 1.1754944e-38, %v2596_v48  ;;  %vm2605_vm0 = vweird.f32 %v6150_v14  ;;  %vm2577_vm2 = vmor %vm2575_vm4, %vm2576_vm11 }
 0x258   :  { %v3969_v7 = vpop.eup %3968  ;;  %v2573_v44 = vmul.f32 %v6158_v54, %v2572_v45  ;;  %v2586_v19 = vmul.f32 %v3967_v49, %v6131_v50  ;;  %v1720_v8 = vsub.f32 1.0, %v1719_v6  ;;  %v2609_v18 = vand.u32 2147483647, %v6150_v14  ;;  %v6216_v16 = vpop.f32.mrf.mxu2 }
 0x259   :  { %v6195_v13 = vpop.eup %3970  ;;  %v2559_v4 = vadd.f32 %v6147_v31, %v2558_v58  ;;  %v2611_v36 = vand.u32 2147483648, %v6150_v14  ;;  %vm1724_vm14 = vweird.f32 %v6177_v1  ;;  %vm6211_vm5 = vcmp.eq.f32.partialorder %v1727_v0, 8.507059e+37  ;;  %v6218_v47 = vpop.f32.mrf.mxu3 }
 0x25a   :  { %v3973_v27 = vpop.eup %3972  ;;  %v2574_v61 = vadd.f32 %v6158_v54, %v2573_v44  ;;  %v2587_v9 = vsub.f32 1.0, %v2586_v19  ;;  %vm2591_vm15 = vweird.f32 %v3967_v49  ;;  %vm1738_vm1 = vweird.f32 %v6152_v30  ;;  %vm6249_vm3 = vmor %vm1723_vm8, %vm1724_vm14 }
 0x25b   :  { %v6220_v38 = vpop.eup %3974  ;;  %v2563_v53 = vsel %vm6205_vm13, %v6147_v31, %v2559_v4  ;;  %v1721_v59 = vmul.f32 %v6177_v1, %v1720_v8  ;;  %v2601_v55 = vmul.f32 %v3973_v27, %v6150_v14  ;;  %v6231_v32 = vadd.f32 1.0, %v3963_v10  ;;  %vm2592_vm4 = vmor %vm2590_vm9, %vm2591_vm15 }
 0x25c   :  { %v2568_v41 = vsel %vm6162_vm6, %v2567_v25, %v2563_v53  ;;  %v2578_v15 = vsel %vm2577_vm2, %v6158_v54, %v2574_v61  ;;  %v2588_v34 = vmul.f32 %v3967_v49, %v2587_v9  ;;  %v1734_v31 = vmul.f32 %v6220_v38, %v6152_v30  ;;  %1930 = vmatmul.f32.gmra.mxu2 %v6123_v29 }
 0x25d   :  { %v3291_v3 = vmul.f32 %v2568_v41, %v6029_v23  ;;  %v2583_v46 = vsel %vm6172_vm7, %v2582_v39, %v2578_v15  ;;  %v1722_v48 = vadd.f32 %v6177_v1, %v1721_v59  ;;  %v2602_v10 = vsub.f32 1.0, %v2601_v55  ;;  %2043 = vmatmul.f32.gmra.mxu3 %v6123_v29 }
 0x25e   :  { %v3292_v37 = vmul.f32 %v2583_v46, %v6035_v24  ;;  %v2589_v25 = vadd.f32 %v3967_v49, %v2588_v34  ;;  %v1735_v23 = vsub.f32 1.0, %v1734_v31  ;;  %v6253_v21 = vadd.f32 1.0, %v3969_v7 }
 0x25f   :  { %3355 = vst [vmem:[#allocation5 + $0x80] sm:$0xff] %v3291_v3  ;;  %v2603_v29 = vmul.f32 %v3973_v27, %v2602_v10  ;;  %vm2606_vm6 = vweird.f32 %v3973_v27  ;;  %v1742_v24 = vand.u32 2147483647, %v6152_v30  ;;  %3976 = vrcp.f32 %v6231_v32 }
 0x260   :  { %3356 = vst [vmem:[#allocation5 + $0x88] sm:$0xff] %v3292_v37  ;;  %v1726_v63 = vsel %vm6249_vm3, %v6177_v1, %v1722_v48  ;;  %v2593_v17 = vsel %vm2592_vm4, %v3967_v49, %v2589_v25  ;;  %v1736_v39 = vmul.f32 %v6220_v38, %v1735_v23  ;;  %vm1739_vm7 = vweird.f32 %v6220_v38  ;;  %vm2607_vm8 = vmor %vm2605_vm0, %vm2606_vm6  ;;  %v1892_v49 = vpop.f32.mrf.mxu2 }
 0x261   :  { %v2598_v50 = vsel %vm6191_vm12, %v2597_v20, %v2593_v17  ;;  %v2604_v45 = vadd.f32 %v3973_v27, %v2603_v29  ;;  %v2612_v0 = vor.u32 1.1754944e-38, %v2611_v36  ;;  %v1744_v58 = vand.u32 2147483648, %v6152_v30  ;;  %vm6279_vm10 = vmor %vm1738_vm1, %vm1739_vm7  ;;  %v6284_v43 = vpop.f32.mrf.mxu3 }
 0x262   :  { %v3293_v6 = vmul.f32 %v2598_v50, %v6060_v60  ;;  %v1737_v7 = vadd.f32 %v6220_v38, %v1736_v39  ;;  %v2624_v1 = vand.u32 2147483647, %v6231_v32  ;;  %3978 = vrcp.f32 %v6253_v21 }
 0x263   :  { %v1731_v44 = vsel %vm6211_vm5, %v6186_v12, %v1726_v63  ;;  %v2608_v19 = vsel %vm2607_vm8, %v3973_v27, %v2604_v45  ;;  %vm2610_vm9 = vcmp.eq.f32.partialorder %v2609_v18, 8.507059e+37  ;;  %v2626_v14 = vand.u32 2147483648, %v6231_v32 }
 0x264   :  { %3357 = vst [vmem:[#allocation5 + $0x90] sm:$0xff] %v3293_v6  ;;  %v2613_v20 = vsel %vm2610_vm9, %v2612_v0, %v2608_v19  ;;  %v1741_v4 = vsel %vm6279_vm10, %v6220_v38, %v1737_v7  ;;  %vm1743_vm11 = vcmp.eq.f32.partialorder %v1742_v24, 8.507059e+37  ;;  %v6290_v12 = vadd.f32 1.0, %v6195_v13  ;;  %1933 = vmatmul.f32.gmra.mxu2 %v6134_v57 }
 0x265   :  { %v3977_v30 = vpop.eup %3976  ;;  %v3294_v8 = vmul.f32 %v2613_v20, %v6065_v26  ;;  %v1745_v18 = vor.u32 1.1754944e-38, %v1744_v58  ;;  %v2639_v36 = vand.u32 2147483647, %v6253_v21  ;;  %v3572_v27 = vmul.f32 -1.442695, %v6138_v11  ;;  %2046 = vmatmul.f32.gmra.mxu3 %v6134_v57 }
 0x266   :  { %v1792_v33 = vmul.f32 %v1731_v44, %v6054_v28  ;;  %v2616_v61 = vmul.f32 %v3977_v30, %v6231_v32  ;;  %vm2620_vm12 = vweird.f32 %v6231_v32  ;;  %vm6300_vm0 = vcmp.eq.f32.partialorder %v2624_v1, 8.507059e+37 }
 0x267   :  { %3358 = vst [vmem:[#allocation5 + $0x98] sm:$0xff] %v3294_v8  ;;  %v1746_v35 = vsel %vm1743_vm11, %v1745_v18, %v1741_v4  ;;  %v2627_v26 = vor.u32 1.1754944e-38, %v2626_v14  ;;  %v2641_v9 = vand.u32 2147483648, %v6253_v21  ;;  %3980 = vrcp.f32 %v6290_v12 }
 0x268   :  { %v3979_v38 = vpop.eup %3978  ;;  %v2617_v53 = vsub.f32 1.0, %v2616_v61  ;;  %3982 = vpow2.f32 %v3572_v27  ;;  %v3573_v28 = vmul.f32 -1.442695, %v6141_v40  ;;  %v6309_v57 = vadd.f32 %v6154_v51, %v5364_v62  ;;  %v6332_v54 = vpop.f32.mrf.mxu2 }
 0x269   :  { %vm2621_vm13 = vweird.f32 %v3977_v30  ;;  %v2631_v59 = vmul.f32 %v3979_v38, %v6253_v21  ;;  %vm2635_vm14 = vweird.f32 %v6253_v21  ;;  %vm6313_vm5 = vcmp.eq.f32.partialorder %v2639_v36, 8.507059e+37  ;;  %v6341_v25 = vpop.f32.mrf.mxu3 }
 0x26a   :  { %v2618_v41 = vmul.f32 %v3977_v30, %v2617_v53  ;;  %3984 = vpow2.f32 %v3573_v28  ;;  %v3574_v15 = vmul.f32 -1.442695, %v6309_v57  ;;  %v6320_v34 = vadd.f32 %v6156_v52, %v5385_v22  ;;  %vm2622_vm15 = vmor %vm2620_vm12, %vm2621_vm13 }
 0x26b   :  { %v1793_v51 = vmul.f32 %v1746_v35, %v6068_v56  ;;  %v2632_v31 = vsub.f32 1.0, %v2631_v59  ;;  %v6325_v3 = vadd.f32 %v6216_v16, %v5364_v62  ;;  %v6329_v46 = vadd.f32 %v6218_v47, %v5385_v22 }
 0x26c   :  { %v2619_v48 = vadd.f32 %v3977_v30, %v2618_v41  ;;  %v2642_v10 = vor.u32 1.1754944e-38, %v2641_v9  ;;  %3986 = vpow2.f32 %v3574_v15  ;;  %v3575_v37 = vmul.f32 -1.442695, %v6320_v34  ;;  %1936 = vmatmul.f32.gmra.mxu2 %v1792_v33 }
 0x26d   :  { %v3981_v52 = vpop.eup %3980  ;;  %v2633_v56 = vmul.f32 %v3979_v38, %v2632_v31  ;;  %vm2636_vm1 = vweird.f32 %v3979_v38  ;;  %2049 = vmatmul.f32.gmra.mxu3 %v1792_v33  ;;  %v3576_v16 = vmul.f32 -1.442695, %v6325_v3  ;;  %v6339_v47 = vadd.f32 %v1892_v49, %v5364_v62 }
 0x26e   :  { %v3983_v23 = vpop.eup %3982  ;;  %v2623_v29 = vsel %vm2622_vm15, %v3977_v30, %v2619_v48  ;;  %v1749_v24 = vmul.f32 %v3981_v52, %v6290_v12  ;;  %3988 = vpow2.f32 %v3575_v37  ;;  %v3577_v63 = vmul.f32 -1.442695, %v6329_v46  ;;  %vm2637_vm2 = vmor %vm2635_vm14, %vm2636_vm1 }
 0x26f   :  { %v2628_v32 = vsel %vm6300_vm0, %v2627_v26, %v2623_v29  ;;  %v2634_v17 = vadd.f32 %v3979_v38, %v2633_v56  ;;  %v6347_v39 = vadd.f32 1.0, %v3983_v23  ;;  %3990 = vpow2.f32 %v3576_v16 }
 0x270   :  { %v3985_v50 = vpop.eup %3984  ;;  %v3295_v45 = vmul.f32 %v2628_v32, %v6085_v5  ;;  %v1750_v0 = vsub.f32 1.0, %v1749_v24  ;;  %v1757_v58 = vand.u32 2147483647, %v6290_v12  ;;  %v1759_v6 = vand.u32 2147483648, %v6290_v12  ;;  %v6380_v33 = vpop.f32.mrf.mxu2 }
 0x271   :  { %v2638_v7 = vsel %vm2637_vm2, %v3979_v38, %v2634_v17  ;;  %3992 = vrcp.f32 %v6347_v39  ;;  %v3578_v1 = vmul.f32 -1.442695, %v6339_v47  ;;  %v6359_v49 = vadd.f32 %v6284_v43, %v5385_v22  ;;  %v6388_v38 = vpop.f32.mrf.mxu3 }
 0x272   :  { %v3987_v44 = vpop.eup %3986  ;;  %3359 = vst [vmem:[#allocation5 + $0xa0] sm:$0xff] %v3295_v45  ;;  %v2643_v5 = vsel %vm6313_vm5, %v2642_v10, %v2638_v7  ;;  %v1751_v21 = vmul.f32 %v3981_v52, %v1750_v0  ;;  %vm1754_vm3 = vweird.f32 %v3981_v52  ;;  %v6363_v19 = vadd.f32 1.0, %v3985_v50 }
 0x273   :  { %v3296_v60 = vmul.f32 %v2643_v5, %v6103_v2  ;;  %v6366_v14 = vadd.f32 1.0, %v3987_v44  ;;  %3994 = vpow2.f32 %v3577_v63  ;;  %vm1753_vm4 = vweird.f32 %v6290_v12 }
 0x274   :  { %v3989_v20 = vpop.eup %3988  ;;  %v1752_v4 = vadd.f32 %v3981_v52, %v1751_v21  ;;  %vm6369_vm6 = vcmp.eq.f32.partialorder %v1757_v58, 8.507059e+37  ;;  %3996 = vrcp.f32 %v6363_v19  ;;  %1939 = vmatmul.f32.gmra.mxu2 %v1793_v51  ;;  %vm1755_vm7 = vmor %vm1753_vm4, %vm1754_vm3  ;;  %v1760_v8 = vor.u32 1.1754944e-38, %v1759_v6 }
 0x275   :  { %v3991_v30 = vpop.eup %3990  ;;  %3360 = vst [vmem:[#allocation5 + $0xa8] sm:$0xff] %v3296_v60  ;;  %v2654_v2 = vand.u32 2147483647, %v6347_v39  ;;  %v2656_v18 = vand.u32 2147483648, %v6347_v39  ;;  %3998 = vrcp.f32 %v6366_v14  ;;  %2052 = vmatmul.f32.gmra.mxu3 %v1793_v51  ;;  %v6377_v12 = vadd.f32 1.0, %v3989_v20 }
 0x276   :  { %v1756_v36 = vsel %vm1755_vm7, %v3981_v52, %v1752_v4  ;;  %4000 = vpow2.f32 %v3578_v1  ;;  %v3579_v27 = vmul.f32 -1.442695, %v6359_v49  ;;  %v2669_v35 = vand.u32 2147483647, %v6363_v19 }
 0x277   :  { %v3993_v61 = vpop.eup %3992  ;;  %v1761_v13 = vsel %vm6369_vm6, %v1760_v8, %v1756_v36  ;;  %v2671_v26 = vand.u32 2147483648, %v6363_v19  ;;  %v6386_v9 = vadd.f32 1.0, %v3991_v30  ;;  %vm2650_vm8 = vweird.f32 %v6347_v39 }
 0x278   :  { %v1794_v53 = vmul.f32 %v1761_v13, %v6111_v42  ;;  %v2646_v28 = vmul.f32 %v3993_v61, %v6347_v39  ;;  %v2684_v59 = vand.u32 2147483647, %v6366_v14  ;;  %vm6394_vm9 = vcmp.eq.f32.partialorder %v2654_v2, 8.507059e+37  ;;  %v6418_v58 = vpop.f32.mrf.mxu2 }
 0x279   :  { %v3995_v55 = vpop.eup %3994  ;;  %v2657_v15 = vor.u32 1.1754944e-38, %v2656_v18  ;;  %v2686_v51 = vand.u32 2147483648, %v6366_v14  ;;  %4002 = vrcp.f32 %v6377_v12  ;;  %vm2665_vm10 = vweird.f32 %v6363_v19  ;;  %v6436_v2 = vpop.f32.mrf.mxu3 }
 0x27a   :  { %v3997_v31 = vpop.eup %3996  ;;  %v2647_v48 = vsub.f32 1.0, %v2646_v28  ;;  %vm2680_vm11 = vweird.f32 %v6366_v14  ;;  %4004 = vrcp.f32 %v6386_v9  ;;  %vm2651_vm12 = vweird.f32 %v3993_v61 }
 0x27b   :  { %v3999_v42 = vpop.eup %3998  ;;  %v2661_v10 = vmul.f32 %v3997_v31, %v6363_v19  ;;  %vm6404_vm0 = vcmp.eq.f32.partialorder %v2669_v35, 8.507059e+37  ;;  %v2672_v52 = vor.u32 1.1754944e-38, %v2671_v26  ;;  %vm6409_vm13 = vcmp.eq.f32.partialorder %v2684_v59, 8.507059e+37  ;;  %vm2652_vm15 = vmor %vm2650_vm8, %vm2651_vm12 }
 0x27c   :  { %v4001_v56 = vpop.eup %4000  ;;  %v2648_v16 = vmul.f32 %v3993_v61, %v2647_v48  ;;  %v2676_v23 = vmul.f32 %v3999_v42, %v6366_v14  ;;  %v2699_v24 = vand.u32 2147483647, %v6377_v12  ;;  %1942 = vmatmul.f32.gmra.mxu2 %v1794_v53  ;;  %v2687_v32 = vor.u32 1.1754944e-38, %v2686_v51 }
 0x27d   :  { %v2662_v63 = vsub.f32 1.0, %v2661_v10  ;;  %v2701_v17 = vand.u32 2147483648, %v6377_v12  ;;  %v6415_v50 = vadd.f32 1.0, %v3995_v55  ;;  %2055 = vmatmul.f32.gmra.mxu3 %v1794_v53  ;;  %vm2666_vm14 = vweird.f32 %v3997_v31 }
 0x27e   :  { %v2649_v45 = vadd.f32 %v3993_v61, %v2648_v16  ;;  %v2677_v0 = vsub.f32 1.0, %v2676_v23  ;;  %vm2695_vm5 = vweird.f32 %v6377_v12  ;;  %4006 = vpow2.f32 %v3579_v27  ;;  %vm2667_vm4 = vmor %vm2665_vm10, %vm2666_vm14 }
 0x27f   :  { %v4003_v6 = vpop.eup %4002  ;;  %v2663_v7 = vmul.f32 %v3997_v31, %v2662_v63  ;;  %vm2710_vm1 = vweird.f32 %v6386_v9  ;;  %v2714_v1 = vand.u32 2147483647, %v6386_v9  ;;  %4008 = vrcp.f32 %v6415_v50 }
 0x280   :  { %v6426_v44 = vadd.f32 1.0, %v4001_v56  ;;  %v4005_v5 = vpop.eup %4004  ;;  %v2653_v21 = vsel %vm2652_vm15, %v3993_v61, %v2649_v45  ;;  %v2678_v60 = vmul.f32 %v3999_v42, %v2677_v0  ;;  %vm2681_vm2 = vweird.f32 %v3999_v42  ;;  %v1904_v56 = vpop.f32.mrf.mxu2 }
 0x281   :  { %v2691_v20 = vmul.f32 %v4003_v6, %v6377_v12  ;;  %vm6429_vm3 = vcmp.eq.f32.partialorder %v2699_v24, 8.507059e+37  ;;  %v2658_v39 = vsel %vm6394_vm9, %v2657_v15, %v2653_v21  ;;  %v2664_v43 = vadd.f32 %v3997_v31, %v2663_v7  ;;  %vm2682_vm6 = vmor %vm2680_vm11, %vm2681_vm2  ;;  %v2017_v7 = vpop.f32.mrf.mxu3 }
 0x282   :  { %v2702_v30 = vor.u32 1.1754944e-38, %v2701_v17  ;;  %v2706_v8 = vmul.f32 %v4005_v5, %v6386_v9  ;;  %v3297_v18 = vmul.f32 %v2658_v39, %v6138_v11  ;;  %v2679_v36 = vadd.f32 %v3999_v42, %v2678_v60 }
 0x283   :  { %v2692_v27 = vsub.f32 1.0, %v2691_v20  ;;  %v2716_v61 = vand.u32 2147483648, %v6386_v9  ;;  %v2668_v13 = vsel %vm2667_vm4, %v3997_v31, %v2664_v43  ;;  %vm6445_vm7 = vcmp.eq.f32.partialorder %v2714_v1, 8.507059e+37 }
 0x284   :  { %v2707_v35 = vsub.f32 1.0, %v2706_v8  ;;  %4010 = vrcp.f32 %v6426_v44  ;;  %v4007_v11 = vpop.eup %4006  ;;  %3361 = vst [vmem:[#allocation5 + $0xb0] sm:$0xff] %v3297_v18  ;;  %v2673_v19 = vsel %vm6404_vm0, %v2672_v52, %v2668_v13  ;;  %v2683_v53 = vsel %vm2682_vm6, %v3999_v42, %v2679_v36 }
 0x285   :  { %v2693_v28 = vmul.f32 %v4003_v6, %v2692_v27  ;;  %vm2696_vm8 = vweird.f32 %v4003_v6  ;;  %v4009_v59 = vpop.eup %4008  ;;  %v3298_v55 = vmul.f32 %v2673_v19, %v6141_v40  ;;  %v2688_v14 = vsel %vm6409_vm13, %v2687_v32, %v2683_v53 }
 0x286   :  { %v2708_v41 = vmul.f32 %v4005_v5, %v2707_v35  ;;  %vm2711_vm9 = vweird.f32 %v4005_v5  ;;  %v3299_v15 = vmul.f32 %v2688_v14, %v6309_v57  ;;  %v2717_v31 = vor.u32 1.1754944e-38, %v2716_v61  ;;  %vm2697_vm10 = vmor %vm2695_vm5, %vm2696_vm8 }
 0x287   :  { %v2694_v51 = vadd.f32 %v4003_v6, %v2693_v28  ;;  %v2721_v48 = vmul.f32 %v4009_v59, %v6415_v50  ;;  %3362 = vst [vmem:[#allocation5 + $0xb8] sm:$0xff] %v3298_v55  ;;  %vm2725_vm11 = vweird.f32 %v6415_v50  ;;  %v2729_v40 = vand.u32 2147483647, %v6415_v50  ;;  %vm2712_vm12 = vmor %vm2710_vm1, %vm2711_vm9 }
 0x288   :  { %v2709_v42 = vadd.f32 %v4005_v5, %v2708_v41  ;;  %v2731_v10 = vand.u32 2147483648, %v6415_v50  ;;  %3363 = vst [vmem:[#allocation5 + $0xc0] sm:$0xff] %v3299_v15  ;;  %vm2726_vm0 = vweird.f32 %v4009_v59  ;;  %v6464_v52 = vadd.f32 1.0, %v4007_v11  ;;  %v1907_v13 = vpop.f32.mrf.mxu2 }
 0x289   :  { %v2698_v37 = vsel %vm2697_vm10, %v4003_v6, %v2694_v51  ;;  %v2722_v57 = vsub.f32 1.0, %v2721_v48  ;;  %v2746_v29 = vand.u32 2147483648, %v6426_v44  ;;  %v6471_v24 = vadd.f32 %v6332_v54, %v5364_v62  ;;  %vm2727_vm5 = vmor %vm2725_vm11, %vm2726_vm0  ;;  %v2020_v41 = vpop.f32.mrf.mxu3 }
 0x28a   :  { %v4011_v16 = vpop.eup %4010  ;;  %v2703_v12 = vsel %vm6429_vm3, %v2702_v30, %v2698_v37  ;;  %v2713_v23 = vsel %vm2712_vm12, %v4005_v5, %v2709_v42  ;;  %vm6478_vm13 = vcmp.eq.f32.partialorder %v2729_v40, 8.507059e+37  ;;  %v2732_v6 = vor.u32 1.1754944e-38, %v2731_v10 }
 0x28b   :  { %v3300_v63 = vmul.f32 %v2703_v12, %v6320_v34  ;;  %v2718_v9 = vsel %vm6445_vm7, %v2717_v31, %v2713_v23  ;;  %v2723_v32 = vmul.f32 %v4009_v59, %v2722_v57  ;;  %v2736_v17 = vmul.f32 %v4011_v16, %v6426_v44 }
 0x28c   :  { %v3301_v45 = vmul.f32 %v2718_v9, %v6325_v3  ;;  %4012 = vrcp.f32 %v6464_v52  ;;  %vm2740_vm14 = vweird.f32 %v6426_v44  ;;  %v2744_v34 = vand.u32 2147483647, %v6426_v44 }
 0x28d   :  { %3364 = vst [vmem:[#allocation5 + $0xc8] sm:$0xff] %v3300_v63  ;;  %v2724_v54 = vadd.f32 %v4009_v59, %v2723_v32  ;;  %v2737_v1 = vsub.f32 1.0, %v2736_v17  ;;  %v3580_v3 = vmul.f32 -1.442695, %v6471_v24  ;;  %v6491_v5 = vadd.f32 %v6341_v25, %v5385_v22 }
 0x28e   :  { %3365 = vst [vmem:[#allocation5 + $0xd0] sm:$0xff] %v3301_v45  ;;  %v6495_v21 = vadd.f32 %v6380_v33, %v5364_v62  ;;  %v6499_v60 = vadd.f32 %v6388_v38, %v5385_v22  ;;  %vm2741_vm15 = vweird.f32 %v4011_v16  ;;  %v2747_v39 = vor.u32 1.1754944e-38, %v2746_v29 }
 0x28f   :  { %v2728_v20 = vsel %vm2727_vm5, %v4009_v59, %v2724_v54  ;;  %v2738_v4 = vmul.f32 %v4011_v16, %v2737_v1  ;;  %4014 = vpow2.f32 %v3580_v3  ;;  %v3581_v43 = vmul.f32 -1.442695, %v6491_v5  ;;  %vm2742_vm1 = vmor %vm2740_vm14, %vm2741_vm15 }
 0x290   :  { %v2733_v50 = vsel %vm6478_vm13, %v2732_v6, %v2728_v20  ;;  %v3582_v25 = vmul.f32 -1.442695, %v6495_v21  ;;  %v3583_v8 = vmul.f32 -1.442695, %v6499_v60  ;;  %v6509_v38 = vadd.f32 %v6418_v58, %v5364_v62  ;;  %v6567_v20 = vpop.f32.mrf.mxu2 }
 0x291   :  { %v3302_v30 = vmul.f32 %v2733_v50, %v6329_v46  ;;  %v2739_v33 = vadd.f32 %v4011_v16, %v2738_v4  ;;  %4016 = vpow2.f32 %v3581_v43  ;;  %v6515_v36 = vadd.f32 %v6436_v2, %v5385_v22  ;;  %v6569_v4 = vpop.f32.mrf.mxu3 }
 0x292   :  { %v4013_v18 = vpop.eup %4012  ;;  %v6518_v27 = vadd.f32 %v1904_v56, %v5364_v62  ;;  %v6521_v46 = vadd.f32 %v2017_v7, %v5385_v22  ;;  %vm2745_vm2 = vcmp.eq.f32.partialorder %v2744_v34, 8.507059e+37  ;;  %4018 = vpow2.f32 %v3582_v25 }
 0x293   :  { %3366 = vst [vmem:[#allocation5 + $0xd8] sm:$0xff] %v3302_v30  ;;  %v2743_v61 = vsel %vm2742_vm1, %v4011_v16, %v2739_v33  ;;  %v2751_v58 = vmul.f32 %v4013_v18, %v6464_v52  ;;  %4020 = vpow2.f32 %v3583_v8  ;;  %v3584_v35 = vmul.f32 -1.442695, %v6509_v38 }
 0x294   :  { %v2748_v44 = vsel %vm2745_vm2, %v2747_v39, %v2743_v61  ;;  %v3585_v2 = vmul.f32 -1.442695, %v6515_v36  ;;  %v2759_v19 = vand.u32 2147483647, %v6464_v52  ;;  %v3586_v53 = vmul.f32 -1.442695, %v6518_v27 }
 0x295   :  { %v3303_v26 = vmul.f32 %v2748_v44, %v6339_v47  ;;  %v2752_v11 = vsub.f32 1.0, %v2751_v58  ;;  %v4015_v28 = vpop.eup %4014  ;;  %v2761_v59 = vand.u32 2147483648, %v6464_v52  ;;  %4022 = vpow2.f32 %v3584_v35 }
 0x296   :  { %v3587_v55 = vmul.f32 -1.442695, %v6521_v46  ;;  %v6532_v14 = vadd.f32 %v1907_v13, %v5364_v62  ;;  %vm2756_vm3 = vweird.f32 %v4013_v18  ;;  %v6534_v51 = vadd.f32 1.0, %v4015_v28 }
 0x297   :  { %3367 = vst [vmem:[#allocation5 + $0xe0] sm:$0xff] %v3303_v26  ;;  %v2753_v15 = vmul.f32 %v4013_v18, %v2752_v11  ;;  %4024 = vpow2.f32 %v3585_v2  ;;  %v4017_v47 = vpop.eup %4016  ;;  %vm2755_vm4 = vweird.f32 %v6464_v52  ;;  %vm2760_vm6 = vcmp.eq.f32.partialorder %v2759_v19, 8.507059e+37 }
 0x298   :  { %4026 = vpow2.f32 %v3586_v53  ;;  %v3588_v31 = vmul.f32 -1.442695, %v6532_v14  ;;  %v4019_v48 = vpop.eup %4018  ;;  %vm2757_vm7 = vmor %vm2755_vm4, %vm2756_vm3  ;;  %v2762_v10 = vor.u32 1.1754944e-38, %v2761_v59  ;;  %v6539_v37 = vadd.f32 1.0, %v4017_v47 }
 0x299   :  { %v2754_v42 = vadd.f32 %v4013_v18, %v2753_v15  ;;  %4028 = vrcp.f32 %v6534_v51  ;;  %v4021_v40 = vpop.eup %4020  ;;  %v6541_v57 = vadd.f32 1.0, %v4019_v48  ;;  %v6546_v12 = vadd.f32 %v2020_v41, %v5385_v22 }
 0x29a   :  { %4030 = vpow2.f32 %v3587_v55  ;;  %v6543_v16 = vadd.f32 1.0, %v4021_v40  ;;  %v2774_v29 = vand.u32 2147483647, %v6534_v51  ;;  %v2776_v32 = vand.u32 2147483648, %v6534_v51 }
 0x29b   :  { %v2758_v56 = vsel %vm2757_vm7, %v4013_v18, %v2754_v42  ;;  %4032 = vpow2.f32 %v3588_v31  ;;  %v4023_v23 = vpop.eup %4022  ;;  %v2791_v45 = vand.u32 2147483648, %v6539_v37  ;;  %vm2770_vm8 = vweird.f32 %v6534_v51 }
 0x29c   :  { %v2763_v52 = vsel %vm2760_vm6, %v2762_v10, %v2758_v56  ;;  %4034 = vrcp.f32 %v6539_v37  ;;  %v2789_v6 = vand.u32 2147483647, %v6539_v37  ;;  %v6558_v7 = vmul.f32 -1.442695, %v6546_v12 }
 0x29d   :  { %v4025_v63 = vpop.eup %4024  ;;  %v3304_v9 = vmul.f32 %v2763_v52, %v6359_v49  ;;  %4036 = vrcp.f32 %v6541_v57  ;;  %vm6561_vm9 = vcmp.eq.f32.partialorder %v2774_v29, 8.507059e+37  ;;  %v2804_v34 = vand.u32 2147483647, %v6541_v57 }
 0x29e   :  { %v4027_v17 = vpop.eup %4026  ;;  %4038 = vrcp.f32 %v6543_v16  ;;  %v2806_v3 = vand.u32 2147483648, %v6541_v57  ;;  %v2777_v50 = vor.u32 1.1754944e-38, %v2776_v32  ;;  %vm2785_vm10 = vweird.f32 %v6539_v37 }
 0x29f   :  { %v4029_v0 = vpop.eup %4028  ;;  %3368 = vst [vmem:[#allocation5 + $0xe8] sm:$0xff] %v3304_v9  ;;  %v2819_v43 = vand.u32 2147483647, %v6543_v16  ;;  %v6573_v25 = vadd.f32 1.0, %v4023_v23  ;;  %v2792_v8 = vor.u32 1.1754944e-38, %v2791_v45  ;;  %vm2800_vm11 = vweird.f32 %v6541_v57 }
 0x2a0   :  { %v4031_v54 = vpop.eup %4030  ;;  %v2766_v49 = vmul.f32 %v4029_v0, %v6534_v51  ;;  %v6576_v18 = vadd.f32 1.0, %v4025_v63  ;;  %vm2771_vm12 = vweird.f32 %v4029_v0  ;;  %vm6579_vm0 = vcmp.eq.f32.partialorder %v2789_v6, 8.507059e+37  ;;  %v6618_v6 = vpop.f32.mrf.mxu3 }
 0x2a1   :  { %v4033_v39 = vpop.eup %4032  ;;  %vm2815_vm13 = vweird.f32 %v6543_v16  ;;  %v2821_v44 = vand.u32 2147483648, %v6543_v16  ;;  %4040 = vrcp.f32 %v6573_v25  ;;  %vm6587_vm14 = vcmp.eq.f32.partialorder %v2804_v34, 8.507059e+37  ;;  %vm2772_vm1 = vmor %vm2770_vm8, %vm2771_vm12 }
 0x2a2   :  { %v4035_v30 = vpop.eup %4034  ;;  %v2767_v33 = vsub.f32 1.0, %v2766_v49  ;;  %v2807_v19 = vor.u32 1.1754944e-38, %v2806_v3  ;;  %v6591_v53 = vadd.f32 1.0, %v4027_v17  ;;  %vm6594_vm5 = vcmp.eq.f32.partialorder %v2819_v43, 8.507059e+37 }
 0x2a3   :  { %v4037_v61 = vpop.eup %4036  ;;  %v2781_v58 = vmul.f32 %v4035_v30, %v6539_v37  ;;  %v6598_v41 = vadd.f32 1.0, %v4031_v54  ;;  %v6600_v15 = vadd.f32 1.0, %v4033_v39  ;;  %vm2786_vm15 = vweird.f32 %v4035_v30 }
 0x2a4   :  { %v4039_v35 = vpop.eup %4038  ;;  %v2768_v2 = vmul.f32 %v4029_v0, %v2767_v33  ;;  %v2796_v26 = vmul.f32 %v4037_v61, %v6541_v57  ;;  %4042 = vrcp.f32 %v6576_v18  ;;  %vm2801_vm2 = vweird.f32 %v4037_v61  ;;  %vm2787_vm6 = vmor %vm2785_vm10, %vm2786_vm15 }
 0x2a5   :  { %v2782_v28 = vsub.f32 1.0, %v2781_v58  ;;  %v2811_v59 = vmul.f32 %v4039_v35, %v6543_v16  ;;  %v2822_v40 = vor.u32 1.1754944e-38, %v2821_v44  ;;  %vm2816_vm3 = vweird.f32 %v4039_v35  ;;  %vm2802_vm7 = vmor %vm2800_vm11, %vm2801_vm2 }
 0x2a6   :  { %v2769_v47 = vadd.f32 %v4029_v0, %v2768_v2  ;;  %v2797_v31 = vsub.f32 1.0, %v2796_v26  ;;  %vm2830_vm4 = vweird.f32 %v6573_v25  ;;  %v2834_v9 = vand.u32 2147483647, %v6573_v25  ;;  %vm2817_vm8 = vmor %vm2815_vm13, %vm2816_vm3 }
 0x2a7   :  { %v2783_v48 = vmul.f32 %v4035_v30, %v2782_v28  ;;  %v2812_v42 = vsub.f32 1.0, %v2811_v59  ;;  %v4041_v23 = vpop.eup %4040  ;;  %v2836_v45 = vand.u32 2147483648, %v6573_v25  ;;  %v2851_v37 = vand.u32 2147483648, %v6576_v18 }
 0x2a8   :  { %v2773_v10 = vsel %vm2772_vm1, %v4029_v0, %v2769_v47  ;;  %v2798_v56 = vmul.f32 %v4037_v61, %v2797_v31  ;;  %v2826_v17 = vmul.f32 %v4041_v23, %v6573_v25  ;;  %v6616_v0 = vpop.f32.mrf.mxu2  ;;  %4044 = vrcp.f32 %v6591_v53 }
 0x2a9   :  { %v2778_v52 = vsel %vm6561_vm9, %v2777_v50, %v2773_v10  ;;  %v2784_v29 = vadd.f32 %v4035_v30, %v2783_v48  ;;  %v2813_v63 = vmul.f32 %v4039_v35, %v2812_v42  ;;  %vm2831_vm9 = vweird.f32 %v4041_v23  ;;  %v2029_v10 = vpop.f32.mrf.mxu3 }
 0x2aa   :  { %v3305_v51 = vmul.f32 %v2778_v52, %v6471_v24  ;;  %v2799_v32 = vadd.f32 %v4037_v61, %v2798_v56  ;;  %v2849_v24 = vand.u32 2147483647, %v6576_v18  ;;  %v4043_v1 = vpop.eup %4042  ;;  %v2827_v39 = vsub.f32 1.0, %v2826_v17  ;;  %vm2832_vm12 = vmor %vm2830_vm4, %vm2831_vm9 }
 0x2ab   :  { %v2788_v54 = vsel %vm2787_vm6, %v4035_v30, %v2784_v29  ;;  %v2814_v49 = vadd.f32 %v4039_v35, %v2813_v63  ;;  %v2841_v30 = vmul.f32 %v4043_v1, %v6576_v18  ;;  %vm6639_vm10 = vcmp.eq.f32.partialorder %v2834_v9, 8.507059e+37 }
 0x2ac   :  { %3369 = vst [vmem:[#allocation5 + $0xf0] sm:$0xff] %v3305_v51  ;;  %v2793_v34 = vsel %vm6579_vm0, %v2792_v8, %v2788_v54  ;;  %v2803_v3 = vsel %vm2802_vm7, %v4037_v61, %v2799_v32  ;;  %v2828_v61 = vmul.f32 %v4041_v23, %v2827_v39  ;;  %v2864_v13 = vand.u32 2147483647, %v6591_v53 }
 0x2ad   :  { %v3306_v57 = vmul.f32 %v2793_v34, %v6491_v5  ;;  %v2808_v50 = vsel %vm6587_vm14, %v2807_v19, %v2803_v3  ;;  %v2818_v43 = vsel %vm2817_vm8, %v4039_v35, %v2814_v49  ;;  %v2842_v5 = vsub.f32 1.0, %v2841_v30 }
 0x2ae   :  { %v3307_v33 = vmul.f32 %v2808_v50, %v6495_v21  ;;  %v2823_v8 = vsel %vm6594_vm5, %v2822_v40, %v2818_v43  ;;  %v2829_v44 = vadd.f32 %v4041_v23, %v2828_v61  ;;  %vm2845_vm11 = vweird.f32 %v6576_v18  ;;  %v4045_v26 = vpop.eup %4044 }
 0x2af   :  { %3370 = vst [vmem:[#allocation5 + $0xf8] sm:$0xff] %v3306_v57  ;;  %v3308_v16 = vmul.f32 %v2823_v8, %v6499_v60  ;;  %v2866_v21 = vand.u32 2147483648, %v6591_v53  ;;  %4046 = vrcp.f32 %v6598_v41  ;;  %v2837_v60 = vor.u32 1.1754944e-38, %v2836_v45 }
 0x2b0   :  { %3371 = vst [vmem:[#allocation5 + $0x100] sm:$0xff] %v3307_v33  ;;  %v2843_v35 = vmul.f32 %v4043_v1, %v2842_v5  ;;  %vm2846_vm0 = vweird.f32 %v4043_v1  ;;  %vm6649_vm13 = vcmp.eq.f32.partialorder %v2849_v24, 8.507059e+37  ;;  %v2833_v11 = vsel %vm2832_vm12, %v4041_v23, %v2829_v44  ;;  %v1916_v40 = vpop.f32.mrf.mxu2 }
 0x2b1   :  { %3372 = vst [vmem:[#allocation5 + $0x108] sm:$0xff] %v3308_v16  ;;  %v2852_v19 = vor.u32 1.1754944e-38, %v2851_v37  ;;  %vm2860_vm14 = vweird.f32 %v6591_v53  ;;  %4048 = vrcp.f32 %v6600_v15  ;;  %v2838_v28 = vsel %vm6639_vm10, %v2837_v60, %v2833_v11  ;;  %vm2847_vm15 = vmor %vm2845_vm11, %vm2846_vm0  ;;  %v2032_v58 = vpop.f32.mrf.mxu3 }
 0x2b2   :  { %v2844_v59 = vadd.f32 %v4043_v1, %v2843_v35  ;;  %v2856_v25 = vmul.f32 %v4045_v26, %v6591_v53  ;;  %vm6658_vm5 = vcmp.eq.f32.partialorder %v2864_v13, 8.507059e+37  ;;  %v3309_v47 = vmul.f32 %v2838_v28, %v6509_v38 }
 0x2b3   :  { %v2867_v31 = vor.u32 1.1754944e-38, %v2866_v21  ;;  %v2879_v48 = vand.u32 2147483647, %v6598_v41  ;;  %v2881_v42 = vand.u32 2147483648, %v6598_v41  ;;  %vm2861_vm1 = vweird.f32 %v4045_v26 }
 0x2b4   :  { %v2848_v56 = vsel %vm2847_vm15, %v4043_v1, %v2844_v59  ;;  %v2857_v23 = vsub.f32 1.0, %v2856_v25  ;;  %vm2875_vm2 = vweird.f32 %v6598_v41  ;;  %4050 = vpow2.f32 %v6558_v7  ;;  %3373 = vst [vmem:[#allocation5 + $0x110] sm:$0xff] %v3309_v47  ;;  %vm2862_vm7 = vmor %vm2860_vm14, %vm2861_vm1 }
 0x2b5   :  { %v4047_v52 = vpop.eup %4046  ;;  %v2853_v38 = vsel %vm6649_vm13, %v2852_v19, %v2848_v56  ;;  %v2894_v18 = vand.u32 2147483647, %v6600_v15  ;;  %v6674_v29 = vadd.f32 %v6567_v20, %v5364_v62  ;;  %v6678_v63 = vadd.f32 %v6569_v4, %v5385_v22 }
 0x2b6   :  { %v3310_v9 = vmul.f32 %v2853_v38, %v6515_v36  ;;  %v2858_v51 = vmul.f32 %v4045_v26, %v2857_v23  ;;  %v2871_v7 = vmul.f32 %v4047_v52, %v6598_v41  ;;  %vm2890_vm3 = vweird.f32 %v6600_v15 }
 0x2b7   :  { %v2896_v32 = vand.u32 2147483648, %v6600_v15  ;;  %v4049_v17 = vpop.eup %4048  ;;  %vm2876_vm4 = vweird.f32 %v4047_v52  ;;  %v3590_v45 = vmul.f32 -1.442695, %v6674_v29  ;;  %v3591_v20 = vmul.f32 -1.442695, %v6678_v63 }
 0x2b8   :  { %v6688_v54 = vadd.f32 %v6616_v0, %v5364_v62  ;;  %3374 = vst [vmem:[#allocation5 + $0x118] sm:$0xff] %v3310_v9  ;;  %v2859_v4 = vadd.f32 %v4045_v26, %v2858_v51  ;;  %v2872_v36 = vsub.f32 1.0, %v2871_v7  ;;  %v2886_v49 = vmul.f32 %v4049_v17, %v6600_v15  ;;  %vm2877_vm8 = vmor %vm2875_vm2, %vm2876_vm4  ;;  %v1919_v16 = vpop.f32.mrf.mxu2 }
 0x2b9   :  { %vm2891_vm6 = vweird.f32 %v4049_v17  ;;  %4052 = vpow2.f32 %v3590_v45  ;;  %v6697_v37 = vadd.f32 %v6618_v6, %v5385_v22  ;;  %v6700_v0 = vadd.f32 %v1916_v40, %v5364_v62 }
 0x2ba   :  { %v3592_v24 = vmul.f32 -1.442695, %v6688_v54  ;;  %v4051_v1 = vpop.eup %4050  ;;  %v2863_v34 = vsel %vm2862_vm7, %v4045_v26, %v2859_v4  ;;  %v2873_v3 = vmul.f32 %v4047_v52, %v2872_v36  ;;  %v2887_v39 = vsub.f32 1.0, %v2886_v49  ;;  %vm2892_vm11 = vmor %vm2890_vm3, %vm2891_vm6 }
 0x2bb   :  { %4054 = vpow2.f32 %v3591_v20  ;;  %v2868_v57 = vsel %vm6658_vm5, %v2867_v31, %v2863_v34  ;;  %v6704_v53 = vadd.f32 1.0, %v4051_v1  ;;  %v3593_v50 = vmul.f32 -1.442695, %v6697_v37 }
 0x2bc   :  { %4056 = vpow2.f32 %v3592_v24  ;;  %v3311_v43 = vmul.f32 %v2868_v57, %v6518_v27  ;;  %v2874_v6 = vadd.f32 %v4047_v52, %v2873_v3  ;;  %v2888_v30 = vmul.f32 %v4049_v17, %v2887_v39 }
 0x2bd   :  { %v3594_v33 = vmul.f32 -1.442695, %v6700_v0  ;;  %vm2880_vm9 = vcmp.eq.f32.partialorder %v2879_v48, 8.507059e+37  ;;  %v2882_v8 = vor.u32 1.1754944e-38, %v2881_v42  ;;  %vm6712_vm10 = vcmp.eq.f32.partialorder %v2894_v18, 8.507059e+37 }
 0x2be   :  { %4058 = vrcp.f32 %v6704_v53  ;;  %3375 = vst [vmem:[#allocation5 + $0x120] sm:$0xff] %v3311_v43  ;;  %v2878_v27 = vsel %vm2877_vm8, %v4047_v52, %v2874_v6  ;;  %v2889_v5 = vadd.f32 %v4049_v17, %v2888_v30  ;;  %v6718_v13 = vadd.f32 %v2029_v10, %v5385_v22 }
 0x2bf   :  { %4060 = vpow2.f32 %v3593_v50  ;;  %v4053_v44 = vpop.eup %4052  ;;  %v2883_v41 = vsel %vm2880_vm9, %v2882_v8, %v2878_v27  ;;  %v2897_v21 = vor.u32 1.1754944e-38, %v2896_v32  ;;  %v2909_v60 = vand.u32 2147483647, %v6704_v53 }
 0x2c0   :  { %4062 = vpow2.f32 %v3594_v33  ;;  %v3312_v2 = vmul.f32 %v2883_v41, %v6521_v46  ;;  %v2893_v26 = vsel %vm2892_vm11, %v4049_v17, %v2889_v5  ;;  %v2911_v11 = vand.u32 2147483648, %v6704_v53 }
 0x2c1   :  { %v4055_v35 = vpop.eup %4054  ;;  %v6726_v19 = vadd.f32 1.0, %v4053_v44  ;;  %v2898_v59 = vsel %vm6712_vm10, %v2897_v21, %v2893_v26  ;;  %v3595_v55 = vmul.f32 -1.442695, %v6718_v13  ;;  %vm2905_vm12 = vweird.f32 %v6704_v53 }
 0x2c2   :  { %v4057_v28 = vpop.eup %4056  ;;  %v6730_v25 = vadd.f32 1.0, %v4055_v35  ;;  %3376 = vst [vmem:[#allocation5 + $0x128] sm:$0xff] %v3312_v2  ;;  %v3313_v15 = vmul.f32 %v2898_v59, %v6532_v14  ;;  %vm6738_vm0 = vcmp.eq.f32.partialorder %v2909_v60, 8.507059e+37  ;;  %v2912_v42 = vor.u32 1.1754944e-38, %v2911_v11 }
 0x2c3   :  { %4064 = vrcp.f32 %v6726_v19  ;;  %v6743_v14 = vadd.f32 %v1919_v16, %v5364_v62  ;;  %v2924_v10 = vand.u32 2147483647, %v6726_v19  ;;  %v2926_v56 = vand.u32 2147483648, %v6726_v19 }
 0x2c4   :  { %v4059_v47 = vpop.eup %4058  ;;  %4066 = vrcp.f32 %v6730_v25  ;;  %3377 = vst [vmem:[#allocation5 + $0x130] sm:$0xff] %v3313_v15  ;;  %v6747_v23 = vadd.f32 1.0, %v4057_v28  ;;  %v2939_v18 = vand.u32 2147483647, %v6730_v25  ;;  %v2941_v9 = vand.u32 2147483648, %v6730_v25 }
 0x2c5   :  { %v4061_v46 = vpop.eup %4060  ;;  %v2901_v31 = vmul.f32 %v4059_v47, %v6704_v53  ;;  %4068 = vpow2.f32 %v3595_v55  ;;  %vm2920_vm13 = vweird.f32 %v6726_v19  ;;  %v6758_v7 = vadd.f32 %v2032_v58, %v5385_v22 }
 0x2c6   :  { %v4063_v40 = vpop.eup %4062  ;;  %v6749_v52 = vadd.f32 1.0, %v4061_v46  ;;  %4070 = vrcp.f32 %v6747_v23  ;;  %vm2906_vm14 = vweird.f32 %v4059_v47  ;;  %v2956_v4 = vand.u32 2147483648, %v6747_v23 }
 0x2c7   :  { %v2902_v38 = vsub.f32 1.0, %v2901_v31  ;;  %v6755_v51 = vadd.f32 1.0, %v4063_v40  ;;  %v6760_v32 = vpop.f32.mrf.mxu2  ;;  %v6762_v17 = vpop.f32.mrf.mxu3  ;;  %vm6767_vm5 = vcmp.eq.f32.partialorder %v2924_v10, 8.507059e+37  ;;  %v2927_v1 = vor.u32 1.1754944e-38, %v2926_v56  ;;  %vm2907_vm2 = vmor %vm2905_vm12, %vm2906_vm14 }
 0x2c8   :  { %4072 = vrcp.f32 %v6749_v52  ;;  %vm2935_vm15 = vweird.f32 %v6730_v25  ;;  %vm6773_vm1 = vcmp.eq.f32.partialorder %v2939_v18, 8.507059e+37  ;;  %v2942_v57 = vor.u32 1.1754944e-38, %v2941_v9 }
 0x2c9   :  { %v4065_v45 = vpop.eup %4064  ;;  %v2903_v20 = vmul.f32 %v4059_v47, %v2902_v38  ;;  %v2954_v50 = vand.u32 2147483647, %v6747_v23  ;;  %v2969_v6 = vand.u32 2147483647, %v6749_v52  ;;  %4074 = vrcp.f32 %v6755_v51 }
 0x2ca   :  { %v4067_v36 = vpop.eup %4066  ;;  %v2916_v49 = vmul.f32 %v4065_v45, %v6726_v19  ;;  %vm2921_vm3 = vweird.f32 %v4065_v45  ;;  %vm2950_vm4 = vweird.f32 %v6747_v23  ;;  %v2957_v61 = vor.u32 1.1754944e-38, %v2956_v4 }
 0x2cb   :  { %v2904_v34 = vadd.f32 %v4059_v47, %v2903_v20  ;;  %v2931_v3 = vmul.f32 %v4067_v36, %v6730_v25  ;;  %v4069_v30 = vpop.eup %4068  ;;  %v2971_v16 = vand.u32 2147483648, %v6749_v52  ;;  %vm2936_vm6 = vweird.f32 %v4067_v36  ;;  %vm2922_vm10 = vmor %vm2920_vm13, %vm2921_vm3 }
 0x2cc   :  { %v2917_v43 = vsub.f32 1.0, %v2916_v49  ;;  %v4071_v58 = vpop.eup %4070  ;;  %vm2965_vm7 = vweird.f32 %v6749_v52  ;;  %v6787_v5 = vadd.f32 1.0, %v4069_v30  ;;  %vm6791_vm8 = vcmp.eq.f32.partialorder %v2954_v50, 8.507059e+37  ;;  %vm2937_vm12 = vmor %vm2935_vm15, %vm2936_vm6 }
 0x2cd   :  { %v2908_v33 = vsel %vm2907_vm2, %v4059_v47, %v2904_v34  ;;  %v2932_v8 = vsub.f32 1.0, %v2931_v3  ;;  %v2946_v60 = vmul.f32 %v4071_v58, %v6747_v23  ;;  %v2984_v2 = vand.u32 2147483647, %v6755_v51 }
 0x2ce   :  { %v2913_v27 = vsel %vm6738_vm0, %v2912_v42, %v2908_v33  ;;  %v2918_v53 = vmul.f32 %v4065_v45, %v2917_v43  ;;  %v4073_v44 = vpop.eup %4072  ;;  %vm6797_vm9 = vcmp.eq.f32.partialorder %v2969_v6, 8.507059e+37  ;;  %v2986_v59 = vand.u32 2147483648, %v6755_v51 }
 0x2cf   :  { %v3314_v41 = vmul.f32 %v2913_v27, %v6546_v12  ;;  %v2933_v21 = vmul.f32 %v4067_v36, %v2932_v8  ;;  %v2961_v11 = vmul.f32 %v4073_v44, %v6749_v52  ;;  %v1925_v15 = vpop.f32.mrf.mxu2  ;;  %v6802_v12 = vpop.f32.mrf.mxu3  ;;  %v2947_v47 = vsub.f32 1.0, %v2946_v60 }
 0x2d0   :  { %v2919_v26 = vadd.f32 %v4065_v45, %v2918_v53  ;;  %v2972_v46 = vor.u32 1.1754944e-38, %v2971_v16  ;;  %vm2980_vm11 = vweird.f32 %v6755_v51  ;;  %4076 = vrcp.f32 %v6787_v5  ;;  %v4075_v31 = vpop.eup %4074 }
 0x2d1   :  { %3378 = vst [vmem:[#allocation5 + $0x138] sm:$0xff] %v3314_v41  ;;  %v2934_v55 = vadd.f32 %v4067_v36, %v2933_v21  ;;  %vm2951_vm0 = vweird.f32 %v4071_v58  ;;  %v2962_v42 = vsub.f32 1.0, %v2961_v11  ;;  %vm2966_vm14 = vweird.f32 %v4073_v44 }
 0x2d2   :  { %v2923_v48 = vsel %vm2922_vm10, %v4065_v45, %v2919_v26  ;;  %v2948_v10 = vmul.f32 %v4071_v58, %v2947_v47  ;;  %v2976_v56 = vmul.f32 %v4075_v31, %v6755_v51  ;;  %vm6815_vm13 = vcmp.eq.f32.partialorder %v2984_v2, 8.507059e+37 }
 0x2d3   :  { %v2928_v19 = vsel %vm6767_vm5, %v2927_v1, %v2923_v48  ;;  %v2938_v40 = vsel %vm2937_vm12, %v4067_v36, %v2934_v55  ;;  %v2963_v9 = vmul.f32 %v4073_v44, %v2962_v42  ;;  %v2987_v45 = vor.u32 1.1754944e-38, %v2986_v59  ;;  %vm2952_vm5 = vmor %vm2950_vm4, %vm2951_vm0 }
 0x2d4   :  { %v3315_v18 = vmul.f32 %v2928_v19, %v6674_v29  ;;  %v2943_v25 = vsel %vm6773_vm1, %v2942_v57, %v2938_v40  ;;  %v2949_v4 = vadd.f32 %v4071_v58, %v2948_v10  ;;  %v2977_v49 = vsub.f32 1.0, %v2976_v56  ;;  %vm2967_vm1 = vmor %vm2965_vm7, %vm2966_vm14 }
 0x2d5   :  { %v3316_v20 = vmul.f32 %v2943_v25, %v6678_v63  ;;  %v2999_v36 = vand.u32 2147483647, %v6787_v5  ;;  %v2964_v24 = vadd.f32 %v4073_v44, %v2963_v9  ;;  %vm2981_vm15 = vweird.f32 %v4075_v31 }
 0x2d6   :  { %3379 = vst [vmem:[#allocation5 + $0x140] sm:$0xff] %v3315_v18  ;;  %v3596_v29 = vmul.f32 -1.442695, %v6743_v14  ;;  %v3597_v1 = vmul.f32 -1.442695, %v6758_v7  ;;  %v4077_v34 = vpop.eup %4076  ;;  %v2953_v3 = vsel %vm2952_vm5, %v4071_v58, %v2949_v4  ;;  %v2978_v63 = vmul.f32 %v4075_v31, %v2977_v49  ;;  %vm2982_vm3 = vmor %vm2980_vm11, %vm2981_vm15 }
 0x2d7   :  { %3380 = vst [vmem:[#allocation5 + $0x148] sm:$0xff] %v3316_v20  ;;  %v6834_v39 = vadd.f32 %v6760_v32, %v5364_v62  ;;  %v6838_v23 = vadd.f32 %v6762_v17, %v5385_v22  ;;  %v2958_v57 = vsel %vm6791_vm8, %v2957_v61, %v2953_v3  ;;  %v2968_v50 = vsel %vm2967_vm1, %v4073_v44, %v2964_v24  ;;  %v1928_v30 = vpop.f32.mrf.mxu2  ;;  %v2041_v8 = vpop.f32.mrf.mxu3 }
 0x2d8   :  { %v2991_v43 = vmul.f32 %v4077_v34, %v6787_v5  ;;  %v3001_v6 = vand.u32 2147483648, %v6787_v5  ;;  %v3317_v52 = vmul.f32 %v2958_v57, %v6688_v54  ;;  %v2973_v33 = vsel %vm6797_vm9, %v2972_v46, %v2968_v50 }
 0x2d9   :  { %v2979_v32 = vadd.f32 %v4075_v31, %v2978_v63  ;;  %vm2996_vm2 = vweird.f32 %v4077_v34  ;;  %v3318_v17 = vmul.f32 %v2973_v33, %v6697_v37  ;;  %4078 = vpow2.f32 %v3596_v29 }
 0x2da   :  { %v2992_v61 = vsub.f32 1.0, %v2991_v43  ;;  %v3598_v16 = vmul.f32 -1.442695, %v6834_v39  ;;  %3381 = vst [vmem:[#allocation5 + $0x150] sm:$0xff] %v3317_v52  ;;  %4080 = vpow2.f32 %v3597_v1  ;;  %v3599_v54 = vmul.f32 -1.442695, %v6838_v23 }
 0x2db   :  { %v2983_v58 = vsel %vm2982_vm3, %v4075_v31, %v2979_v32  ;;  %v6854_v27 = vadd.f32 %v1925_v15, %v5364_v62  ;;  %3382 = vst [vmem:[#allocation5 + $0x158] sm:$0xff] %v3318_v17  ;;  %v6860_v51 = vadd.f32 %v6802_v12, %v5385_v22  ;;  %v6865_v21 = vadd.f32 %v1928_v30, %v5364_v62 }
 0x2dc   :  { %v2988_v37 = vsel %vm6815_vm13, %v2987_v45, %v2983_v58  ;;  %v2993_v53 = vmul.f32 %v4077_v34, %v2992_v61  ;;  %4082 = vpow2.f32 %v3598_v16  ;;  %vm2995_vm4 = vweird.f32 %v6787_v5 }
 0x2dd   :  { %v3319_v44 = vmul.f32 %v2988_v37, %v6700_v0  ;;  %4084 = vpow2.f32 %v3599_v54  ;;  %v3600_v41 = vmul.f32 -1.442695, %v6854_v27  ;;  %v3601_v35 = vmul.f32 -1.442695, %v6860_v51  ;;  %vm2997_vm6 = vmor %vm2995_vm4, %vm2996_vm2 }
 0x2de   :  { %v2994_v60 = vadd.f32 %v4077_v34, %v2993_v53  ;;  %v6870_v2 = vadd.f32 %v2041_v8, %v5385_v22  ;;  %v3002_v26 = vor.u32 1.1754944e-38, %v3001_v6  ;;  %vm3000_vm7 = vcmp.eq.f32.partialorder %v2999_v36, 8.507059e+37 }
 0x2df   :  { %3383 = vst [vmem:[#allocation5 + $0x160] sm:$0xff] %v3319_v44  ;;  %4086 = vpow2.f32 %v3600_v41  ;;  %v4079_v0 = vpop.eup %4078  ;;  %v1931_v28 = vpop.f32.mrf.mxu2  ;;  %v3602_v5 = vmul.f32 -1.442695, %v6865_v21 }
 0x2e0   :  { %v2998_v11 = vsel %vm2997_vm6, %v4077_v34, %v2994_v60  ;;  %v4081_v59 = vpop.eup %4080  ;;  %v6873_v12 = vadd.f32 1.0, %v4079_v0  ;;  %4088 = vpow2.f32 %v3601_v35  ;;  %v3603_v31 = vmul.f32 -1.442695, %v6870_v2  ;;  %v2044_v42 = vpop.f32.mrf.mxu3 }
 0x2e1   :  { %v3003_v15 = vsel %vm3000_vm7, %v3002_v26, %v2998_v11  ;;  %v6877_v46 = vadd.f32 1.0, %v4081_v59  ;;  %v6894_v9 = vadd.f32 %v1931_v28, %v5364_v62  ;;  %v6899_v4 = vadd.f32 %v2044_v42, %v5385_v22 }
 0x2e2   :  { %v4083_v55 = vpop.eup %4082  ;;  %v3320_v47 = vmul.f32 %v3003_v15, %v6718_v13  ;;  %4090 = vrcp.f32 %v6873_v12  ;;  %v3014_v13 = vand.u32 2147483647, %v6873_v12  ;;  %v3016_v56 = vand.u32 2147483648, %v6873_v12 }
 0x2e3   :  { %v4085_v48 = vpop.eup %4084  ;;  %4092 = vrcp.f32 %v6877_v46  ;;  %v6882_v40 = vadd.f32 1.0, %v4083_v55  ;;  %v3029_v18 = vand.u32 2147483647, %v6877_v46  ;;  %v3031_v25 = vand.u32 2147483648, %v6877_v46 }
 0x2e4   :  { %3384 = vst [vmem:[#allocation5 + $0x168] sm:$0xff] %v3320_v47  ;;  %v6884_v10 = vadd.f32 1.0, %v4085_v48  ;;  %4094 = vpow2.f32 %v3602_v5  ;;  %vm3010_vm8 = vweird.f32 %v6873_v12  ;;  %vm3025_vm9 = vweird.f32 %v6877_v46 }
 0x2e5   :  { %v4087_v19 = vpop.eup %4086  ;;  %4096 = vpow2.f32 %v3603_v31  ;;  %v3046_v20 = vand.u32 2147483648, %v6882_v40  ;;  %vm6908_vm10 = vcmp.eq.f32.partialorder %v3014_v13, 8.507059e+37  ;;  %v3017_v3 = vor.u32 1.1754944e-38, %v3016_v56 }
 0x2e6   :  { %v6888_v38 = vadd.f32 1.0, %v4087_v19  ;;  %4098 = vrcp.f32 %v6882_v40  ;;  %v4089_v45 = vpop.eup %4088  ;;  %v3061_v36 = vand.u32 2147483648, %v6884_v10  ;;  %v3044_v63 = vand.u32 2147483647, %v6882_v40 }
 0x2e7   :  { %4100 = vrcp.f32 %v6884_v10  ;;  %v6905_v24 = vpop.f32.mrf.mxu2  ;;  %vm6914_vm11 = vcmp.eq.f32.partialorder %v3029_v18, 8.507059e+37  ;;  %v3032_v6 = vor.u32 1.1754944e-38, %v3031_v25  ;;  %v3059_v30 = vand.u32 2147483647, %v6884_v10 }
 0x2e8   :  { %v4091_v49 = vpop.eup %4090  ;;  %4102 = vrcp.f32 %v6888_v38  ;;  %v3604_v52 = vmul.f32 -1.442695, %v6894_v9  ;;  %vm3040_vm0 = vweird.f32 %v6882_v40  ;;  %v3047_v8 = vor.u32 1.1754944e-38, %v3046_v20  ;;  %v6925_v37 = vpop.f32.mrf.mxu3 }
 0x2e9   :  { %v4093_v29 = vpop.eup %4092  ;;  %v3006_v1 = vmul.f32 %v4091_v49, %v6873_v12  ;;  %vm3011_vm12 = vweird.f32 %v4091_v49  ;;  %v6921_v17 = vadd.f32 1.0, %v4089_v45  ;;  %vm3055_vm13 = vweird.f32 %v6884_v10 }
 0x2ea   :  { %v4095_v57 = vpop.eup %4094  ;;  %v3021_v50 = vmul.f32 %v4093_v29, %v6877_v46  ;;  %vm3026_vm14 = vweird.f32 %v4093_v29  ;;  %v3062_v58 = vor.u32 1.1754944e-38, %v3061_v36  ;;  %v3074_v54 = vand.u32 2147483647, %v6888_v38  ;;  %vm3012_vm2 = vmor %vm3010_vm8, %vm3011_vm12 }
 0x2eb   :  { %v4097_v33 = vpop.eup %4096  ;;  %v3007_v32 = vsub.f32 1.0, %v3006_v1  ;;  %vm6928_vm5 = vcmp.eq.f32.partialorder %v3044_v63, 8.507059e+37  ;;  %vm3070_vm15 = vweird.f32 %v6888_v38  ;;  %4104 = vrcp.f32 %v6921_v17  ;;  %vm3027_vm6 = vmor %vm3025_vm9, %vm3026_vm14 }
 0x2ec   :  { %v4099_v61 = vpop.eup %4098  ;;  %v3022_v16 = vsub.f32 1.0, %v3021_v50  ;;  %v6934_v35 = vadd.f32 1.0, %v4095_v57  ;;  %vm6937_vm1 = vcmp.eq.f32.partialorder %v3059_v30, 8.507059e+37  ;;  %v3076_v59 = vand.u32 2147483648, %v6888_v38 }
 0x2ed   :  { %v4101_v53 = vpop.eup %4100  ;;  %v3008_v44 = vmul.f32 %v4091_v49, %v3007_v32  ;;  %v3036_v41 = vmul.f32 %v4099_v61, %v6882_v40  ;;  %v6942_v15 = vadd.f32 1.0, %v4097_v33  ;;  %4106 = vpow2.f32 %v3604_v52 }
 0x2ee   :  { %v4103_v26 = vpop.eup %4102  ;;  %v3023_v0 = vmul.f32 %v4093_v29, %v3022_v16  ;;  %v3051_v11 = vmul.f32 %v4101_v53, %v6884_v10  ;;  %vm3041_vm3 = vweird.f32 %v4099_v61  ;;  %vm3056_vm4 = vweird.f32 %v4101_v53 }
 0x2ef   :  { %v3009_v5 = vadd.f32 %v4091_v49, %v3008_v44  ;;  %v3037_v55 = vsub.f32 1.0, %v3036_v41  ;;  %v3066_v47 = vmul.f32 %v4103_v26, %v6888_v38  ;;  %4108 = vrcp.f32 %v6934_v35  ;;  %v6954_v12 = vpop.f32.mrf.mxu2  ;;  %vm3042_vm8 = vmor %vm3040_vm0, %vm3041_vm3 }
 0x2f0   :  { %v3024_v31 = vadd.f32 %v4093_v29, %v3023_v0  ;;  %v3052_v48 = vsub.f32 1.0, %v3051_v11  ;;  %vm3071_vm7 = vweird.f32 %v4103_v26  ;;  %vm6963_vm9 = vcmp.eq.f32.partialorder %v3074_v54, 8.507059e+37  ;;  %v2050_v52 = vpop.f32.mrf.mxu3 }
 0x2f1   :  { %v3013_v42 = vsel %vm3012_vm2, %v4091_v49, %v3009_v5  ;;  %v3038_v19 = vmul.f32 %v4099_v61, %v3037_v55  ;;  %v3067_v13 = vsub.f32 1.0, %v3066_v47  ;;  %v4105_v45 = vpop.eup %4104  ;;  %v3091_v40 = vand.u32 2147483648, %v6921_v17 }
 0x2f2   :  { %v3018_v56 = vsel %vm6908_vm10, %v3017_v3, %v3013_v42  ;;  %v3028_v18 = vsel %vm3027_vm6, %v4093_v29, %v3024_v31  ;;  %v3053_v25 = vmul.f32 %v4101_v53, %v3052_v48  ;;  %v3081_v3 = vmul.f32 %v4105_v45, %v6921_v17  ;;  %vm3057_vm10 = vmor %vm3055_vm13, %vm3056_vm4 }
 0x2f3   :  { %v3321_v20 = vmul.f32 %v3018_v56, %v6743_v14  ;;  %v3033_v49 = vsel %vm6914_vm11, %v3032_v6, %v3028_v18  ;;  %v3039_v46 = vadd.f32 %v4099_v61, %v3038_v19  ;;  %v3068_v36 = vmul.f32 %v4103_v26, %v3067_v13  ;;  %v4107_v63 = vpop.eup %4106  ;;  %vm3072_vm11 = vmor %vm3070_vm15, %vm3071_vm7 }
 0x2f4   :  { %v3322_v1 = vmul.f32 %v3033_v49, %v6758_v7  ;;  %v3054_v34 = vadd.f32 %v4101_v53, %v3053_v25  ;;  %v3089_v7 = vand.u32 2147483647, %v6921_v17  ;;  %v3077_v6 = vor.u32 1.1754944e-38, %v3076_v59 }
 0x2f5   :  { %3385 = vst [vmem:[#allocation5 + $0x170] sm:$0xff] %v3321_v20  ;;  %v3043_v14 = vsel %vm3042_vm8, %v4099_v61, %v3039_v46  ;;  %v3069_v57 = vadd.f32 %v4103_v26, %v3068_v36  ;;  %v3082_v30 = vsub.f32 1.0, %v3081_v3  ;;  %v4109_v33 = vpop.eup %4108  ;;  %vm3086_vm12 = vweird.f32 %v4105_v45 }
 0x2f6   :  { %3386 = vst [vmem:[#allocation5 + $0x178] sm:$0xff] %v3322_v1  ;;  %v3048_v50 = vsel %vm6928_vm5, %v3047_v8, %v3043_v14  ;;  %v3058_v43 = vsel %vm3057_vm10, %v4101_v53, %v3054_v34  ;;  %v3096_v38 = vmul.f32 %v4109_v33, %v6934_v35  ;;  %vm3085_vm0 = vweird.f32 %v6921_v17 }
 0x2f7   :  { %v3323_v10 = vmul.f32 %v3048_v50, %v6834_v39  ;;  %v3063_v32 = vsel %vm6937_vm1, %v3062_v58, %v3058_v43  ;;  %v3073_v61 = vsel %vm3072_vm11, %v4103_v26, %v3069_v57  ;;  %v3083_v54 = vmul.f32 %v4105_v45, %v3082_v30  ;;  %vm3087_vm13 = vmor %vm3085_vm0, %vm3086_vm12  ;;  %v1940_v59 = vpop.f32.mrf.mxu2 }
 0x2f8   :  { %v3324_v16 = vmul.f32 %v3063_v32, %v6838_v23  ;;  %v3078_v8 = vsel %vm6963_vm9, %v3077_v6, %v3073_v61  ;;  %vm6987_vm14 = vcmp.eq.f32.partialorder %v3089_v7, 8.507059e+37  ;;  %v3092_v58 = vor.u32 1.1754944e-38, %v3091_v40  ;;  %v2053_v13 = vpop.f32.mrf.mxu3 }
 0x2f9   :  { %3387 = vst [vmem:[#allocation5 + $0x180] sm:$0xff] %v3323_v10  ;;  %v3325_v53 = vmul.f32 %v3078_v8, %v6854_v27  ;;  %v3084_v44 = vadd.f32 %v4105_v45, %v3083_v54  ;;  %v3097_v41 = vsub.f32 1.0, %v3096_v38  ;;  %v3104_v23 = vand.u32 2147483647, %v6934_v35 }
 0x2fa   :  { %3388 = vst [vmem:[#allocation5 + $0x188] sm:$0xff] %v3324_v16  ;;  %4110 = vrcp.f32 %v6942_v15  ;;  %vm3101_vm5 = vweird.f32 %v4109_v33  ;;  %v3106_v27 = vand.u32 2147483648, %v6934_v35  ;;  %v6995_v60 = vadd.f32 1.0, %v4107_v63 }
 0x2fb   :  { %3389 = vst [vmem:[#allocation5 + $0x190] sm:$0xff] %v3325_v53  ;;  %v6999_v17 = vadd.f32 %v6905_v24, %v5364_v62  ;;  %v3088_v26 = vsel %vm3087_vm13, %v4105_v45, %v3084_v44  ;;  %v3098_v0 = vmul.f32 %v4109_v33, %v3097_v41  ;;  %v3605_v11 = vmul.f32 -1.442695, %v6899_v4 }
 0x2fc   :  { %v7004_v28 = vadd.f32 %v6925_v37, %v5385_v22  ;;  %v3093_v5 = vsel %vm6987_vm14, %v3092_v58, %v3088_v26  ;;  %4112 = vrcp.f32 %v6995_v60  ;;  %vm3100_vm15 = vweird.f32 %v6934_v35 }
 0x2fd   :  { %v3326_v55 = vmul.f32 %v3093_v5, %v6860_v51  ;;  %v3099_v47 = vadd.f32 %v4109_v33, %v3098_v0  ;;  %vm3105_vm1 = vcmp.eq.f32.partialorder %v3104_v23, 8.507059e+37  ;;  %vm3102_vm2 = vmor %vm3100_vm15, %vm3101_vm5  ;;  %v3107_v24 = vor.u32 1.1754944e-38, %v3106_v27 }
 0x2fe   :  { %4114 = vpow2.f32 %v3605_v11  ;;  %v3606_v31 = vmul.f32 -1.442695, %v6999_v17  ;;  %v3607_v37 = vmul.f32 -1.442695, %v7004_v28  ;;  %v3119_v19 = vand.u32 2147483647, %v6942_v15 }
 0x2ff   :  { %3390 = vst [vmem:[#allocation5 + $0x198] sm:$0xff] %v3326_v55  ;;  %v3103_v42 = vsel %vm3102_vm2, %v4109_v33, %v3099_v47  ;;  %v7017_v51 = vadd.f32 %v6954_v12, %v5364_v62  ;;  %v7020_v35 = vadd.f32 %v2050_v52, %v5385_v22  ;;  %v3121_v25 = vand.u32 2147483648, %v6942_v15  ;;  %v1943_v50 = vpop.f32.mrf.mxu2 }
 0x300   :  { %v4111_v48 = vpop.eup %4110  ;;  %v3108_v56 = vsel %vm3105_vm1, %v3107_v24, %v3103_v42  ;;  %4116 = vpow2.f32 %v3606_v31  ;;  %v7028_v12 = vadd.f32 %v1940_v59, %v5364_v62  ;;  %v7031_v1 = vadd.f32 %v2053_v13, %v5385_v22 }
 0x301   :  { %v3111_v18 = vmul.f32 %v4111_v48, %v6942_v15  ;;  %v3327_v45 = vmul.f32 %v3108_v56, %v6865_v21  ;;  %v3608_v20 = vmul.f32 -1.442695, %v7017_v51  ;;  %v3609_v49 = vmul.f32 -1.442695, %v7020_v35 }
 0x302   :  { %v4113_v46 = vpop.eup %4112  ;;  %4118 = vpow2.f32 %v3607_v37  ;;  %vm3115_vm3 = vweird.f32 %v6942_v15  ;;  %vm7034_vm4 = vcmp.eq.f32.partialorder %v3119_v19, 8.507059e+37  ;;  %v3136_v29 = vand.u32 2147483648, %v6995_v60 }
 0x303   :  { %v3112_v36 = vsub.f32 1.0, %v3111_v18  ;;  %3391 = vst [vmem:[#allocation5 + $0x1a0] sm:$0xff] %v3327_v45  ;;  %v3126_v21 = vmul.f32 %v4113_v46, %v6995_v60  ;;  %vm3116_vm6 = vweird.f32 %v4111_v48  ;;  %4120 = vpow2.f32 %v3608_v20 }
 0x304   :  { %v4115_v3 = vpop.eup %4114  ;;  %v3610_v14 = vmul.f32 -1.442695, %v7028_v12  ;;  %4122 = vpow2.f32 %v3609_v49  ;;  %v3611_v40 = vmul.f32 -1.442695, %v7031_v1  ;;  %v3122_v6 = vor.u32 1.1754944e-38, %v3121_v25  ;;  %vm3117_vm8 = vmor %vm3115_vm3, %vm3116_vm6 }
 0x305   :  { %v3113_v63 = vmul.f32 %v4111_v48, %v3112_v36  ;;  %v3127_v57 = vsub.f32 1.0, %v3126_v21  ;;  %v7041_v7 = vadd.f32 1.0, %v4115_v3  ;;  %vm3130_vm7 = vweird.f32 %v6995_v60 }
 0x306   :  { %4124 = vpow2.f32 %v3610_v14  ;;  %v4117_v30 = vpop.eup %4116  ;;  %vm3131_vm9 = vweird.f32 %v4113_v46  ;;  %v3134_v33 = vand.u32 2147483647, %v6995_v60  ;;  %v3137_v61 = vor.u32 1.1754944e-38, %v3136_v29 }
 0x307   :  { %v3114_v43 = vadd.f32 %v4111_v48, %v3113_v63  ;;  %v3128_v52 = vmul.f32 %v4113_v46, %v3127_v57  ;;  %4126 = vrcp.f32 %v7041_v7  ;;  %v7049_v16 = vadd.f32 1.0, %v4117_v30  ;;  %vm3132_vm10 = vmor %vm3130_vm7, %vm3131_vm9 }
 0x308   :  { %v4119_v10 = vpop.eup %4118  ;;  %v7052_v8 = vadd.f32 %v1943_v50, %v5364_v62  ;;  %4128 = vpow2.f32 %v3611_v40  ;;  %v3149_v58 = vand.u32 2147483647, %v7041_v7  ;;  %v3151_v44 = vand.u32 2147483648, %v7041_v7  ;;  %v2056_v62 = vpop.f32.mrf.mxu3 }
 0x309   :  { %v3118_v32 = vsel %vm3117_vm8, %v4111_v48, %v3114_v43  ;;  %v3129_v38 = vadd.f32 %v4113_v46, %v3128_v52  ;;  %v7056_v15 = vadd.f32 1.0, %v4119_v10  ;;  %v4121_v53 = vpop.eup %4120  ;;  %4130 = vrcp.f32 %v7049_v16 }
 0x30a   :  { %v3123_v54 = vsel %vm7034_vm4, %v3122_v6, %v3118_v32  ;;  %v4123_v41 = vpop.eup %4122  ;;  %vm3135_vm11 = vcmp.eq.f32.partialorder %v3134_v33, 8.507059e+37  ;;  %v3164_v11 = vand.u32 2147483647, %v7049_v16  ;;  %v7070_v59 = vadd.f32 1.0, %v4121_v53 }
 0x30b   :  { %v3328_v39 = vmul.f32 %v3123_v54, %v6870_v2  ;;  %v3133_v23 = vsel %vm3132_vm10, %v4113_v46, %v3129_v38  ;;  %4132 = vrcp.f32 %v7056_v15  ;;  %v7066_v2 = vmul.f32 -1.442695, %v7052_v8 }
 0x30c   :  { %v4125_v27 = vpop.eup %4124  ;;  %v3138_v26 = vsel %vm3135_vm11, %v3137_v61, %v3133_v23  ;;  %v7073_v5 = vadd.f32 %v2056_v62, %v5385_v22  ;;  %vm3145_vm12 = vweird.f32 %v7041_v7  ;;  %vm7077_vm0 = vcmp.eq.f32.partialorder %v3149_v58, 8.507059e+37 }
 0x30d   :  { %3392 = vst [vmem:[#allocation5 + $0x1a8] sm:$0xff] %v3328_v39  ;;  %v4127_v60 = vpop.eup %4126  ;;  %v3329_v0 = vmul.f32 %v3138_v26, %v6894_v9  ;;  %v3152_v24 = vor.u32 1.1754944e-38, %v3151_v44  ;;  %vm3160_vm14 = vweird.f32 %v7049_v16  ;;  %v3166_v9 = vand.u32 2147483648, %v7049_v16 }
 0x30e   :  { %v3141_v55 = vmul.f32 %v4127_v60, %v7041_v7  ;;  %v4129_v31 = vpop.eup %4128  ;;  %v3179_v37 = vand.u32 2147483647, %v7056_v15  ;;  %4134 = vrcp.f32 %v7070_v59  ;;  %vm3175_vm13 = vweird.f32 %v7056_v15 }
 0x30f   :  { %3393 = vst [vmem:[#allocation5 + $0x1b0] sm:$0xff] %v3329_v0  ;;  %v4131_v22 = vpop.eup %4130  ;;  %v7086_v42 = vadd.f32 1.0, %v4123_v41  ;;  %v7088_v19 = vadd.f32 1.0, %v4125_v27  ;;  %vm3146_vm5 = vweird.f32 %v4127_v60  ;;  %vm7091_vm15 = vcmp.eq.f32.partialorder %v3164_v11, 8.507059e+37 }
 0x310   :  { %v3142_v48 = vsub.f32 1.0, %v3141_v55  ;;  %v3156_v56 = vmul.f32 %v4131_v22, %v7049_v16  ;;  %v3181_v25 = vand.u32 2147483648, %v7056_v15  ;;  %v3194_v49 = vand.u32 2147483647, %v7070_v59  ;;  %vm3147_vm2 = vmor %vm3145_vm12, %vm3146_vm5 }
 0x311   :  { %v4133_v13 = vpop.eup %4132  ;;  %4136 = vrcp.f32 %v7086_v42  ;;  %v3167_v36 = vor.u32 1.1754944e-38, %v3166_v9  ;;  %vm7099_vm1 = vcmp.eq.f32.partialorder %v3179_v37, 8.507059e+37  ;;  %v3196_v21 = vand.u32 2147483648, %v7070_v59 }
 0x312   :  { %v3143_v45 = vmul.f32 %v4127_v60, %v3142_v48  ;;  %v3171_v20 = vmul.f32 %v4133_v13, %v7056_v15  ;;  %v3157_v46 = vsub.f32 1.0, %v3156_v56  ;;  %4138 = vrcp.f32 %v7088_v19 }
 0x313   :  { %v7105_v63 = vadd.f32 1.0, %v4129_v31  ;;  %vm3161_vm3 = vweird.f32 %v4131_v22  ;;  %v3182_v40 = vor.u32 1.1754944e-38, %v3181_v25  ;;  %vm3190_vm4 = vweird.f32 %v7070_v59 }
 0x314   :  { %v3144_v29 = vadd.f32 %v4127_v60, %v3143_v45  ;;  %v3172_v3 = vsub.f32 1.0, %v3171_v20  ;;  %v4135_v14 = vpop.eup %4134  ;;  %v3158_v57 = vmul.f32 %v4131_v22, %v3157_v46  ;;  %vm3176_vm6 = vweird.f32 %v4133_v13  ;;  %vm3162_vm9 = vmor %vm3160_vm14, %vm3161_vm3 }
 0x315   :  { %v3186_v6 = vmul.f32 %v4135_v14, %v7070_v59  ;;  %vm7112_vm7 = vcmp.eq.f32.partialorder %v3194_v49, 8.507059e+37  ;;  %v3197_v7 = vor.u32 1.1754944e-38, %v3196_v21  ;;  %vm3205_vm8 = vweird.f32 %v7086_v42  ;;  %vm3177_vm10 = vmor %vm3175_vm13, %vm3176_vm6 }
 0x316   :  { %v3148_v50 = vsel %vm3147_vm2, %v4127_v60, %v3144_v29  ;;  %v3173_v43 = vmul.f32 %v4133_v13, %v3172_v3  ;;  %v3159_v33 = vadd.f32 %v4131_v22, %v3158_v57  ;;  %4140 = vrcp.f32 %v7105_v63 }
 0x317   :  { %v3153_v52 = vsel %vm7077_vm0, %v3152_v24, %v3148_v50  ;;  %v4137_v10 = vpop.eup %4136  ;;  %v3187_v54 = vsub.f32 1.0, %v3186_v6  ;;  %v3209_v39 = vand.u32 2147483647, %v7086_v42  ;;  %v3211_v58 = vand.u32 2147483648, %v7086_v42 }
 0x318   :  { %v3330_v32 = vmul.f32 %v3153_v52, %v6899_v4  ;;  %v3174_v61 = vadd.f32 %v4133_v13, %v3173_v43  ;;  %v3163_v38 = vsel %vm3162_vm9, %v4131_v22, %v3159_v33  ;;  %v3201_v53 = vmul.f32 %v4137_v10, %v7086_v42  ;;  %v4139_v44 = vpop.eup %4138 }
 0x319   :  { %v3168_v4 = vsel %vm7091_vm15, %v3167_v36, %v3163_v38  ;;  %v3188_v62 = vmul.f32 %v4135_v14, %v3187_v54  ;;  %vm3191_vm11 = vweird.f32 %v4135_v14  ;;  %v3216_v27 = vmul.f32 %v4139_v44, %v7088_v19 }
 0x31a   :  { %3394 = vst [vmem:[#allocation5 + $0x1b8] sm:$0xff] %v3330_v32  ;;  %v3178_v16 = vsel %vm3177_vm10, %v4133_v13, %v3174_v61  ;;  %v3331_v41 = vmul.f32 %v3168_v4, %v6999_v17  ;;  %v3202_v23 = vsub.f32 1.0, %v3201_v53  ;;  %vm3220_vm12 = vweird.f32 %v7088_v19  ;;  %vm3192_vm0 = vmor %vm3190_vm4, %vm3191_vm11 }
 0x31b   :  { %v3183_v15 = vsel %vm7099_vm1, %v3182_v40, %v3178_v16  ;;  %v3189_v60 = vadd.f32 %v4135_v14, %v3188_v62  ;;  %v3224_v0 = vand.u32 2147483647, %v7088_v19  ;;  %vm3206_vm14 = vweird.f32 %v4137_v10 }
 0x31c   :  { %v3332_v26 = vmul.f32 %v3183_v15, %v7004_v28  ;;  %3395 = vst [vmem:[#allocation5 + $0x1c0] sm:$0xff] %v3331_v41  ;;  %v3203_v11 = vmul.f32 %v4137_v10, %v3202_v23  ;;  %v3217_v17 = vsub.f32 1.0, %v3216_v27  ;;  %4142 = vpow2.f32 %v7066_v2  ;;  %v4141_v55 = vpop.eup %4140  ;;  %vm3207_vm5 = vmor %vm3205_vm8, %vm3206_vm14 }
 0x31d   :  { %v3193_v47 = vsel %vm3192_vm0, %v4135_v14, %v3189_v60  ;;  %vm3221_vm13 = vweird.f32 %v4139_v44  ;;  %v3226_v28 = vand.u32 2147483648, %v7088_v19  ;;  %v3613_v24 = vmul.f32 -1.442695, %v7073_v5 }
 0x31e   :  { %3396 = vst [vmem:[#allocation5 + $0x1c8] sm:$0xff] %v3332_v26  ;;  %v3198_v31 = vsel %vm7112_vm7, %v3197_v7, %v3193_v47  ;;  %v3204_v9 = vadd.f32 %v4137_v10, %v3203_v11  ;;  %v3218_v37 = vmul.f32 %v4139_v44, %v3217_v17  ;;  %v3231_v59 = vmul.f32 %v4141_v55, %v7105_v63  ;;  %vm3222_vm2 = vmor %vm3220_vm12, %vm3221_vm13 }
 0x31f   :  { %v3333_v22 = vmul.f32 %v3198_v31, %v7017_v51  ;;  %vm3210_vm15 = vcmp.eq.f32.partialorder %v3209_v39, 8.507059e+37  ;;  %v3212_v2 = vor.u32 1.1754944e-38, %v3211_v58  ;;  %4144 = vpow2.f32 %v3613_v24 }
 0x320   :  { %v3208_v48 = vsel %vm3207_vm5, %v4137_v10, %v3204_v9  ;;  %v3219_v13 = vadd.f32 %v4139_v44, %v3218_v37  ;;  %vm3225_vm1 = vcmp.eq.f32.partialorder %v3224_v0, 8.507059e+37  ;;  %v3232_v56 = vsub.f32 1.0, %v3231_v59 }
 0x321   :  { %3397 = vst [vmem:[#allocation5 + $0x1d0] sm:$0xff] %v3333_v22  ;;  %v3213_v18 = vsel %vm3210_vm15, %v3212_v2, %v3208_v48  ;;  %v3227_v25 = vor.u32 1.1754944e-38, %v3226_v28  ;;  %v3239_v45 = vand.u32 2147483647, %v7105_v63  ;;  %v3241_v51 = vand.u32 2147483648, %v7105_v63 }
 0x322   :  { %v4143_v42 = vpop.eup %4142  ;;  %v3334_v20 = vmul.f32 %v3213_v18, %v7020_v35  ;;  %v3223_v49 = vsel %vm3222_vm2, %v4139_v44, %v3219_v13  ;;  %v3233_v46 = vmul.f32 %v4141_v55, %v3232_v56  ;;  %vm3236_vm3 = vweird.f32 %v4141_v55 }
 0x323   :  { %v3228_v36 = vsel %vm3225_vm1, %v3227_v25, %v3223_v49  ;;  %v2313_v34 = vadd.f32 1.0, %v4143_v42  ;;  %vm3235_vm4 = vweird.f32 %v7105_v63  ;;  %v3242_v3 = vor.u32 1.1754944e-38, %v3241_v51 }
 0x324   :  { %3398 = vst [vmem:[#allocation5 + $0x1d8] sm:$0xff] %v3334_v20  ;;  %v3335_v21 = vmul.f32 %v3228_v36, %v7028_v12  ;;  %v3234_v29 = vadd.f32 %v4141_v55, %v3233_v46  ;;  %vm3237_vm6 = vmor %vm3235_vm4, %vm3236_vm3  ;;  %vm3240_vm7 = vcmp.eq.f32.partialorder %v3239_v45, 8.507059e+37 }
 0x325   :  { %v4145_v19 = vpop.eup %4144  ;;  %4146 = vrcp.f32 %v2313_v34  ;;  %v3256_v30 = vand.u32 2147483648, %v2313_v34  ;;  %v3254_v33 = vand.u32 2147483647, %v2313_v34  ;;  %vm3250_vm9 = vweird.f32 %v2313_v34 }
 0x326   :  { %3399 = vst [vmem:[#allocation5 + $0x1e0] sm:$0xff] %v3335_v21  ;;  %v3238_v14 = vsel %vm3237_vm6, %v4141_v55, %v3234_v29  ;;  %v2314_v57 = vadd.f32 1.0, %v4145_v19 }
 0x327   :  { %v3243_v35 = vsel %vm3240_vm7, %v3242_v3, %v3238_v14  ;;  %v3257_v61 = vor.u32 1.1754944e-38, %v3256_v30  ;;  %vm3255_vm12 = vcmp.eq.f32.partialorder %v3254_v33, 8.507059e+37 }
 0x328   :  { %v3336_v40 = vmul.f32 %v3243_v35, %v7031_v1  ;;  %4148 = vrcp.f32 %v2314_v57  ;;  %v3271_v32 = vand.u32 2147483648, %v2314_v57  ;;  %v3269_v1 = vand.u32 2147483647, %v2314_v57 }
 0x329   :  { %vm3265_vm0 = vweird.f32 %v2314_v57 }
 0x32a   :  { %3400 = vst [vmem:[#allocation5 + $0x1e8] sm:$0xff] %v3336_v40  ;;  %v3272_v44 = vor.u32 1.1754944e-38, %v3271_v32  ;;  %vm3270_vm13 = vcmp.eq.f32.partialorder %v3269_v1, 8.507059e+37 }
 0x32b   :  { %v4147_v50 = vpop.eup %4146 }
 0x32c   :  { %v3246_v43 = vmul.f32 %v4147_v50, %v2313_v34  ;;  %vm3251_vm8 = vweird.f32 %v4147_v50 }
 0x32d   :  { %vm3252_vm10 = vmor %vm3250_vm9, %vm3251_vm8 }
 0x32e   :  { %v4149_v6 = vpop.eup %4148  ;;  %v3247_v12 = vsub.f32 1.0, %v3246_v43 }
 0x32f   :  { %v3261_v52 = vmul.f32 %v4149_v6, %v2314_v57  ;;  %vm3266_vm11 = vweird.f32 %v4149_v6 }
 0x330   :  { %v3248_v63 = vmul.f32 %v4147_v50, %v3247_v12  ;;  %vm3267_vm14 = vmor %vm3265_vm0, %vm3266_vm11 }
 0x331   :  { %v3262_v7 = vsub.f32 1.0, %v3261_v52 }
 0x332   :  { %v3249_v10 = vadd.f32 %v4147_v50, %v3248_v63 }
 0x333   :  { %v3263_v54 = vmul.f32 %v4149_v6, %v3262_v7 }
 0x334   :  { %v3253_v38 = vsel %vm3252_vm10, %v4147_v50, %v3249_v10 }
 0x335   :  { %v3258_v53 = vsel %vm3255_vm12, %v3257_v61, %v3253_v38  ;;  %v3264_v39 = vadd.f32 %v4149_v6, %v3263_v54 }
 0x336   :  { %v3337_v58 = vmul.f32 %v3258_v53, %v7052_v8 }
 0x337   :  { %v3268_v4 = vsel %vm3267_vm14, %v4149_v6, %v3264_v39 }
 0x338   :  { %3401 = vst [vmem:[#allocation5 + $0x1f0] sm:$0xff] %v3337_v58  ;;  %v3273_v16 = vsel %vm3270_vm13, %v3272_v44, %v3268_v4 }
 0x339   :  { %v3338_v62 = vmul.f32 %v3273_v16, %v7073_v5 }
 0x33b   :  { %3402 = vst [vmem:[#allocation5 + $0x1f8] sm:$0xff] %v3338_v62 }
 0x33c   :  { %3415 = dma.vmem_to_hbm [thread:$0]  %s3408_s1, 8192, %s3410_s12, [#allocation4], %s4209_s3, %s4209_s3, %s4210_s13  }
 0x33d   :  { %4203 = dma.done.wait [#allocation4], 8192  }
 0x33e   :  { %4204 = vsyncadd [#allocation4], 4294959104 }
 0x33f   :  { %3420 = vsyncpa [#allocation3], 1 }
 0x340   :  { %3421 = vsyncpa [#allocation4], 1 }

</bundles_post_ra>
